<compile_context>
chip_gen: v7x
topology: tpu7x:2x2x1
jax: 0.10.0
libtpu: 0.0.40
codegen_flags: <defaults>
</compile_context>

<pallas_src>
import math

import jax
import jax.numpy as jnp
from jax import lax
from jax.experimental import pallas as pl
from jax.experimental.pallas import tpu as pltpu

# Module hyper-parameters implied by TransAm.__init__ defaults.
D_MODEL = 250          # feature_size
N_HEAD = 10            # nhead
HEAD_DIM = D_MODEL // N_HEAD
D_FF = 2048            # nn.TransformerEncoderLayer default dim_feedforward
LN_EPS = 1e-5          # nn.LayerNorm default eps


def transam_kernel(src_ref, pe_ref,
                   wqkv_ref, bqkv_ref, wo_ref, bo_ref,
                   ln1w_ref, ln1b_ref,
                   w1_ref, b1_ref, w2_ref, b2_ref,
                   ln2w_ref, ln2b_ref,
                   decw_ref, decb_ref,
                   out_ref):
    B, S, _ = src_ref.shape
    D = pe_ref.shape[1]
    H, hd = N_HEAD, HEAD_DIM
    BS = B * S

    # Positional encoding: (B, S, 1) input lane-broadcasts over d_model.
    x3 = src_ref[...] + pe_ref[...][None, :, :]                    # (B, S, D) f32
    x = x3.reshape(BS, D)                                          # flattened rows

    # Causal additive mask (== _generate_square_subsequent_mask), built once.
    row = lax.broadcasted_iota(jnp.int32, (S, S), 0)
    col = lax.broadcasted_iota(jnp.int32, (S, S), 1)
    mask = jnp.where(col <= row, 0.0, -jnp.inf).astype(jnp.float32)

    # ---- fused QKV projection: one wide MXU matmul, bf16 operands / f32 acc ----
    # (1/sqrt(hd) is folded into the Q columns of wqkv / bqkv at pack time.)
    qkv = jnp.dot(x.astype(jnp.bfloat16), wqkv_ref[...],
                  preferred_element_type=jnp.float32) + bqkv_ref[...]   # (BS, 3D)
    qkv3 = qkv.reshape(B, S, 3 * D)

    # ---- per-head attention, batched over B; contexts concatenated at the end ----
    ctx_heads = []
    for h in range(H):
        q_h = qkv3[:, :, h * hd:(h + 1) * hd]                      # (B, S, hd)
        k_h = qkv3[:, :, D + h * hd:D + (h + 1) * hd]
        v_h = qkv3[:, :, 2 * D + h * hd:2 * D + (h + 1) * hd]
        s = jnp.einsum('bqd,bkd->bqk',
                       q_h.astype(jnp.bfloat16), k_h.astype(jnp.bfloat16),
                       preferred_element_type=jnp.float32)         # (B, S, S)
        s = s + mask[None, :, :]
        s = s - jnp.max(s, axis=-1, keepdims=True)
        p = jnp.exp(s)
        p = p * pl.reciprocal(jnp.sum(p, axis=-1, keepdims=True), approx=True)
        ctx = jnp.einsum('bqk,bkd->bqd',
                         p.astype(jnp.bfloat16), v_h.astype(jnp.bfloat16),
                         preferred_element_type=jnp.float32)       # (B, S, hd)
        ctx_heads.append(ctx)

    ctx_all = jnp.concatenate(ctx_heads, axis=-1).reshape(BS, D)   # (BS, D)

    # ---- output projection: single (D, D) matmul on concatenated contexts ----
    attn = jnp.dot(ctx_all.astype(jnp.bfloat16), wo_ref[...],
                   preferred_element_type=jnp.float32) + bo_ref[...]

    def layer_norm(z, w, b):
        mu = jnp.mean(z, axis=-1, keepdims=True)
        zc = z - mu
        var = jnp.mean(zc * zc, axis=-1, keepdims=True)
        return zc * lax.rsqrt(var + LN_EPS) * w + b

    # Post-norm residual 1 (f32).
    y = layer_norm(x + attn, ln1w_ref[...], ln1b_ref[...])         # (BS, D)

    # ---- feed-forward ----
    hid = jnp.dot(y.astype(jnp.bfloat16), w1_ref[...],
                  preferred_element_type=jnp.float32) + b1_ref[...]
    hid = jnp.maximum(hid, 0.0)                                    # ReLU (f32)
    ff = jnp.dot(hid.astype(jnp.bfloat16), w2_ref[...],
                 preferred_element_type=jnp.float32) + b2_ref[...]

    # Post-norm residual 2 (f32).
    z = layer_norm(y + ff, ln2w_ref[...], ln2b_ref[...])

    # ---- decoder Linear(d_model -> 1) as a lane reduction; output stays lane-dense ----
    z3 = z.reshape(B, S, D)
    dec = jnp.sum(z3 * decw_ref[...], axis=-1) + decb_ref[...]     # (B, S)
    out_ref[...] = dec


def positional_encoding(max_len, d_model):
    position = jnp.arange(max_len, dtype=jnp.float32)[:, None]
    div_term = jnp.exp(jnp.arange(0, d_model, 2, dtype=jnp.float32) *
                       (-math.log(10000.0) / d_model))
    pe = jnp.zeros((max_len, d_model), jnp.float32)
    pe = pe.at[:, 0::2].set(jnp.sin(position * div_term))
    pe = pe.at[:, 1::2].set(jnp.cos(position * div_term))
    return pe                                                      # (max_len, D)


def make_params(key, max_len=64):
    D, F, hd = D_MODEL, D_FF, HEAD_DIM
    keys = jax.random.split(key, 8)

    def unif(k, shape, scale):
        return jax.random.uniform(k, shape, jnp.float32, -scale, scale)

    # nn.MultiheadAttention parameters: in_proj (3D, D), out_proj (D, D).
    in_proj_w = unif(keys[0], (3 * D, D), 1.0 / math.sqrt(D))
    in_proj_b = jnp.zeros((3 * D,), jnp.float32)
    out_proj_w = unif(keys[1], (D, D), 1.0 / math.sqrt(D))
    out_proj_b = jnp.zeros((D,), jnp.float32)
    # FFN linears.
    lin1_w = unif(keys[2], (F, D), 1.0 / math.sqrt(D))
    lin1_b = unif(keys[3], (F,), 1.0 / math.sqrt(D))
    lin2_w = unif(keys[4], (D, F), 1.0 / math.sqrt(F))
    lin2_b = unif(keys[5], (D,), 1.0 / math.sqrt(F))
    # Decoder matches TransAm.init_weights(): uniform(-0.1, 0.1), zero bias.
    dec_w = unif(keys[6], (1, D), 0.1)
    dec_b = jnp.zeros((1, 1), jnp.float32)

    # Repack for the kernel: right-multiply form (x @ W), fused QKV with the
    # 1/sqrt(head_dim) attention scale folded into the Q columns.  Matmul
    # weights are stored in bf16 (MXU operands); biases / norms stay f32.
    inv_scale = 1.0 / math.sqrt(hd)
    wq, wk, wv = in_proj_w[:D], in_proj_w[D:2 * D], in_proj_w[2 * D:]
    bq, bk, bv = in_proj_b[:D], in_proj_b[D:2 * D], in_proj_b[2 * D:]
    wqkv = jnp.concatenate([wq.T * inv_scale, wk.T, wv.T], axis=1)     # (D, 3D)
    bqkv = jnp.concatenate([bq * inv_scale, bk, bv])[None, :]          # (1, 3D)

    return dict(
        pe=positional_encoding(max_len, D),
        wqkv=wqkv.astype(jnp.bfloat16), bqkv=bqkv,
        wo=out_proj_w.T.astype(jnp.bfloat16), bo=out_proj_b.reshape(1, D),
        ln1_w=jnp.ones((1, D), jnp.float32), ln1_b=jnp.zeros((1, D), jnp.float32),
        w1=lin1_w.T.astype(jnp.bfloat16), b1=lin1_b.reshape(1, F),
        w2=lin2_w.T.astype(jnp.bfloat16), b2=lin2_b.reshape(1, D),
        ln2_w=jnp.ones((1, D), jnp.float32), ln2_b=jnp.zeros((1, D), jnp.float32),
        dec_w=dec_w, dec_b=dec_b,
    )


def transam_forward(src, params):
    # src: (S, B, 1) float32
    S, B, _ = src.shape
    D, F = D_MODEL, D_FF

    src_b = jnp.transpose(src, (1, 0, 2)).astype(jnp.float32)      # (B, S, 1)
    pe = params['pe'][:S]                                          # (S, D)

    def full(shape):
        zeros = (0,) * len(shape)
        return pl.BlockSpec(shape, lambda i, _z=zeros: _z)

    in_specs = [
        full((B, S, 1)),                                           # src (whole batch, one step)
        full((S, D)),                                              # pe
        full((D, 3 * D)), full((1, 3 * D)),                        # wqkv, bqkv
        full((D, D)), full((1, D)),                                # wo, bo
        full((1, D)), full((1, D)),                                # ln1 w, b
        full((D, F)), full((1, F)),                                # linear1
        full((F, D)), full((1, D)),                                # linear2
        full((1, D)), full((1, D)),                                # ln2 w, b
        full((1, D)), full((1, 1)),                                # decoder w, b
    ]

    out = pl.pallas_call(
        transam_kernel,
        out_shape=jax.ShapeDtypeStruct((B, S), jnp.float32),       # lane-dense output
        grid=(1,),
        in_specs=in_specs,
        out_specs=full((B, S)),
        compiler_params=pltpu.CompilerParams(
            dimension_semantics=("arbitrary",),
            # Actual footprint is ~3 MB (bf16 weights); keep well under v7x's
            # 64 MiB physical VMEM while leaving room for internal scratch.
            vmem_limit_bytes=32 * 1024 * 1024),
    )(src_b, pe,
      params['wqkv'], params['bqkv'], params['wo'], params['bo'],
      params['ln1_w'], params['ln1_b'],
      params['w1'], params['b1'], params['w2'], params['b2'],
      params['ln2_w'], params['ln2_b'],
      params['dec_w'], params['dec_b'])

    return jnp.transpose(out)[:, :, None]                          # (S, B, 1)


if __name__ == "__main__":
    key = jax.random.PRNGKey(0)
    pkey, xkey = jax.random.split(key)
    params = make_params(pkey)

    S, B = 8, 2                                                    # small seq / batch
    src = jax.random.normal(xkey, (S, B, 1), jnp.float32)          # (seq, batch, 1)

    fwd = jax.jit(lambda s: transam_forward(s, params))
    out = jax.block_until_ready(fwd(src))

    assert out.shape == (S, B, 1), out.shape
    assert bool(jnp.all(jnp.isfinite(out)))
    print("KERNEL_OK")
</pallas_src>

<mosaic_0001>
module attributes {stable_mosaic.version = 11 : i64} {
  func.func @transam_kernel(%arg0: i32, %arg1: memref<2x8x1xf32, #tpu.memory_space<vmem>>, %arg2: memref<8x250xf32, #tpu.memory_space<vmem>>, %arg3: memref<250x750xbf16, #tpu.memory_space<vmem>>, %arg4: memref<1x750xf32, #tpu.memory_space<vmem>>, %arg5: memref<250x250xbf16, #tpu.memory_space<vmem>>, %arg6: memref<1x250xf32, #tpu.memory_space<vmem>>, %arg7: memref<1x250xf32, #tpu.memory_space<vmem>>, %arg8: memref<1x250xf32, #tpu.memory_space<vmem>>, %arg9: memref<250x2048xbf16, #tpu.memory_space<vmem>>, %arg10: memref<1x2048xf32, #tpu.memory_space<vmem>>, %arg11: memref<2048x250xbf16, #tpu.memory_space<vmem>>, %arg12: memref<1x250xf32, #tpu.memory_space<vmem>>, %arg13: memref<1x250xf32, #tpu.memory_space<vmem>>, %arg14: memref<1x250xf32, #tpu.memory_space<vmem>>, %arg15: memref<1x250xf32, #tpu.memory_space<vmem>>, %arg16: memref<1x1xf32, #tpu.memory_space<vmem>>, %arg17: memref<2x8xf32, #tpu.memory_space<vmem>>) attributes {dimension_semantics = [#tpu.dimension_semantics<arbitrary>], iteration_bounds = array<i64: 1>, scalar_prefetch = 0 : i64, scratch_operands = 0 : i64, tpu.core_type = #tpu.core_type<tc>, window_params = [{pipeline_mode = #tpu.pipeline_mode<synchronous>, transform_indices = @transform_0, window_bounds = array<i64: 2, 8, 1>}, {pipeline_mode = #tpu.pipeline_mode<synchronous>, transform_indices = @transform_1, window_bounds = array<i64: 8, 250>}, {pipeline_mode = #tpu.pipeline_mode<synchronous>, transform_indices = @transform_2, window_bounds = array<i64: 250, 750>}, {pipeline_mode = #tpu.pipeline_mode<synchronous>, transform_indices = @transform_3, window_bounds = array<i64: 1, 750>}, {pipeline_mode = #tpu.pipeline_mode<synchronous>, transform_indices = @transform_4, window_bounds = array<i64: 250, 250>}, {pipeline_mode = #tpu.pipeline_mode<synchronous>, transform_indices = @transform_5, window_bounds = array<i64: 1, 250>}, {pipeline_mode = #tpu.pipeline_mode<synchronous>, transform_indices = @transform_6, window_bounds = array<i64: 1, 250>}, {pipeline_mode = #tpu.pipeline_mode<synchronous>, transform_indices = @transform_7, window_bounds = array<i64: 1, 250>}, {pipeline_mode = #tpu.pipeline_mode<synchronous>, transform_indices = @transform_8, window_bounds = array<i64: 250, 2048>}, {pipeline_mode = #tpu.pipeline_mode<synchronous>, transform_indices = @transform_9, window_bounds = array<i64: 1, 2048>}, {pipeline_mode = #tpu.pipeline_mode<synchronous>, transform_indices = @transform_10, window_bounds = array<i64: 2048, 250>}, {pipeline_mode = #tpu.pipeline_mode<synchronous>, transform_indices = @transform_11, window_bounds = array<i64: 1, 250>}, {pipeline_mode = #tpu.pipeline_mode<synchronous>, transform_indices = @transform_12, window_bounds = array<i64: 1, 250>}, {pipeline_mode = #tpu.pipeline_mode<synchronous>, transform_indices = @transform_13, window_bounds = array<i64: 1, 250>}, {pipeline_mode = #tpu.pipeline_mode<synchronous>, transform_indices = @transform_14, window_bounds = array<i64: 1, 250>}, {pipeline_mode = #tpu.pipeline_mode<synchronous>, transform_indices = @transform_15, window_bounds = array<i64: 1, 1>}, {pipeline_mode = #tpu.pipeline_mode<synchronous>, transform_indices = @transform_16, window_bounds = array<i64: 2, 8>}]} {
    %c0 = arith.constant 0 : index
    %c0_0 = arith.constant 0 : index
    %c0_1 = arith.constant 0 : index
    %0 = vector.load %arg1[%c0, %c0_0, %c0_1] : memref<2x8x1xf32, #tpu.memory_space<vmem>>, vector<2x8x1xf32>
    %c0_2 = arith.constant 0 : index
    %c0_3 = arith.constant 0 : index
    %1 = vector.load %arg2[%c0_2, %c0_3] : memref<8x250xf32, #tpu.memory_space<vmem>>, vector<8x250xf32>
    %2 = vector.shape_cast %1 : vector<8x250xf32> to vector<1x8x250xf32>
    %3 = vector.broadcast %0 : vector<2x8x1xf32> to vector<2x8x250xf32>
    %4 = vector.broadcast %2 : vector<1x8x250xf32> to vector<2x8x250xf32>
    %5 = arith.addf %3, %4 : vector<2x8x250xf32>
    %6 = vector.shape_cast %5 : vector<2x8x250xf32> to vector<16x250xf32>
    %7 = tpu.iota {dimensions = array<i32: 0>} : vector<8x8xi32>
    %8 = tpu.iota {dimensions = array<i32: 1>} : vector<8x8xi32>
    %9 = arith.cmpi sle, %8, %7 : vector<8x8xi32>
    %cst = arith.constant 0.000000e+00 : f32
    %cst_4 = arith.constant 0xFF800000 : f32
    %10 = vector.broadcast %cst : f32 to vector<8x8xf32>
    %11 = vector.broadcast %cst_4 : f32 to vector<8x8xf32>
    %12 = arith.select %9, %10, %11 : vector<8x8xi1>, vector<8x8xf32>
    %13 = arith.truncf %6 : vector<16x250xf32> to vector<16x250xbf16>
    %c0_5 = arith.constant 0 : index
    %c0_6 = arith.constant 0 : index
    %14 = vector.load %arg3[%c0_5, %c0_6] : memref<250x750xbf16, #tpu.memory_space<vmem>>, vector<250x750xbf16>
    %cst_7 = arith.constant dense<0.000000e+00> : vector<16x750xf32>
    %15 = tpu.matmul %13, %14, %cst_7 {dimension_numbers = #tpu.dot_dimension_numbers<[1], [0], [0], [1], [0, 0, 1, 1], [], []>} : vector<16x250xbf16>, vector<250x750xbf16>, vector<16x750xf32> -> vector<16x750xf32>
    %c0_8 = arith.constant 0 : index
    %c0_9 = arith.constant 0 : index
    %16 = vector.load %arg4[%c0_8, %c0_9] : memref<1x750xf32, #tpu.memory_space<vmem>>, vector<1x750xf32>
    %17 = vector.broadcast %16 : vector<1x750xf32> to vector<16x750xf32>
    %18 = arith.addf %15, %17 : vector<16x750xf32>
    %19 = vector.shape_cast %18 : vector<16x750xf32> to vector<2x8x750xf32>
    %20 = vector.extract_strided_slice %19 {offsets = [0, 0, 0], sizes = [2, 8, 25], strides = [1, 1, 1]} : vector<2x8x750xf32> to vector<2x8x25xf32>
    %21 = vector.extract_strided_slice %19 {offsets = [0, 0, 250], sizes = [2, 8, 25], strides = [1, 1, 1]} : vector<2x8x750xf32> to vector<2x8x25xf32>
    %22 = vector.extract_strided_slice %19 {offsets = [0, 0, 500], sizes = [2, 8, 25], strides = [1, 1, 1]} : vector<2x8x750xf32> to vector<2x8x25xf32>
    %23 = arith.truncf %20 : vector<2x8x25xf32> to vector<2x8x25xbf16>
    %24 = arith.truncf %21 : vector<2x8x25xf32> to vector<2x8x25xbf16>
    "tpu.trace_start"() <{level = 10 : i32, message = "bqd,bkd->bqk"}> : () -> ()
    %cst_10 = arith.constant dense<0.000000e+00> : vector<2x8x8xf32>
    %25 = tpu.matmul %23, %24, %cst_10 {dimension_numbers = #tpu.dot_dimension_numbers<[2], [2], [1], [1], [0, 0, 0, 1, 1, 1], [0], [0]>} : vector<2x8x25xbf16>, vector<2x8x25xbf16>, vector<2x8x8xf32> -> vector<2x8x8xf32>
    "tpu.trace_stop"() : () -> ()
    %26 = vector.shape_cast %12 : vector<8x8xf32> to vector<1x8x8xf32>
    %27 = vector.broadcast %26 : vector<1x8x8xf32> to vector<2x8x8xf32>
    %28 = arith.addf %25, %27 : vector<2x8x8xf32>
    %cst_11 = arith.constant dense<0xFF800000> : vector<2x8xf32>
    %29 = vector.multi_reduction <maximumf>, %28, %cst_11 [2] : vector<2x8x8xf32> to vector<2x8xf32>
    %30 = vector.shape_cast %29 : vector<2x8xf32> to vector<2x8x1xf32>
    %31 = vector.broadcast %30 : vector<2x8x1xf32> to vector<2x8x8xf32>
    %32 = arith.subf %28, %31 : vector<2x8x8xf32>
    %33 = math.exp %32 : vector<2x8x8xf32>
    %cst_12 = arith.constant dense<0.000000e+00> : vector<2x8xf32>
    %34 = vector.multi_reduction <add>, %33, %cst_12 [2] : vector<2x8x8xf32> to vector<2x8xf32>
    %35 = vector.shape_cast %34 : vector<2x8xf32> to vector<2x8x1xf32>
    %36 = tpu.reciprocal %35 {approx = true} : vector<2x8x1xf32> -> vector<2x8x1xf32>
    %37 = vector.broadcast %36 : vector<2x8x1xf32> to vector<2x8x8xf32>
    %38 = arith.mulf %33, %37 : vector<2x8x8xf32>
    %39 = arith.truncf %38 : vector<2x8x8xf32> to vector<2x8x8xbf16>
    %40 = arith.truncf %22 : vector<2x8x25xf32> to vector<2x8x25xbf16>
    "tpu.trace_start"() <{level = 10 : i32, message = "bqk,bkd->bqd"}> : () -> ()
    %cst_13 = arith.constant dense<0.000000e+00> : vector<2x8x25xf32>
    %41 = tpu.matmul %39, %40, %cst_13 {dimension_numbers = #tpu.dot_dimension_numbers<[2], [1], [1], [2], [0, 0, 0, 1, 1, 2], [0], [0]>} : vector<2x8x8xbf16>, vector<2x8x25xbf16>, vector<2x8x25xf32> -> vector<2x8x25xf32>
    "tpu.trace_stop"() : () -> ()
    %42 = vector.extract_strided_slice %19 {offsets = [0, 0, 25], sizes = [2, 8, 25], strides = [1, 1, 1]} : vector<2x8x750xf32> to vector<2x8x25xf32>
    %43 = vector.extract_strided_slice %19 {offsets = [0, 0, 275], sizes = [2, 8, 25], strides = [1, 1, 1]} : vector<2x8x750xf32> to vector<2x8x25xf32>
    %44 = vector.extract_strided_slice %19 {offsets = [0, 0, 525], sizes = [2, 8, 25], strides = [1, 1, 1]} : vector<2x8x750xf32> to vector<2x8x25xf32>
    %45 = arith.truncf %42 : vector<2x8x25xf32> to vector<2x8x25xbf16>
    %46 = arith.truncf %43 : vector<2x8x25xf32> to vector<2x8x25xbf16>
    "tpu.trace_start"() <{level = 10 : i32, message = "bqd,bkd->bqk"}> : () -> ()
    %cst_14 = arith.constant dense<0.000000e+00> : vector<2x8x8xf32>
    %47 = tpu.matmul %45, %46, %cst_14 {dimension_numbers = #tpu.dot_dimension_numbers<[2], [2], [1], [1], [0, 0, 0, 1, 1, 1], [0], [0]>} : vector<2x8x25xbf16>, vector<2x8x25xbf16>, vector<2x8x8xf32> -> vector<2x8x8xf32>
    "tpu.trace_stop"() : () -> ()
    %48 = vector.shape_cast %12 : vector<8x8xf32> to vector<1x8x8xf32>
    %49 = vector.broadcast %48 : vector<1x8x8xf32> to vector<2x8x8xf32>
    %50 = arith.addf %47, %49 : vector<2x8x8xf32>
    %cst_15 = arith.constant dense<0xFF800000> : vector<2x8xf32>
    %51 = vector.multi_reduction <maximumf>, %50, %cst_15 [2] : vector<2x8x8xf32> to vector<2x8xf32>
    %52 = vector.shape_cast %51 : vector<2x8xf32> to vector<2x8x1xf32>
    %53 = vector.broadcast %52 : vector<2x8x1xf32> to vector<2x8x8xf32>
    %54 = arith.subf %50, %53 : vector<2x8x8xf32>
    %55 = math.exp %54 : vector<2x8x8xf32>
    %cst_16 = arith.constant dense<0.000000e+00> : vector<2x8xf32>
    %56 = vector.multi_reduction <add>, %55, %cst_16 [2] : vector<2x8x8xf32> to vector<2x8xf32>
    %57 = vector.shape_cast %56 : vector<2x8xf32> to vector<2x8x1xf32>
    %58 = tpu.reciprocal %57 {approx = true} : vector<2x8x1xf32> -> vector<2x8x1xf32>
    %59 = vector.broadcast %58 : vector<2x8x1xf32> to vector<2x8x8xf32>
    %60 = arith.mulf %55, %59 : vector<2x8x8xf32>
    %61 = arith.truncf %60 : vector<2x8x8xf32> to vector<2x8x8xbf16>
    %62 = arith.truncf %44 : vector<2x8x25xf32> to vector<2x8x25xbf16>
    "tpu.trace_start"() <{level = 10 : i32, message = "bqk,bkd->bqd"}> : () -> ()
    %cst_17 = arith.constant dense<0.000000e+00> : vector<2x8x25xf32>
    %63 = tpu.matmul %61, %62, %cst_17 {dimension_numbers = #tpu.dot_dimension_numbers<[2], [1], [1], [2], [0, 0, 0, 1, 1, 2], [0], [0]>} : vector<2x8x8xbf16>, vector<2x8x25xbf16>, vector<2x8x25xf32> -> vector<2x8x25xf32>
    "tpu.trace_stop"() : () -> ()
    %64 = vector.extract_strided_slice %19 {offsets = [0, 0, 50], sizes = [2, 8, 25], strides = [1, 1, 1]} : vector<2x8x750xf32> to vector<2x8x25xf32>
    %65 = vector.extract_strided_slice %19 {offsets = [0, 0, 300], sizes = [2, 8, 25], strides = [1, 1, 1]} : vector<2x8x750xf32> to vector<2x8x25xf32>
    %66 = vector.extract_strided_slice %19 {offsets = [0, 0, 550], sizes = [2, 8, 25], strides = [1, 1, 1]} : vector<2x8x750xf32> to vector<2x8x25xf32>
    %67 = arith.truncf %64 : vector<2x8x25xf32> to vector<2x8x25xbf16>
    %68 = arith.truncf %65 : vector<2x8x25xf32> to vector<2x8x25xbf16>
    "tpu.trace_start"() <{level = 10 : i32, message = "bqd,bkd->bqk"}> : () -> ()
    %cst_18 = arith.constant dense<0.000000e+00> : vector<2x8x8xf32>
    %69 = tpu.matmul %67, %68, %cst_18 {dimension_numbers = #tpu.dot_dimension_numbers<[2], [2], [1], [1], [0, 0, 0, 1, 1, 1], [0], [0]>} : vector<2x8x25xbf16>, vector<2x8x25xbf16>, vector<2x8x8xf32> -> vector<2x8x8xf32>
    "tpu.trace_stop"() : () -> ()
    %70 = vector.shape_cast %12 : vector<8x8xf32> to vector<1x8x8xf32>
    %71 = vector.broadcast %70 : vector<1x8x8xf32> to vector<2x8x8xf32>
    %72 = arith.addf %69, %71 : vector<2x8x8xf32>
    %cst_19 = arith.constant dense<0xFF800000> : vector<2x8xf32>
    %73 = vector.multi_reduction <maximumf>, %72, %cst_19 [2] : vector<2x8x8xf32> to vector<2x8xf32>
    %74 = vector.shape_cast %73 : vector<2x8xf32> to vector<2x8x1xf32>
    %75 = vector.broadcast %74 : vector<2x8x1xf32> to vector<2x8x8xf32>
    %76 = arith.subf %72, %75 : vector<2x8x8xf32>
    %77 = math.exp %76 : vector<2x8x8xf32>
    %cst_20 = arith.constant dense<0.000000e+00> : vector<2x8xf32>
    %78 = vector.multi_reduction <add>, %77, %cst_20 [2] : vector<2x8x8xf32> to vector<2x8xf32>
    %79 = vector.shape_cast %78 : vector<2x8xf32> to vector<2x8x1xf32>
    %80 = tpu.reciprocal %79 {approx = true} : vector<2x8x1xf32> -> vector<2x8x1xf32>
    %81 = vector.broadcast %80 : vector<2x8x1xf32> to vector<2x8x8xf32>
    %82 = arith.mulf %77, %81 : vector<2x8x8xf32>
    %83 = arith.truncf %82 : vector<2x8x8xf32> to vector<2x8x8xbf16>
    %84 = arith.truncf %66 : vector<2x8x25xf32> to vector<2x8x25xbf16>
    "tpu.trace_start"() <{level = 10 : i32, message = "bqk,bkd->bqd"}> : () -> ()
    %cst_21 = arith.constant dense<0.000000e+00> : vector<2x8x25xf32>
    %85 = tpu.matmul %83, %84, %cst_21 {dimension_numbers = #tpu.dot_dimension_numbers<[2], [1], [1], [2], [0, 0, 0, 1, 1, 2], [0], [0]>} : vector<2x8x8xbf16>, vector<2x8x25xbf16>, vector<2x8x25xf32> -> vector<2x8x25xf32>
    "tpu.trace_stop"() : () -> ()
    %86 = vector.extract_strided_slice %19 {offsets = [0, 0, 75], sizes = [2, 8, 25], strides = [1, 1, 1]} : vector<2x8x750xf32> to vector<2x8x25xf32>
    %87 = vector.extract_strided_slice %19 {offsets = [0, 0, 325], sizes = [2, 8, 25], strides = [1, 1, 1]} : vector<2x8x750xf32> to vector<2x8x25xf32>
    %88 = vector.extract_strided_slice %19 {offsets = [0, 0, 575], sizes = [2, 8, 25], strides = [1, 1, 1]} : vector<2x8x750xf32> to vector<2x8x25xf32>
    %89 = arith.truncf %86 : vector<2x8x25xf32> to vector<2x8x25xbf16>
    %90 = arith.truncf %87 : vector<2x8x25xf32> to vector<2x8x25xbf16>
    "tpu.trace_start"() <{level = 10 : i32, message = "bqd,bkd->bqk"}> : () -> ()
    %cst_22 = arith.constant dense<0.000000e+00> : vector<2x8x8xf32>
    %91 = tpu.matmul %89, %90, %cst_22 {dimension_numbers = #tpu.dot_dimension_numbers<[2], [2], [1], [1], [0, 0, 0, 1, 1, 1], [0], [0]>} : vector<2x8x25xbf16>, vector<2x8x25xbf16>, vector<2x8x8xf32> -> vector<2x8x8xf32>
    "tpu.trace_stop"() : () -> ()
    %92 = vector.shape_cast %12 : vector<8x8xf32> to vector<1x8x8xf32>
    %93 = vector.broadcast %92 : vector<1x8x8xf32> to vector<2x8x8xf32>
    %94 = arith.addf %91, %93 : vector<2x8x8xf32>
    %cst_23 = arith.constant dense<0xFF800000> : vector<2x8xf32>
    %95 = vector.multi_reduction <maximumf>, %94, %cst_23 [2] : vector<2x8x8xf32> to vector<2x8xf32>
    %96 = vector.shape_cast %95 : vector<2x8xf32> to vector<2x8x1xf32>
    %97 = vector.broadcast %96 : vector<2x8x1xf32> to vector<2x8x8xf32>
    %98 = arith.subf %94, %97 : vector<2x8x8xf32>
    %99 = math.exp %98 : vector<2x8x8xf32>
    %cst_24 = arith.constant dense<0.000000e+00> : vector<2x8xf32>
    %100 = vector.multi_reduction <add>, %99, %cst_24 [2] : vector<2x8x8xf32> to vector<2x8xf32>
    %101 = vector.shape_cast %100 : vector<2x8xf32> to vector<2x8x1xf32>
    %102 = tpu.reciprocal %101 {approx = true} : vector<2x8x1xf32> -> vector<2x8x1xf32>
    %103 = vector.broadcast %102 : vector<2x8x1xf32> to vector<2x8x8xf32>
    %104 = arith.mulf %99, %103 : vector<2x8x8xf32>
    %105 = arith.truncf %104 : vector<2x8x8xf32> to vector<2x8x8xbf16>
    %106 = arith.truncf %88 : vector<2x8x25xf32> to vector<2x8x25xbf16>
    "tpu.trace_start"() <{level = 10 : i32, message = "bqk,bkd->bqd"}> : () -> ()
    %cst_25 = arith.constant dense<0.000000e+00> : vector<2x8x25xf32>
    %107 = tpu.matmul %105, %106, %cst_25 {dimension_numbers = #tpu.dot_dimension_numbers<[2], [1], [1], [2], [0, 0, 0, 1, 1, 2], [0], [0]>} : vector<2x8x8xbf16>, vector<2x8x25xbf16>, vector<2x8x25xf32> -> vector<2x8x25xf32>
    "tpu.trace_stop"() : () -> ()
    %108 = vector.extract_strided_slice %19 {offsets = [0, 0, 100], sizes = [2, 8, 25], strides = [1, 1, 1]} : vector<2x8x750xf32> to vector<2x8x25xf32>
    %109 = vector.extract_strided_slice %19 {offsets = [0, 0, 350], sizes = [2, 8, 25], strides = [1, 1, 1]} : vector<2x8x750xf32> to vector<2x8x25xf32>
    %110 = vector.extract_strided_slice %19 {offsets = [0, 0, 600], sizes = [2, 8, 25], strides = [1, 1, 1]} : vector<2x8x750xf32> to vector<2x8x25xf32>
    %111 = arith.truncf %108 : vector<2x8x25xf32> to vector<2x8x25xbf16>
    %112 = arith.truncf %109 : vector<2x8x25xf32> to vector<2x8x25xbf16>
    "tpu.trace_start"() <{level = 10 : i32, message = "bqd,bkd->bqk"}> : () -> ()
    %cst_26 = arith.constant dense<0.000000e+00> : vector<2x8x8xf32>
    %113 = tpu.matmul %111, %112, %cst_26 {dimension_numbers = #tpu.dot_dimension_numbers<[2], [2], [1], [1], [0, 0, 0, 1, 1, 1], [0], [0]>} : vector<2x8x25xbf16>, vector<2x8x25xbf16>, vector<2x8x8xf32> -> vector<2x8x8xf32>
    "tpu.trace_stop"() : () -> ()
    %114 = vector.shape_cast %12 : vector<8x8xf32> to vector<1x8x8xf32>
    %115 = vector.broadcast %114 : vector<1x8x8xf32> to vector<2x8x8xf32>
    %116 = arith.addf %113, %115 : vector<2x8x8xf32>
    %cst_27 = arith.constant dense<0xFF800000> : vector<2x8xf32>
    %117 = vector.multi_reduction <maximumf>, %116, %cst_27 [2] : vector<2x8x8xf32> to vector<2x8xf32>
    %118 = vector.shape_cast %117 : vector<2x8xf32> to vector<2x8x1xf32>
    %119 = vector.broadcast %118 : vector<2x8x1xf32> to vector<2x8x8xf32>
    %120 = arith.subf %116, %119 : vector<2x8x8xf32>
    %121 = math.exp %120 : vector<2x8x8xf32>
    %cst_28 = arith.constant dense<0.000000e+00> : vector<2x8xf32>
    %122 = vector.multi_reduction <add>, %121, %cst_28 [2] : vector<2x8x8xf32> to vector<2x8xf32>
    %123 = vector.shape_cast %122 : vector<2x8xf32> to vector<2x8x1xf32>
    %124 = tpu.reciprocal %123 {approx = true} : vector<2x8x1xf32> -> vector<2x8x1xf32>
    %125 = vector.broadcast %124 : vector<2x8x1xf32> to vector<2x8x8xf32>
    %126 = arith.mulf %121, %125 : vector<2x8x8xf32>
    %127 = arith.truncf %126 : vector<2x8x8xf32> to vector<2x8x8xbf16>
    %128 = arith.truncf %110 : vector<2x8x25xf32> to vector<2x8x25xbf16>
    "tpu.trace_start"() <{level = 10 : i32, message = "bqk,bkd->bqd"}> : () -> ()
    %cst_29 = arith.constant dense<0.000000e+00> : vector<2x8x25xf32>
    %129 = tpu.matmul %127, %128, %cst_29 {dimension_numbers = #tpu.dot_dimension_numbers<[2], [1], [1], [2], [0, 0, 0, 1, 1, 2], [0], [0]>} : vector<2x8x8xbf16>, vector<2x8x25xbf16>, vector<2x8x25xf32> -> vector<2x8x25xf32>
    "tpu.trace_stop"() : () -> ()
    %130 = vector.extract_strided_slice %19 {offsets = [0, 0, 125], sizes = [2, 8, 25], strides = [1, 1, 1]} : vector<2x8x750xf32> to vector<2x8x25xf32>
    %131 = vector.extract_strided_slice %19 {offsets = [0, 0, 375], sizes = [2, 8, 25], strides = [1, 1, 1]} : vector<2x8x750xf32> to vector<2x8x25xf32>
    %132 = vector.extract_strided_slice %19 {offsets = [0, 0, 625], sizes = [2, 8, 25], strides = [1, 1, 1]} : vector<2x8x750xf32> to vector<2x8x25xf32>
    %133 = arith.truncf %130 : vector<2x8x25xf32> to vector<2x8x25xbf16>
    %134 = arith.truncf %131 : vector<2x8x25xf32> to vector<2x8x25xbf16>
    "tpu.trace_start"() <{level = 10 : i32, message = "bqd,bkd->bqk"}> : () -> ()
    %cst_30 = arith.constant dense<0.000000e+00> : vector<2x8x8xf32>
    %135 = tpu.matmul %133, %134, %cst_30 {dimension_numbers = #tpu.dot_dimension_numbers<[2], [2], [1], [1], [0, 0, 0, 1, 1, 1], [0], [0]>} : vector<2x8x25xbf16>, vector<2x8x25xbf16>, vector<2x8x8xf32> -> vector<2x8x8xf32>
    "tpu.trace_stop"() : () -> ()
    %136 = vector.shape_cast %12 : vector<8x8xf32> to vector<1x8x8xf32>
    %137 = vector.broadcast %136 : vector<1x8x8xf32> to vector<2x8x8xf32>
    %138 = arith.addf %135, %137 : vector<2x8x8xf32>
    %cst_31 = arith.constant dense<0xFF800000> : vector<2x8xf32>
    %139 = vector.multi_reduction <maximumf>, %138, %cst_31 [2] : vector<2x8x8xf32> to vector<2x8xf32>
    %140 = vector.shape_cast %139 : vector<2x8xf32> to vector<2x8x1xf32>
    %141 = vector.broadcast %140 : vector<2x8x1xf32> to vector<2x8x8xf32>
    %142 = arith.subf %138, %141 : vector<2x8x8xf32>
    %143 = math.exp %142 : vector<2x8x8xf32>
    %cst_32 = arith.constant dense<0.000000e+00> : vector<2x8xf32>
    %144 = vector.multi_reduction <add>, %143, %cst_32 [2] : vector<2x8x8xf32> to vector<2x8xf32>
    %145 = vector.shape_cast %144 : vector<2x8xf32> to vector<2x8x1xf32>
    %146 = tpu.reciprocal %145 {approx = true} : vector<2x8x1xf32> -> vector<2x8x1xf32>
    %147 = vector.broadcast %146 : vector<2x8x1xf32> to vector<2x8x8xf32>
    %148 = arith.mulf %143, %147 : vector<2x8x8xf32>
    %149 = arith.truncf %148 : vector<2x8x8xf32> to vector<2x8x8xbf16>
    %150 = arith.truncf %132 : vector<2x8x25xf32> to vector<2x8x25xbf16>
    "tpu.trace_start"() <{level = 10 : i32, message = "bqk,bkd->bqd"}> : () -> ()
    %cst_33 = arith.constant dense<0.000000e+00> : vector<2x8x25xf32>
    %151 = tpu.matmul %149, %150, %cst_33 {dimension_numbers = #tpu.dot_dimension_numbers<[2], [1], [1], [2], [0, 0, 0, 1, 1, 2], [0], [0]>} : vector<2x8x8xbf16>, vector<2x8x25xbf16>, vector<2x8x25xf32> -> vector<2x8x25xf32>
    "tpu.trace_stop"() : () -> ()
    %152 = vector.extract_strided_slice %19 {offsets = [0, 0, 150], sizes = [2, 8, 25], strides = [1, 1, 1]} : vector<2x8x750xf32> to vector<2x8x25xf32>
    %153 = vector.extract_strided_slice %19 {offsets = [0, 0, 400], sizes = [2, 8, 25], strides = [1, 1, 1]} : vector<2x8x750xf32> to vector<2x8x25xf32>
    %154 = vector.extract_strided_slice %19 {offsets = [0, 0, 650], sizes = [2, 8, 25], strides = [1, 1, 1]} : vector<2x8x750xf32> to vector<2x8x25xf32>
    %155 = arith.truncf %152 : vector<2x8x25xf32> to vector<2x8x25xbf16>
    %156 = arith.truncf %153 : vector<2x8x25xf32> to vector<2x8x25xbf16>
    "tpu.trace_start"() <{level = 10 : i32, message = "bqd,bkd->bqk"}> : () -> ()
    %cst_34 = arith.constant dense<0.000000e+00> : vector<2x8x8xf32>
    %157 = tpu.matmul %155, %156, %cst_34 {dimension_numbers = #tpu.dot_dimension_numbers<[2], [2], [1], [1], [0, 0, 0, 1, 1, 1], [0], [0]>} : vector<2x8x25xbf16>, vector<2x8x25xbf16>, vector<2x8x8xf32> -> vector<2x8x8xf32>
    "tpu.trace_stop"() : () -> ()
    %158 = vector.shape_cast %12 : vector<8x8xf32> to vector<1x8x8xf32>
    %159 = vector.broadcast %158 : vector<1x8x8xf32> to vector<2x8x8xf32>
    %160 = arith.addf %157, %159 : vector<2x8x8xf32>
    %cst_35 = arith.constant dense<0xFF800000> : vector<2x8xf32>
    %161 = vector.multi_reduction <maximumf>, %160, %cst_35 [2] : vector<2x8x8xf32> to vector<2x8xf32>
    %162 = vector.shape_cast %161 : vector<2x8xf32> to vector<2x8x1xf32>
    %163 = vector.broadcast %162 : vector<2x8x1xf32> to vector<2x8x8xf32>
    %164 = arith.subf %160, %163 : vector<2x8x8xf32>
    %165 = math.exp %164 : vector<2x8x8xf32>
    %cst_36 = arith.constant dense<0.000000e+00> : vector<2x8xf32>
    %166 = vector.multi_reduction <add>, %165, %cst_36 [2] : vector<2x8x8xf32> to vector<2x8xf32>
    %167 = vector.shape_cast %166 : vector<2x8xf32> to vector<2x8x1xf32>
    %168 = tpu.reciprocal %167 {approx = true} : vector<2x8x1xf32> -> vector<2x8x1xf32>
    %169 = vector.broadcast %168 : vector<2x8x1xf32> to vector<2x8x8xf32>
    %170 = arith.mulf %165, %169 : vector<2x8x8xf32>
    %171 = arith.truncf %170 : vector<2x8x8xf32> to vector<2x8x8xbf16>
    %172 = arith.truncf %154 : vector<2x8x25xf32> to vector<2x8x25xbf16>
    "tpu.trace_start"() <{level = 10 : i32, message = "bqk,bkd->bqd"}> : () -> ()
    %cst_37 = arith.constant dense<0.000000e+00> : vector<2x8x25xf32>
    %173 = tpu.matmul %171, %172, %cst_37 {dimension_numbers = #tpu.dot_dimension_numbers<[2], [1], [1], [2], [0, 0, 0, 1, 1, 2], [0], [0]>} : vector<2x8x8xbf16>, vector<2x8x25xbf16>, vector<2x8x25xf32> -> vector<2x8x25xf32>
    "tpu.trace_stop"() : () -> ()
    %174 = vector.extract_strided_slice %19 {offsets = [0, 0, 175], sizes = [2, 8, 25], strides = [1, 1, 1]} : vector<2x8x750xf32> to vector<2x8x25xf32>
    %175 = vector.extract_strided_slice %19 {offsets = [0, 0, 425], sizes = [2, 8, 25], strides = [1, 1, 1]} : vector<2x8x750xf32> to vector<2x8x25xf32>
    %176 = vector.extract_strided_slice %19 {offsets = [0, 0, 675], sizes = [2, 8, 25], strides = [1, 1, 1]} : vector<2x8x750xf32> to vector<2x8x25xf32>
    %177 = arith.truncf %174 : vector<2x8x25xf32> to vector<2x8x25xbf16>
    %178 = arith.truncf %175 : vector<2x8x25xf32> to vector<2x8x25xbf16>
    "tpu.trace_start"() <{level = 10 : i32, message = "bqd,bkd->bqk"}> : () -> ()
    %cst_38 = arith.constant dense<0.000000e+00> : vector<2x8x8xf32>
    %179 = tpu.matmul %177, %178, %cst_38 {dimension_numbers = #tpu.dot_dimension_numbers<[2], [2], [1], [1], [0, 0, 0, 1, 1, 1], [0], [0]>} : vector<2x8x25xbf16>, vector<2x8x25xbf16>, vector<2x8x8xf32> -> vector<2x8x8xf32>
    "tpu.trace_stop"() : () -> ()
    %180 = vector.shape_cast %12 : vector<8x8xf32> to vector<1x8x8xf32>
    %181 = vector.broadcast %180 : vector<1x8x8xf32> to vector<2x8x8xf32>
    %182 = arith.addf %179, %181 : vector<2x8x8xf32>
    %cst_39 = arith.constant dense<0xFF800000> : vector<2x8xf32>
    %183 = vector.multi_reduction <maximumf>, %182, %cst_39 [2] : vector<2x8x8xf32> to vector<2x8xf32>
    %184 = vector.shape_cast %183 : vector<2x8xf32> to vector<2x8x1xf32>
    %185 = vector.broadcast %184 : vector<2x8x1xf32> to vector<2x8x8xf32>
    %186 = arith.subf %182, %185 : vector<2x8x8xf32>
    %187 = math.exp %186 : vector<2x8x8xf32>
    %cst_40 = arith.constant dense<0.000000e+00> : vector<2x8xf32>
    %188 = vector.multi_reduction <add>, %187, %cst_40 [2] : vector<2x8x8xf32> to vector<2x8xf32>
    %189 = vector.shape_cast %188 : vector<2x8xf32> to vector<2x8x1xf32>
    %190 = tpu.reciprocal %189 {approx = true} : vector<2x8x1xf32> -> vector<2x8x1xf32>
    %191 = vector.broadcast %190 : vector<2x8x1xf32> to vector<2x8x8xf32>
    %192 = arith.mulf %187, %191 : vector<2x8x8xf32>
    %193 = arith.truncf %192 : vector<2x8x8xf32> to vector<2x8x8xbf16>
    %194 = arith.truncf %176 : vector<2x8x25xf32> to vector<2x8x25xbf16>
    "tpu.trace_start"() <{level = 10 : i32, message = "bqk,bkd->bqd"}> : () -> ()
    %cst_41 = arith.constant dense<0.000000e+00> : vector<2x8x25xf32>
    %195 = tpu.matmul %193, %194, %cst_41 {dimension_numbers = #tpu.dot_dimension_numbers<[2], [1], [1], [2], [0, 0, 0, 1, 1, 2], [0], [0]>} : vector<2x8x8xbf16>, vector<2x8x25xbf16>, vector<2x8x25xf32> -> vector<2x8x25xf32>
    "tpu.trace_stop"() : () -> ()
    %196 = vector.extract_strided_slice %19 {offsets = [0, 0, 200], sizes = [2, 8, 25], strides = [1, 1, 1]} : vector<2x8x750xf32> to vector<2x8x25xf32>
    %197 = vector.extract_strided_slice %19 {offsets = [0, 0, 450], sizes = [2, 8, 25], strides = [1, 1, 1]} : vector<2x8x750xf32> to vector<2x8x25xf32>
    %198 = vector.extract_strided_slice %19 {offsets = [0, 0, 700], sizes = [2, 8, 25], strides = [1, 1, 1]} : vector<2x8x750xf32> to vector<2x8x25xf32>
    %199 = arith.truncf %196 : vector<2x8x25xf32> to vector<2x8x25xbf16>
    %200 = arith.truncf %197 : vector<2x8x25xf32> to vector<2x8x25xbf16>
    "tpu.trace_start"() <{level = 10 : i32, message = "bqd,bkd->bqk"}> : () -> ()
    %cst_42 = arith.constant dense<0.000000e+00> : vector<2x8x8xf32>
    %201 = tpu.matmul %199, %200, %cst_42 {dimension_numbers = #tpu.dot_dimension_numbers<[2], [2], [1], [1], [0, 0, 0, 1, 1, 1], [0], [0]>} : vector<2x8x25xbf16>, vector<2x8x25xbf16>, vector<2x8x8xf32> -> vector<2x8x8xf32>
    "tpu.trace_stop"() : () -> ()
    %202 = vector.shape_cast %12 : vector<8x8xf32> to vector<1x8x8xf32>
    %203 = vector.broadcast %202 : vector<1x8x8xf32> to vector<2x8x8xf32>
    %204 = arith.addf %201, %203 : vector<2x8x8xf32>
    %cst_43 = arith.constant dense<0xFF800000> : vector<2x8xf32>
    %205 = vector.multi_reduction <maximumf>, %204, %cst_43 [2] : vector<2x8x8xf32> to vector<2x8xf32>
    %206 = vector.shape_cast %205 : vector<2x8xf32> to vector<2x8x1xf32>
    %207 = vector.broadcast %206 : vector<2x8x1xf32> to vector<2x8x8xf32>
    %208 = arith.subf %204, %207 : vector<2x8x8xf32>
    %209 = math.exp %208 : vector<2x8x8xf32>
    %cst_44 = arith.constant dense<0.000000e+00> : vector<2x8xf32>
    %210 = vector.multi_reduction <add>, %209, %cst_44 [2] : vector<2x8x8xf32> to vector<2x8xf32>
    %211 = vector.shape_cast %210 : vector<2x8xf32> to vector<2x8x1xf32>
    %212 = tpu.reciprocal %211 {approx = true} : vector<2x8x1xf32> -> vector<2x8x1xf32>
    %213 = vector.broadcast %212 : vector<2x8x1xf32> to vector<2x8x8xf32>
    %214 = arith.mulf %209, %213 : vector<2x8x8xf32>
    %215 = arith.truncf %214 : vector<2x8x8xf32> to vector<2x8x8xbf16>
    %216 = arith.truncf %198 : vector<2x8x25xf32> to vector<2x8x25xbf16>
    "tpu.trace_start"() <{level = 10 : i32, message = "bqk,bkd->bqd"}> : () -> ()
    %cst_45 = arith.constant dense<0.000000e+00> : vector<2x8x25xf32>
    %217 = tpu.matmul %215, %216, %cst_45 {dimension_numbers = #tpu.dot_dimension_numbers<[2], [1], [1], [2], [0, 0, 0, 1, 1, 2], [0], [0]>} : vector<2x8x8xbf16>, vector<2x8x25xbf16>, vector<2x8x25xf32> -> vector<2x8x25xf32>
    "tpu.trace_stop"() : () -> ()
    %218 = vector.extract_strided_slice %19 {offsets = [0, 0, 225], sizes = [2, 8, 25], strides = [1, 1, 1]} : vector<2x8x750xf32> to vector<2x8x25xf32>
    %219 = vector.extract_strided_slice %19 {offsets = [0, 0, 475], sizes = [2, 8, 25], strides = [1, 1, 1]} : vector<2x8x750xf32> to vector<2x8x25xf32>
    %220 = vector.extract_strided_slice %19 {offsets = [0, 0, 725], sizes = [2, 8, 25], strides = [1, 1, 1]} : vector<2x8x750xf32> to vector<2x8x25xf32>
    %221 = arith.truncf %218 : vector<2x8x25xf32> to vector<2x8x25xbf16>
    %222 = arith.truncf %219 : vector<2x8x25xf32> to vector<2x8x25xbf16>
    "tpu.trace_start"() <{level = 10 : i32, message = "bqd,bkd->bqk"}> : () -> ()
    %cst_46 = arith.constant dense<0.000000e+00> : vector<2x8x8xf32>
    %223 = tpu.matmul %221, %222, %cst_46 {dimension_numbers = #tpu.dot_dimension_numbers<[2], [2], [1], [1], [0, 0, 0, 1, 1, 1], [0], [0]>} : vector<2x8x25xbf16>, vector<2x8x25xbf16>, vector<2x8x8xf32> -> vector<2x8x8xf32>
    "tpu.trace_stop"() : () -> ()
    %224 = vector.shape_cast %12 : vector<8x8xf32> to vector<1x8x8xf32>
    %225 = vector.broadcast %224 : vector<1x8x8xf32> to vector<2x8x8xf32>
    %226 = arith.addf %223, %225 : vector<2x8x8xf32>
    %cst_47 = arith.constant dense<0xFF800000> : vector<2x8xf32>
    %227 = vector.multi_reduction <maximumf>, %226, %cst_47 [2] : vector<2x8x8xf32> to vector<2x8xf32>
    %228 = vector.shape_cast %227 : vector<2x8xf32> to vector<2x8x1xf32>
    %229 = vector.broadcast %228 : vector<2x8x1xf32> to vector<2x8x8xf32>
    %230 = arith.subf %226, %229 : vector<2x8x8xf32>
    %231 = math.exp %230 : vector<2x8x8xf32>
    %cst_48 = arith.constant dense<0.000000e+00> : vector<2x8xf32>
    %232 = vector.multi_reduction <add>, %231, %cst_48 [2] : vector<2x8x8xf32> to vector<2x8xf32>
    %233 = vector.shape_cast %232 : vector<2x8xf32> to vector<2x8x1xf32>
    %234 = tpu.reciprocal %233 {approx = true} : vector<2x8x1xf32> -> vector<2x8x1xf32>
    %235 = vector.broadcast %234 : vector<2x8x1xf32> to vector<2x8x8xf32>
    %236 = arith.mulf %231, %235 : vector<2x8x8xf32>
    %237 = arith.truncf %236 : vector<2x8x8xf32> to vector<2x8x8xbf16>
    %238 = arith.truncf %220 : vector<2x8x25xf32> to vector<2x8x25xbf16>
    "tpu.trace_start"() <{level = 10 : i32, message = "bqk,bkd->bqd"}> : () -> ()
    %cst_49 = arith.constant dense<0.000000e+00> : vector<2x8x25xf32>
    %239 = tpu.matmul %237, %238, %cst_49 {dimension_numbers = #tpu.dot_dimension_numbers<[2], [1], [1], [2], [0, 0, 0, 1, 1, 2], [0], [0]>} : vector<2x8x8xbf16>, vector<2x8x25xbf16>, vector<2x8x25xf32> -> vector<2x8x25xf32>
    "tpu.trace_stop"() : () -> ()
    %240 = tpu.concatenate %41, %63, %85, %107, %129, %151, %173, %195, %217, %239 in 2 : vector<2x8x25xf32>, vector<2x8x25xf32>, vector<2x8x25xf32>, vector<2x8x25xf32>, vector<2x8x25xf32>, vector<2x8x25xf32>, vector<2x8x25xf32>, vector<2x8x25xf32>, vector<2x8x25xf32>, vector<2x8x25xf32> -> vector<2x8x250xf32>
    %241 = vector.shape_cast %240 : vector<2x8x250xf32> to vector<16x250xf32>
    %242 = arith.truncf %241 : vector<16x250xf32> to vector<16x250xbf16>
    %c0_50 = arith.constant 0 : index
    %c0_51 = arith.constant 0 : index
    %243 = vector.load %arg5[%c0_50, %c0_51] : memref<250x250xbf16, #tpu.memory_space<vmem>>, vector<250x250xbf16>
    %cst_52 = arith.constant dense<0.000000e+00> : vector<16x250xf32>
    %244 = tpu.matmul %242, %243, %cst_52 {dimension_numbers = #tpu.dot_dimension_numbers<[1], [0], [0], [1], [0, 0, 1, 1], [], []>} : vector<16x250xbf16>, vector<250x250xbf16>, vector<16x250xf32> -> vector<16x250xf32>
    %c0_53 = arith.constant 0 : index
    %c0_54 = arith.constant 0 : index
    %245 = vector.load %arg6[%c0_53, %c0_54] : memref<1x250xf32, #tpu.memory_space<vmem>>, vector<1x250xf32>
    %246 = vector.broadcast %245 : vector<1x250xf32> to vector<16x250xf32>
    %247 = arith.addf %244, %246 : vector<16x250xf32>
    %248 = arith.addf %6, %247 : vector<16x250xf32>
    %c0_55 = arith.constant 0 : index
    %c0_56 = arith.constant 0 : index
    %249 = vector.load %arg7[%c0_55, %c0_56] : memref<1x250xf32, #tpu.memory_space<vmem>>, vector<1x250xf32>
    %c0_57 = arith.constant 0 : index
    %c0_58 = arith.constant 0 : index
    %250 = vector.load %arg8[%c0_57, %c0_58] : memref<1x250xf32, #tpu.memory_space<vmem>>, vector<1x250xf32>
    %cst_59 = arith.constant dense<0.000000e+00> : vector<16xf32>
    %251 = vector.multi_reduction <add>, %248, %cst_59 [1] : vector<16x250xf32> to vector<16xf32>
    %252 = vector.shape_cast %251 : vector<16xf32> to vector<16x1xf32>
    %cst_60 = arith.constant 2.500000e+02 : f32
    %253 = vector.broadcast %cst_60 : f32 to vector<16x1xf32>
    %254 = arith.divf %252, %253 : vector<16x1xf32>
    %255 = vector.broadcast %254 : vector<16x1xf32> to vector<16x250xf32>
    %256 = arith.subf %248, %255 : vector<16x250xf32>
    %257 = arith.mulf %256, %256 : vector<16x250xf32>
    %cst_61 = arith.constant dense<0.000000e+00> : vector<16xf32>
    %258 = vector.multi_reduction <add>, %257, %cst_61 [1] : vector<16x250xf32> to vector<16xf32>
    %259 = vector.shape_cast %258 : vector<16xf32> to vector<16x1xf32>
    %cst_62 = arith.constant 2.500000e+02 : f32
    %260 = vector.broadcast %cst_62 : f32 to vector<16x1xf32>
    %261 = arith.divf %259, %260 : vector<16x1xf32>
    %cst_63 = arith.constant 9.99999974E-6 : f32
    %262 = vector.broadcast %cst_63 : f32 to vector<16x1xf32>
    %263 = arith.addf %261, %262 : vector<16x1xf32>
    %264 = math.rsqrt %263 : vector<16x1xf32>
    %265 = vector.broadcast %264 : vector<16x1xf32> to vector<16x250xf32>
    %266 = arith.mulf %256, %265 : vector<16x250xf32>
    %267 = vector.broadcast %249 : vector<1x250xf32> to vector<16x250xf32>
    %268 = arith.mulf %266, %267 : vector<16x250xf32>
    %269 = vector.broadcast %250 : vector<1x250xf32> to vector<16x250xf32>
    %270 = arith.addf %268, %269 : vector<16x250xf32>
    %271 = arith.truncf %270 : vector<16x250xf32> to vector<16x250xbf16>
    %c0_64 = arith.constant 0 : index
    %c0_65 = arith.constant 0 : index
    %272 = vector.load %arg9[%c0_64, %c0_65] : memref<250x2048xbf16, #tpu.memory_space<vmem>>, vector<250x2048xbf16>
    %cst_66 = arith.constant dense<0.000000e+00> : vector<16x2048xf32>
    %273 = tpu.matmul %271, %272, %cst_66 {dimension_numbers = #tpu.dot_dimension_numbers<[1], [0], [0], [1], [0, 0, 1, 1], [], []>} : vector<16x250xbf16>, vector<250x2048xbf16>, vector<16x2048xf32> -> vector<16x2048xf32>
    %c0_67 = arith.constant 0 : index
    %c0_68 = arith.constant 0 : index
    %274 = vector.load %arg10[%c0_67, %c0_68] : memref<1x2048xf32, #tpu.memory_space<vmem>>, vector<1x2048xf32>
    %275 = vector.broadcast %274 : vector<1x2048xf32> to vector<16x2048xf32>
    %276 = arith.addf %273, %275 : vector<16x2048xf32>
    %cst_69 = arith.constant 0.000000e+00 : f32
    %277 = vector.broadcast %cst_69 : f32 to vector<16x2048xf32>
    %278 = arith.maximumf %276, %277 : vector<16x2048xf32>
    %279 = arith.truncf %278 : vector<16x2048xf32> to vector<16x2048xbf16>
    %c0_70 = arith.constant 0 : index
    %c0_71 = arith.constant 0 : index
    %280 = vector.load %arg11[%c0_70, %c0_71] : memref<2048x250xbf16, #tpu.memory_space<vmem>>, vector<2048x250xbf16>
    %cst_72 = arith.constant dense<0.000000e+00> : vector<16x250xf32>
    %281 = tpu.matmul %279, %280, %cst_72 {dimension_numbers = #tpu.dot_dimension_numbers<[1], [0], [0], [1], [0, 0, 1, 1], [], []>} : vector<16x2048xbf16>, vector<2048x250xbf16>, vector<16x250xf32> -> vector<16x250xf32>
    %c0_73 = arith.constant 0 : index
    %c0_74 = arith.constant 0 : index
    %282 = vector.load %arg12[%c0_73, %c0_74] : memref<1x250xf32, #tpu.memory_space<vmem>>, vector<1x250xf32>
    %283 = vector.broadcast %282 : vector<1x250xf32> to vector<16x250xf32>
    %284 = arith.addf %281, %283 : vector<16x250xf32>
    %285 = arith.addf %270, %284 : vector<16x250xf32>
    %c0_75 = arith.constant 0 : index
    %c0_76 = arith.constant 0 : index
    %286 = vector.load %arg13[%c0_75, %c0_76] : memref<1x250xf32, #tpu.memory_space<vmem>>, vector<1x250xf32>
    %c0_77 = arith.constant 0 : index
    %c0_78 = arith.constant 0 : index
    %287 = vector.load %arg14[%c0_77, %c0_78] : memref<1x250xf32, #tpu.memory_space<vmem>>, vector<1x250xf32>
    %cst_79 = arith.constant dense<0.000000e+00> : vector<16xf32>
    %288 = vector.multi_reduction <add>, %285, %cst_79 [1] : vector<16x250xf32> to vector<16xf32>
    %289 = vector.shape_cast %288 : vector<16xf32> to vector<16x1xf32>
    %cst_80 = arith.constant 2.500000e+02 : f32
    %290 = vector.broadcast %cst_80 : f32 to vector<16x1xf32>
    %291 = arith.divf %289, %290 : vector<16x1xf32>
    %292 = vector.broadcast %291 : vector<16x1xf32> to vector<16x250xf32>
    %293 = arith.subf %285, %292 : vector<16x250xf32>
    %294 = arith.mulf %293, %293 : vector<16x250xf32>
    %cst_81 = arith.constant dense<0.000000e+00> : vector<16xf32>
    %295 = vector.multi_reduction <add>, %294, %cst_81 [1] : vector<16x250xf32> to vector<16xf32>
    %296 = vector.shape_cast %295 : vector<16xf32> to vector<16x1xf32>
    %cst_82 = arith.constant 2.500000e+02 : f32
    %297 = vector.broadcast %cst_82 : f32 to vector<16x1xf32>
    %298 = arith.divf %296, %297 : vector<16x1xf32>
    %cst_83 = arith.constant 9.99999974E-6 : f32
    %299 = vector.broadcast %cst_83 : f32 to vector<16x1xf32>
    %300 = arith.addf %298, %299 : vector<16x1xf32>
    %301 = math.rsqrt %300 : vector<16x1xf32>
    %302 = vector.broadcast %301 : vector<16x1xf32> to vector<16x250xf32>
    %303 = arith.mulf %293, %302 : vector<16x250xf32>
    %304 = vector.broadcast %286 : vector<1x250xf32> to vector<16x250xf32>
    %305 = arith.mulf %303, %304 : vector<16x250xf32>
    %306 = vector.broadcast %287 : vector<1x250xf32> to vector<16x250xf32>
    %307 = arith.addf %305, %306 : vector<16x250xf32>
    %308 = vector.shape_cast %307 : vector<16x250xf32> to vector<2x8x250xf32>
    %c0_84 = arith.constant 0 : index
    %c0_85 = arith.constant 0 : index
    %309 = vector.load %arg15[%c0_84, %c0_85] : memref<1x250xf32, #tpu.memory_space<vmem>>, vector<1x250xf32>
    %310 = vector.shape_cast %309 : vector<1x250xf32> to vector<1x1x250xf32>
    %311 = vector.broadcast %310 : vector<1x1x250xf32> to vector<2x8x250xf32>
    %312 = arith.mulf %308, %311 : vector<2x8x250xf32>
    %cst_86 = arith.constant dense<0.000000e+00> : vector<2x8xf32>
    %313 = vector.multi_reduction <add>, %312, %cst_86 [2] : vector<2x8x250xf32> to vector<2x8xf32>
    %c0_87 = arith.constant 0 : index
    %c0_88 = arith.constant 0 : index
    %314 = vector.load %arg16[%c0_87, %c0_88] : memref<1x1xf32, #tpu.memory_space<vmem>>, vector<1x1xf32>
    %315 = vector.broadcast %314 : vector<1x1xf32> to vector<2x8xf32>
    %316 = arith.addf %313, %315 : vector<2x8xf32>
    %c0_89 = arith.constant 0 : index
    %c0_90 = arith.constant 0 : index
    %317 = vector.load %arg17[%c0_89, %c0_90] : memref<2x8xf32, #tpu.memory_space<vmem>>, vector<2x8xf32>
    tpu.vector_store %arg17[%c0_89, %c0_90], %316 {strides = array<i32>} : memref<2x8xf32, #tpu.memory_space<vmem>>, vector<2x8xf32>,
    return
  }
  func.func @transform_0(%arg0: i32) -> (i32, i32, i32) {
    %c0_i32 = arith.constant 0 : i32
    %c0_i32_0 = arith.constant 0 : i32
    %c0_i32_1 = arith.constant 0 : i32
    %c0_i32_2 = arith.constant 0 : i32
    return %c0_i32, %c0_i32_0, %c0_i32_1 : i32, i32, i32
  }
  func.func @transform_1(%arg0: i32) -> (i32, i32) {
    %c0_i32 = arith.constant 0 : i32
    %c0_i32_0 = arith.constant 0 : i32
    %c0_i32_1 = arith.constant 0 : i32
    return %c0_i32, %c0_i32_0 : i32, i32
  }
  func.func @transform_2(%arg0: i32) -> (i32, i32) {
    %c0_i32 = arith.constant 0 : i32
    %c0_i32_0 = arith.constant 0 : i32
    %c0_i32_1 = arith.constant 0 : i32
    return %c0_i32, %c0_i32_0 : i32, i32
  }
  func.func @transform_3(%arg0: i32) -> (i32, i32) {
    %c0_i32 = arith.constant 0 : i32
    %c0_i32_0 = arith.constant 0 : i32
    %c0_i32_1 = arith.constant 0 : i32
    return %c0_i32, %c0_i32_0 : i32, i32
  }
  func.func @transform_4(%arg0: i32) -> (i32, i32) {
    %c0_i32 = arith.constant 0 : i32
    %c0_i32_0 = arith.constant 0 : i32
    %c0_i32_1 = arith.constant 0 : i32
    return %c0_i32, %c0_i32_0 : i32, i32
  }
  func.func @transform_5(%arg0: i32) -> (i32, i32) {
    %c0_i32 = arith.constant 0 : i32
    %c0_i32_0 = arith.constant 0 : i32
    %c0_i32_1 = arith.constant 0 : i32
    return %c0_i32, %c0_i32_0 : i32, i32
  }
  func.func @transform_6(%arg0: i32) -> (i32, i32) {
    %c0_i32 = arith.constant 0 : i32
    %c0_i32_0 = arith.constant 0 : i32
    %c0_i32_1 = arith.constant 0 : i32
    return %c0_i32, %c0_i32_0 : i32, i32
  }
  func.func @transform_7(%arg0: i32) -> (i32, i32) {
    %c0_i32 = arith.constant 0 : i32
    %c0_i32_0 = arith.constant 0 : i32
    %c0_i32_1 = arith.constant 0 : i32
    return %c0_i32, %c0_i32_0 : i32, i32
  }
  func.func @transform_8(%arg0: i32) -> (i32, i32) {
    %c0_i32 = arith.constant 0 : i32
    %c0_i32_0 = arith.constant 0 : i32
    %c0_i32_1 = arith.constant 0 : i32
    return %c0_i32, %c0_i32_0 : i32, i32
  }
  func.func @transform_9(%arg0: i32) -> (i32, i32) {
    %c0_i32 = arith.constant 0 : i32
    %c0_i32_0 = arith.constant 0 : i32
    %c0_i32_1 = arith.constant 0 : i32
    return %c0_i32, %c0_i32_0 : i32, i32
  }
  func.func @transform_10(%arg0: i32) -> (i32, i32) {
    %c0_i32 = arith.constant 0 : i32
    %c0_i32_0 = arith.constant 0 : i32
    %c0_i32_1 = arith.constant 0 : i32
    return %c0_i32, %c0_i32_0 : i32, i32
  }
  func.func @transform_11(%arg0: i32) -> (i32, i32) {
    %c0_i32 = arith.constant 0 : i32
    %c0_i32_0 = arith.constant 0 : i32
    %c0_i32_1 = arith.constant 0 : i32
    return %c0_i32, %c0_i32_0 : i32, i32
  }
  func.func @transform_12(%arg0: i32) -> (i32, i32) {
    %c0_i32 = arith.constant 0 : i32
    %c0_i32_0 = arith.constant 0 : i32
    %c0_i32_1 = arith.constant 0 : i32
    return %c0_i32, %c0_i32_0 : i32, i32
  }
  func.func @transform_13(%arg0: i32) -> (i32, i32) {
    %c0_i32 = arith.constant 0 : i32
    %c0_i32_0 = arith.constant 0 : i32
    %c0_i32_1 = arith.constant 0 : i32
    return %c0_i32, %c0_i32_0 : i32, i32
  }
  func.func @transform_14(%arg0: i32) -> (i32, i32) {
    %c0_i32 = arith.constant 0 : i32
    %c0_i32_0 = arith.constant 0 : i32
    %c0_i32_1 = arith.constant 0 : i32
    return %c0_i32, %c0_i32_0 : i32, i32
  }
  func.func @transform_15(%arg0: i32) -> (i32, i32) {
    %c0_i32 = arith.constant 0 : i32
    %c0_i32_0 = arith.constant 0 : i32
    %c0_i32_1 = arith.constant 0 : i32
    return %c0_i32, %c0_i32_0 : i32, i32
  }
  func.func @transform_16(%arg0: i32) -> (i32, i32) {
    %c0_i32 = arith.constant 0 : i32
    %c0_i32_0 = arith.constant 0 : i32
    %c0_i32_1 = arith.constant 0 : i32
    return %c0_i32, %c0_i32_0 : i32, i32
  }
}

</mosaic_0001>

<bundles_post_ra>
// kernel: _lambda_.1
= control target key start
LH: loop header
LB: loop body
LE: loop exit
PB: predicated region body
PF: predicated region fallthrough
CT: control target
= control target key end

     0   :  { %s12302_s0 = inlined_call_operand.vmem [shape: f32[2,8,1], index: 0, kind: input, shape index: {}]   ;;  %s12303_s1 = inlined_call_operand.vmem [shape: f32[8,250], index: 1, kind: input, shape index: {}]   ;;  %s12304_s2 = inlined_call_operand.vmem [shape: bf16[250,750], index: 2, kind: input, shape index: {}]   ;;  %s12305_s3 = inlined_call_operand.vmem [shape: f32[1,750], index: 3, kind: input, shape index: {}]   ;;  %s12306_s4 = inlined_call_operand.vmem [shape: bf16[250,250], index: 4, kind: input, shape index: {}]   ;;  %s12307_s5 = inlined_call_operand.vmem [shape: f32[1,250], index: 5, kind: input, shape index: {}, may-alias: {5,7,13}]   ;;  %s12308_s6 = inlined_call_operand.vmem [shape: f32[1,250], index: 6, kind: input, shape index: {}, may-alias: {6,12}]   ;;  %s12309_s7 = inlined_call_operand.vmem [shape: f32[1,250], index: 7, kind: input, shape index: {}, may-alias: {5,7,13}]   ;;  %s12310_s8 = inlined_call_operand.vmem [shape: bf16[250,2048], index: 8, kind: input, shape index: {}]   ;;  %s12311_s9 = inlined_call_operand.vmem [shape: f32[1,2048], index: 9, kind: input, shape index: {}]   ;;  %s12312_s10 = inlined_call_operand.vmem [shape: bf16[2048,250], index: 10, kind: input, shape index: {}]   ;;  %s12313_s11 = inlined_call_operand.vmem [shape: f32[1,250], index: 11, kind: input, shape index: {}]   ;;  %s12314_s12 = inlined_call_operand.vmem [shape: f32[1,250], index: 12, kind: input, shape index: {}, may-alias: {6,12}]   ;;  %s12315_s13 = inlined_call_operand.vmem [shape: f32[1,250], index: 13, kind: input, shape index: {}, may-alias: {5,7,13}]   ;;  %s12316_s14 = inlined_call_operand.vmem [shape: f32[1,250], index: 14, kind: input, shape index: {}]   ;;  %s12317_s15 = inlined_call_operand.<no memory space> [shape: f32[1,1], index: 15, kind: input, shape index: {}]   ;;  %s12318_s16 = inlined_call_operand.hbm [shape: f32[2,8], index: 16, kind: output, shape index: {}]  }
   0x1   :  { %12320 = sst [smem:[#allocation6_spill]] %s12302_s0  ;;  %v21_v0 = vstv %s12317_s15 }
   0x2   :  { %22 = vst [vmem:[#allocation2] sm:$0x1] %v21_v0 }
   0x3   :  { %s12321_s25 = sld [smem:[#allocation6_spill]]  ;;  %v9436_v2 = vmov 0   ;;  %v8746_v3 = vld [vmem:[%s12304_s2 + $0x4] ss:$24 sps:$4 sm:$0xff]   ;;  %v8748_v4 = vld [vmem:[%s12304_s2] ss:$24 sps:$4 sm:$0xff]  }
   0x4   :  { %8700 = vset.pattern.permute.xlu0 %v9436_v2  ;;  %v8749_v5 = vld [vmem:[%s12304_s2 + $0x34] ss:$24 sps:$4 sm:$0xff]   ;;  %708 = vmatprep.subr.bf16.mxu0 %v8746_v3  ;;  %v8751_v7 = vld [vmem:[%s12304_s2 + $0x30] ss:$24 sps:$4 sm:$0xff]   ;;  %v8752_v8 = vld [vmem:[%s12304_s2 + $0x64] ss:$24 sps:$4 sm:$0xff]  }
   0x5   :  { %709 = vmatpush1.bf16.msra.mxu0 %v8748_v4  ;;  %v8754_v9 = vld [vmem:[%s12304_s2 + $0x60] ss:$24 sps:$4 sm:$0xff]   ;;  %v8755_v10 = vld [vmem:[%s12304_s2 + $0x94] ss:$24 sps:$4 sm:$0xff]   ;;  %v8757_v11 = vld [vmem:[%s12304_s2 + $0x90] ss:$24 sps:$4 sm:$0xff]  }
   0x6   :  { %710 = vmatprep.subr.bf16.mxu0 %v8749_v5  ;;  %v8758_v12 = vld [vmem:[%s12304_s2 + $0xc4] ss:$24 sps:$4 sm:$0xff]   ;;  %v8760_v13 = vld [vmem:[%s12304_s2 + $0xc0] ss:$24 sps:$4 sm:$0xff]   ;;  %v8761_v14 = vld [vmem:[%s12304_s2 + $0xf4] ss:$24 sps:$4 sm:$0xff]  }
   0x7   :  { %v8763_v15 = vld [vmem:[%s12304_s2 + $0xf0] ss:$24 sps:$4 sm:$0xff]   ;;  %v8764_v16 = vld [vmem:[%s12304_s2 + $0x124] ss:$24 sps:$4 sm:$0xff]   ;;  %v8766_v17 = vld [vmem:[%s12304_s2 + $0x120] ss:$24 sps:$4 sm:$0xff]  }
   0x8   :  { %v8767_v18 = vld [vmem:[%s12304_s2 + $0x154] ss:$24 sps:$4 sm:$0xff]   ;;  %v8769_v19 = vld [vmem:[%s12304_s2 + $0x150] ss:$24 sps:$4 sm:$0xff]   ;;  %v8770_v20 = vld [vmem:[%s12304_s2 + $0x184] ss:$24 sps:$4 sm:$0xff]  }
   0x9   :  { %v57_v1 = vld [vmem:[%s12321_s25] sm:$0xff]  ;;  %v58_v6 = vld [vmem:[%s12321_s25 + $0x8] sm:$0xff]  ;;  %711 = vmatpush1.bf16.msra.mxu0 %v8751_v7  ;;  %vm689_vm0 = vcmask 1044480   ;;  %vm685_vm1 = vcmask 998400   ;;  %v8799_v47 = vld [vmem:[%s12304_s2 + $0x3c] ss:$24 sps:$4 sm:$0xff]  }
   0xa   :  { %63 = vperm.xlu0 %8700, %v57_v1   ;;  %712 = vmatprep.subr.bf16.mxu0 %v8752_v8  ;;  %v8772_v21 = vld [vmem:[%s12304_s2 + $0x180] ss:$24 sps:$4 sm:$0xff]   ;;  %v8773_v22 = vld [vmem:[%s12304_s2 + $0x1b4] ss:$24 sps:$4 sm:$0xff]   ;;  %v8775_v23 = vld [vmem:[%s12304_s2 + $0x1b0] ss:$24 sps:$4 sm:$0xff]  }
   0xb   :  { %v8776_v24 = vld [vmem:[%s12304_s2 + $0x1e4] ss:$24 sps:$4 sm:$0xff]   ;;  %v8778_v25 = vld [vmem:[%s12304_s2 + $0x1e0] ss:$24 sps:$4 sm:$0xff]   ;;  %v8779_v26 = vld [vmem:[%s12304_s2 + $0x214] ss:$24 sps:$4 sm:$0xff]  }
   0xc   :  { %v8781_v27 = vld [vmem:[%s12304_s2 + $0x210] ss:$24 sps:$4 sm:$0xff]   ;;  %v8782_v28 = vld [vmem:[%s12304_s2 + $0x244] ss:$24 sps:$4 sm:$0xff]   ;;  %v8784_v29 = vld [vmem:[%s12304_s2 + $0x240] ss:$24 sps:$4 sm:$0xff]  }
   0xd   :  { %713 = vmatpush1.bf16.msra.mxu0 %v8754_v9  ;;  %v8785_v30 = vld [vmem:[%s12304_s2 + $0x274] ss:$24 sps:$4 sm:$0xff]   ;;  %v8787_v31 = vld [vmem:[%s12304_s2 + $0x270] ss:$24 sps:$4 sm:$0xff]   ;;  %v8788_v32 = vld [vmem:[%s12304_s2 + $0x2a4] ss:$24 sps:$4 sm:$0xff]  }
   0xe   :  { %68 = vperm.xlu0 %8700, %v58_v6   ;;  %714 = vmatprep.subr.bf16.mxu0 %v8755_v10  ;;  %v8791_v33 = vld [vmem:[%s12304_s2 + $0x2d4] ss:$24 sps:$4 sm:$0x1f]   ;;  %v8790_v34 = vld [vmem:[%s12304_s2 + $0x2a0] ss:$24 sps:$4 sm:$0xff]  }
   0xf   :  { %v8793_v35 = vld [vmem:[%s12304_s2 + $0x2d0] ss:$24 sps:$4 sm:$0x1f]   ;;  %v8796_v36 = vld [vmem:[%s12304_s2 + $0xc] ss:$24 sps:$4 sm:$0xff]  }
  0x10   :  { %v691_v37 = vsel %vm689_vm0, %v8793_v35, 0  ;;  %v59_v38 = vld [vmem:[%s12303_s1] sm:$0xff]  ;;  %v60_v39 = vld [vmem:[%s12303_s1 + $0x8] sm:$0xff]  ;;  %v8797_v50 = vld [vmem:[%s12304_s2 + $0x38] ss:$24 sps:$4 sm:$0xff]  }
  0x11   :  { %715 = vmatpush1.bf16.msra.mxu0 %v8757_v11  ;;  %v8794_v46 = vld [vmem:[%s12304_s2 + $0x8] ss:$24 sps:$4 sm:$0xff]   ;;  %v8802_v51 = vld [vmem:[%s12304_s2 + $0x6c] ss:$24 sps:$4 sm:$0xff]   ;;  %v8805_v53 = vld [vmem:[%s12304_s2 + $0x9c] ss:$24 sps:$4 sm:$0xff]  }
  0x12   :  { %716 = vmatprep.subr.bf16.mxu0 %v8758_v12  ;;  %v8800_v52 = vld [vmem:[%s12304_s2 + $0x68] ss:$24 sps:$4 sm:$0xff]   ;;  %v8803_v54 = vld [vmem:[%s12304_s2 + $0x98] ss:$24 sps:$4 sm:$0xff]   ;;  %v8808_v55 = vld [vmem:[%s12304_s2 + $0xcc] ss:$24 sps:$4 sm:$0xff]  }
  0x13   :  { %v8806_v56 = vld [vmem:[%s12304_s2 + $0xc8] ss:$24 sps:$4 sm:$0xff]   ;;  %v8811_v57 = vld [vmem:[%s12304_s2 + $0xfc] ss:$24 sps:$4 sm:$0xff]   ;;  %v8809_v58 = vld [vmem:[%s12304_s2 + $0xf8] ss:$24 sps:$4 sm:$0xff]  }
  0x14   :  { %v8814_v59 = vld [vmem:[%s12304_s2 + $0x12c] ss:$24 sps:$4 sm:$0xff]   ;;  %v8812_v60 = vld [vmem:[%s12304_s2 + $0x128] ss:$24 sps:$4 sm:$0xff]   ;;  %v8817_v61 = vld [vmem:[%s12304_s2 + $0x15c] ss:$24 sps:$4 sm:$0xff]  }
  0x15   :  { %717 = vmatpush1.bf16.msra.mxu0 %v8760_v13 }
  0x16   :  { %718 = vmatprep.subr.bf16.mxu0 %v8761_v14 }
  0x19   :  { %719 = vmatpush1.bf16.msra.mxu0 %v8763_v15 }
  0x1a   :  { %720 = vmatprep.subr.bf16.mxu0 %v8764_v16 }
  0x1d   :  { %721 = vmatpush1.bf16.msra.mxu0 %v8766_v17 }
  0x1e   :  { %722 = vmatprep.subr.bf16.mxu0 %v8767_v18 }
  0x21   :  { %723 = vmatpush1.bf16.msra.mxu0 %v8769_v19 }
  0x22   :  { %724 = vmatprep.subr.bf16.mxu0 %v8770_v20 }
  0x25   :  { %725 = vmatpush1.bf16.msra.mxu0 %v8772_v21 }
  0x26   :  { %726 = vmatprep.subr.bf16.mxu0 %v8773_v22 }
  0x29   :  { %727 = vmatpush1.bf16.msra.mxu0 %v8775_v23 }
  0x2a   :  { %728 = vmatprep.subr.bf16.mxu0 %v8776_v24 }
  0x2d   :  { %729 = vmatpush1.bf16.msra.mxu0 %v8778_v25 }
  0x2e   :  { %730 = vmatprep.subr.bf16.mxu0 %v8779_v26 }
  0x31   :  { %731 = vmatpush1.bf16.msra.mxu0 %v8781_v27 }
  0x32   :  { %732 = vmatprep.subr.bf16.mxu0 %v8782_v28 }
  0x35   :  { %733 = vmatpush1.bf16.msra.mxu0 %v8784_v29 }
  0x36   :  { %734 = vmatprep.subr.bf16.mxu0 %v8785_v30 }
  0x39   :  { %735 = vmatpush1.bf16.msra.mxu0 %v8787_v31 }
  0x3a   :  { %736 = vmatprep.subr.bf16.mxu0 %v8788_v32 }
  0x3d   :  { %737 = vmatpush1.bf16.msra.mxu0 %v8790_v34 }
  0x3e   :  { %7696 = vmatprep.subr.msk.bf16.mxu0 %vm689_vm0, %v8791_v33 }
  0x41   :  { %739 = vmatpush1.bf16.msra.mxu0 %v691_v37 }
  0x42   :  { %751 = vmatprep.subr.bf16.mxu0 %v8796_v36 }
  0x89   :  { %v64_v40 = vpop.permute.xlu0 %63 }
  0x8a   :  { %v9680_v42 = vadd.f32 %v64_v40, %v59_v38  ;;  %v9682_v43 = vadd.f32 %v64_v40, %v60_v39 }
  0x8d   :  { %v69_v41 = vpop.permute.xlu0 %68 }
  0x8e   :  { %v9684_v44 = vadd.f32 %v69_v41, %v59_v38  ;;  %v9686_v45 = vadd.f32 %v69_v41, %v60_v39 }
  0x90   :  { %v9696_v48 = vpack.c.bf16 %v9686_v45, %v9682_v43  ;;  %v9700_v49 = vpack.c.bf16 %v9684_v44, %v9680_v42 }
  0x92   :  { %7697 = vmatprep.mubr.msk.bf16.mxu0 %vm685_vm1, %v9696_v48 }
  0x93   :  { %741 = vmatmul.mubr.bf16.vlgmr.msra.gmra.mrb[0].mxu0 %v9700_v49 }
  0x94   :  { %752 = vmatpush1.bf16.msra.mxu0 %v8794_v46  ;;  %7699 = vmatprep.mubr.msk.bf16.mxu0 %vm685_vm1, %v9696_v48 }
  0x95   :  { %753 = vmatprep.subr.bf16.mxu0 %v8799_v47 }
  0x98   :  { %754 = vmatpush1.bf16.msra.mxu0 %v8797_v50 }
  0x99   :  { %755 = vmatprep.subr.bf16.mxu0 %v8802_v51 }
  0x9c   :  { %756 = vmatpush1.bf16.msra.mxu0 %v8800_v52 }
  0x9d   :  { %757 = vmatprep.subr.bf16.mxu0 %v8805_v53 }
  0xa0   :  { %758 = vmatpush1.bf16.msra.mxu0 %v8803_v54 }
  0xa1   :  { %759 = vmatprep.subr.bf16.mxu0 %v8808_v55 }
  0xa4   :  { %760 = vmatpush1.bf16.msra.mxu0 %v8806_v56 }
  0xa5   :  { %761 = vmatprep.subr.bf16.mxu0 %v8811_v57 }
  0xa8   :  { %762 = vmatpush1.bf16.msra.mxu0 %v8809_v58 }
  0xa9   :  { %763 = vmatprep.subr.bf16.mxu0 %v8814_v59 }
  0xaa   :  { %23 = vsyncpa [#allocation4], 0  ;;  %v8815_v62 = vld [vmem:[%s12304_s2 + $0x158] ss:$24 sps:$4 sm:$0xff]   ;;  %v8820_v63 = vld [vmem:[%s12304_s2 + $0x18c] ss:$24 sps:$4 sm:$0xff]   ;;  %v75_v54 = vlaneseq }
  0xab   :  { %v8818_v0 = vld [vmem:[%s12304_s2 + $0x188] ss:$24 sps:$4 sm:$0xff]   ;;  %v8823_v1 = vld [vmem:[%s12304_s2 + $0x1bc] ss:$24 sps:$4 sm:$0xff]   ;;  %v8821_v2 = vld [vmem:[%s12304_s2 + $0x1b8] ss:$24 sps:$4 sm:$0xff]  }
  0xac   :  { %764 = vmatpush1.bf16.msra.mxu0 %v8812_v60  ;;  %v8826_v3 = vld [vmem:[%s12304_s2 + $0x1ec] ss:$24 sps:$4 sm:$0xff]   ;;  %v8824_v4 = vld [vmem:[%s12304_s2 + $0x1e8] ss:$24 sps:$4 sm:$0xff]   ;;  %v8829_v5 = vld [vmem:[%s12304_s2 + $0x21c] ss:$24 sps:$4 sm:$0xff]  }
  0xad   :  { %765 = vmatprep.subr.bf16.mxu0 %v8817_v61  ;;  %v8827_v6 = vld [vmem:[%s12304_s2 + $0x218] ss:$24 sps:$4 sm:$0xff]   ;;  %v8832_v7 = vld [vmem:[%s12304_s2 + $0x24c] ss:$24 sps:$4 sm:$0xff]   ;;  %v8830_v8 = vld [vmem:[%s12304_s2 + $0x248] ss:$24 sps:$4 sm:$0xff]  }
  0xae   :  { %v8835_v9 = vld [vmem:[%s12304_s2 + $0x27c] ss:$24 sps:$4 sm:$0xff]   ;;  %v8833_v10 = vld [vmem:[%s12304_s2 + $0x278] ss:$24 sps:$4 sm:$0xff]   ;;  %v8838_v11 = vld [vmem:[%s12304_s2 + $0x2ac] ss:$24 sps:$4 sm:$0xff]  }
  0xaf   :  { %v8836_v12 = vld [vmem:[%s12304_s2 + $0x2a8] ss:$24 sps:$4 sm:$0xff]   ;;  %v8839_v13 = vld [vmem:[%s12304_s2 + $0x2dc] ss:$24 sps:$4 sm:$0x1f]   ;;  %v9899_v55 = vshrl.u32 %v75_v54, 7 }
  0xb0   :  { %766 = vmatpush1.bf16.msra.mxu0 %v8815_v62  ;;  %v8841_v14 = vld [vmem:[%s12304_s2 + $0x2d8] ss:$24 sps:$4 sm:$0x1f]   ;;  %v8844_v16 = vld [vmem:[%s12304_s2 + $0x14] ss:$24 sps:$4 sm:$0xff]   ;;  %vm9439_vm2 = vmmov 0  }
  0xb1   :  { %767 = vmatprep.subr.bf16.mxu0 %v8820_v63  ;;  %v697_v15 = vsel %vm689_vm0, %v8841_v14, 0  ;;  %v8842_v17 = vld [vmem:[%s12304_s2 + $0x10] ss:$24 sps:$4 sm:$0xff]   ;;  %v8847_v18 = vld [vmem:[%s12304_s2 + $0x44] ss:$24 sps:$4 sm:$0xff]   ;;  %v9902_v56 = vsub.s32 1, %v9899_v55 }
  0xb2   :  { %v8845_v19 = vld [vmem:[%s12304_s2 + $0x40] ss:$24 sps:$4 sm:$0xff]   ;;  %v8850_v20 = vld [vmem:[%s12304_s2 + $0x74] ss:$24 sps:$4 sm:$0xff]   ;;  %v8848_v21 = vld [vmem:[%s12304_s2 + $0x70] ss:$24 sps:$4 sm:$0xff]  }
  0xb3   :  { %v8853_v22 = vld [vmem:[%s12304_s2 + $0xa4] ss:$24 sps:$4 sm:$0xff]   ;;  %v8851_v23 = vld [vmem:[%s12304_s2 + $0xa0] ss:$24 sps:$4 sm:$0xff]   ;;  %v8856_v24 = vld [vmem:[%s12304_s2 + $0xd4] ss:$24 sps:$4 sm:$0xff]  }
  0xb4   :  { %768 = vmatpush1.bf16.msra.mxu0 %v8818_v0  ;;  %v8854_v25 = vld [vmem:[%s12304_s2 + $0xd0] ss:$24 sps:$4 sm:$0xff]   ;;  %v8859_v26 = vld [vmem:[%s12304_s2 + $0x104] ss:$24 sps:$4 sm:$0xff]   ;;  %v8857_v27 = vld [vmem:[%s12304_s2 + $0x100] ss:$24 sps:$4 sm:$0xff]  }
  0xb5   :  { %769 = vmatprep.subr.bf16.mxu0 %v8823_v1  ;;  %v8862_v28 = vld [vmem:[%s12304_s2 + $0x134] ss:$24 sps:$4 sm:$0xff]   ;;  %v8860_v29 = vld [vmem:[%s12304_s2 + $0x130] ss:$24 sps:$4 sm:$0xff]   ;;  %v8865_v30 = vld [vmem:[%s12304_s2 + $0x164] ss:$24 sps:$4 sm:$0xff]  }
  0xb6   :  { %v8863_v31 = vld [vmem:[%s12304_s2 + $0x160] ss:$24 sps:$4 sm:$0xff]   ;;  %v8868_v32 = vld [vmem:[%s12304_s2 + $0x194] ss:$24 sps:$4 sm:$0xff]   ;;  %v8866_v33 = vld [vmem:[%s12304_s2 + $0x190] ss:$24 sps:$4 sm:$0xff]  }
  0xb7   :  { %v8871_v34 = vld [vmem:[%s12304_s2 + $0x1c4] ss:$24 sps:$4 sm:$0xff]   ;;  %v8869_v35 = vld [vmem:[%s12304_s2 + $0x1c0] ss:$24 sps:$4 sm:$0xff]   ;;  %v8874_v36 = vld [vmem:[%s12304_s2 + $0x1f4] ss:$24 sps:$4 sm:$0xff]  }
  0xb8   :  { %770 = vmatpush1.bf16.msra.mxu0 %v8821_v2  ;;  %v8872_v37 = vld [vmem:[%s12304_s2 + $0x1f0] ss:$24 sps:$4 sm:$0xff]   ;;  %v8877_v38 = vld [vmem:[%s12304_s2 + $0x224] ss:$24 sps:$4 sm:$0xff]   ;;  %v8875_v39 = vld [vmem:[%s12304_s2 + $0x220] ss:$24 sps:$4 sm:$0xff]  }
  0xb9   :  { %771 = vmatprep.subr.bf16.mxu0 %v8826_v3  ;;  %v8880_v40 = vld [vmem:[%s12304_s2 + $0x254] ss:$24 sps:$4 sm:$0xff]   ;;  %v8878_v41 = vld [vmem:[%s12304_s2 + $0x250] ss:$24 sps:$4 sm:$0xff]   ;;  %v8883_v46 = vld [vmem:[%s12304_s2 + $0x284] ss:$24 sps:$4 sm:$0xff]  }
  0xba   :  { %v8881_v47 = vld [vmem:[%s12304_s2 + $0x280] ss:$24 sps:$4 sm:$0xff]   ;;  %v8884_v50 = vld [vmem:[%s12304_s2 + $0x2b0] ss:$24 sps:$4 sm:$0xff]   ;;  %v9438_v1 = vmov 0.0   ;;  %v9917_v2 = vsub.s32 2, %v9899_v55 }
  0xbb   :  { %v8887_v51 = vld [vmem:[%s12304_s2 + $0x2e4] ss:$24 sps:$4 sm:$0x1f]   ;;  %v8889_v52 = vld [vmem:[%s12304_s2 + $0x2e0] ss:$24 sps:$4 sm:$0x1f]   ;;  %8409 = vmatprep.subr.bf16.mxu1 %v9438_v1  ;;  %8411 = vmatprep.mubr.msk.bf16.mxu1 %vm9439_vm2, %v9438_v1 }
  0xbc   :  { %772 = vmatpush1.bf16.msra.mxu0 %v8824_v4  ;;  %v703_v53 = vsel %vm689_vm0, %v8889_v52, 0  ;;  %v9907_v57 = vld [vmem:[%s12305_s3] sm:$0x3f]  ;;  %v9926_v4 = vsub.s32 0, %v9899_v55  ;;  %s9440_s26 = smov 109   ;;  %s9441_s27 = smov 103  }
  0xbd   :  { %773 = vmatprep.subr.bf16.mxu0 %v8829_v5  ;;  %v188_v58 = vrot.slane %v9907_v57, %v9902_v56  ;;  %v192_v3 = vrot.slane %v9907_v57, %v9917_v2  ;;  %vm849_vm3 = vcmask 48128   ;;  %vm851_vm4 = vcmask 203776   ;;  %s9443_s28 = smov 12   ;;  %s9444_s29 = smov 115  }
  0xbe   :  { %vm951_vm6 = vcmask 64512   ;;  %vm991_vm7 = vcmask 1043456   ;;  %vm986_vm8 = vcmask 97280   ;;  %s9445_s30 = smov 84   ;;  %s9446_s0 = smov 78   ;;  %vm1980_vm9 = vcmask 72704  }
  0xbf   :  { %s9447_s15 = smov 90   ;;  %s9448_s17 = smov 59   ;;  %vm1974_vm10 = vcmask 23552   ;;  %vm2115_vm11 = vcmask 121856   ;;  %vm3169_vm12 = vcmask 408576   ;;  %vm3172_vm13 = vcmask 613376  }
  0xc0   :  { %774 = vmatpush1.bf16.msra.mxu0 %v8827_v6  ;;  %s9449_s18 = smov 53   ;;  %s9450_s19 = smov 65   ;;  %vm3175_vm14 = vcmask 818176   ;;  %vm3178_vm15 = vcmask 1022976  }
  0xc1   :  { %775 = vmatprep.subr.bf16.mxu0 %v8832_v7  ;;  %s9451_s20 = smov 34   ;;  %s9452_s21 = smov 28  }
  0xc2   :  { %s9453_s1 = smov 40   ;;  %s9454_s22 = smov 9  }
  0xc3   :  { %s9455_s23 = smov 3   ;;  %s9473_s24 = smov 100  }
  0xc4   :  { %776 = vmatpush1.bf16.msra.mxu0 %v8830_v8  ;;  %s9474_s25 = smov 22  }
  0xc5   :  { %777 = vmatprep.subr.bf16.mxu0 %v8835_v9  ;;  %v184_v9 = vrot.slane %v9907_v57, %v9926_v4 }
  0xc8   :  { %778 = vmatpush1.bf16.msra.mxu0 %v8833_v10 }
  0xc9   :  { %779 = vmatprep.subr.bf16.mxu0 %v8838_v11 }
  0xcc   :  { %780 = vmatpush1.bf16.msra.mxu0 %v8836_v12 }
  0xcd   :  { %7698 = vmatprep.subr.msk.bf16.mxu0 %vm689_vm0, %v8839_v13 }
  0xd0   :  { %782 = vmatpush1.bf16.msra.mxu0 %v697_v15 }
  0xd1   :  { %794 = vmatprep.subr.bf16.mxu0 %v8844_v16 }
  0xd3   :  { %784 = vmatmul.mubr.bf16.vlgmr.msra.gmra.mrb[4].mxu0 %v9700_v49 }
  0xd4   :  { %795 = vmatpush1.bf16.msra.mxu0 %v8842_v17  ;;  %7701 = vmatprep.mubr.msk.bf16.mxu0 %vm685_vm1, %v9696_v48  ;;  %v8886_v48 = vld [vmem:[%s12304_s2 + $0x2b4] ss:$24 sps:$4 sm:$0xff]   ;;  %s9437_s2 = smov 6  }
  0xd5   :  { %796 = vmatprep.subr.bf16.mxu0 %v8847_v18 }
  0xd8   :  { %797 = vmatpush1.bf16.msra.mxu0 %v8845_v19 }
  0xd9   :  { %798 = vmatprep.subr.bf16.mxu0 %v8850_v20 }
  0xdc   :  { %799 = vmatpush1.bf16.msra.mxu0 %v8848_v21 }
  0xdd   :  { %800 = vmatprep.subr.bf16.mxu0 %v8853_v22 }
  0xe0   :  { %801 = vmatpush1.bf16.msra.mxu0 %v8851_v23 }
  0xe1   :  { %802 = vmatprep.subr.bf16.mxu0 %v8856_v24 }
  0xe4   :  { %803 = vmatpush1.bf16.msra.mxu0 %v8854_v25 }
  0xe5   :  { %804 = vmatprep.subr.bf16.mxu0 %v8859_v26 }
  0xe8   :  { %805 = vmatpush1.bf16.msra.mxu0 %v8857_v27 }
  0xe9   :  { %806 = vmatprep.subr.bf16.mxu0 %v8862_v28 }
  0xec   :  { %807 = vmatpush1.bf16.msra.mxu0 %v8860_v29 }
  0xed   :  { %808 = vmatprep.subr.bf16.mxu0 %v8865_v30 }
  0xf0   :  { %809 = vmatpush1.bf16.msra.mxu0 %v8863_v31 }
  0xf1   :  { %810 = vmatprep.subr.bf16.mxu0 %v8868_v32 }
  0xf4   :  { %811 = vmatpush1.bf16.msra.mxu0 %v8866_v33 }
  0xf5   :  { %812 = vmatprep.subr.bf16.mxu0 %v8871_v34 }
  0xf8   :  { %813 = vmatpush1.bf16.msra.mxu0 %v8869_v35 }
  0xf9   :  { %814 = vmatprep.subr.bf16.mxu0 %v8874_v36 }
  0xfc   :  { %815 = vmatpush1.bf16.msra.mxu0 %v8872_v37  ;;  %v9982_v37 = vand.u32 127, %v75_v54 }
  0xfd   :  { %816 = vmatprep.subr.bf16.mxu0 %v8877_v38  ;;  %v9442_v38 = vmov -inf  }
  0xfe   :  { %vm79_vm5 = vcmp.le.s32.totalorder %v9982_v37, %v9899_v55 }
 0x100   :  { %817 = vmatpush1.bf16.msra.mxu0 %v8875_v39  ;;  %v9986_v39 = vsel %vm79_vm5, 0.0, %v9442_v38  ;;  %vm3190_vm5 = vcmask 793600  }
 0x101   :  { %818 = vmatprep.subr.bf16.mxu0 %v8880_v40 }
 0x104   :  { %819 = vmatpush1.bf16.msra.mxu0 %v8878_v41 }
 0x105   :  { %820 = vmatprep.subr.bf16.mxu0 %v8883_v46 }
 0x108   :  { %821 = vmatpush1.bf16.msra.mxu0 %v8881_v47 }
 0x109   :  { %822 = vmatprep.subr.bf16.mxu0 %v8886_v48 }
 0x10c   :  { %823 = vmatpush1.bf16.msra.mxu0 %v8884_v50 }
 0x10d   :  { %7700 = vmatprep.subr.msk.bf16.mxu0 %vm689_vm0, %v8887_v51 }
 0x110   :  { %825 = vmatpush1.bf16.msra.mxu0 %v703_v53 }
 0x111   :  { %8385 = vmatprep.subr.bf16.mxu0 %v9438_v1 }
 0x113   :  { %827 = vmatmul.mubr.bf16.vlgmr.msra.gmra.mrb[8].mxu0 %v9700_v49 }
 0x114   :  { %8387 = vmatprep.mubr.msk.bf16.mxu0 %vm9439_vm2, %v9438_v1 }
 0x166   :  { %v742_v59 = vpop.f32.mrb[0].mxu0 }
 0x167   :  { %v744_v60 = vpop.f32.mrb[1].mxu0  ;;  %v743_v13 = vadd.f32 %v742_v59, %v184_v9 }
 0x168   :  { %v745_v61 = vadd.f32 %v744_v60, %v188_v58  ;;  %v746_v62 = vpop.f32.mrb[2].mxu0  ;;  %v9993_v60 = vsub.s32 3, %v9899_v55 }
 0x169   :  { %v748_v49 = vpop.f32.mrb[3].mxu0  ;;  %v9944_v16 = vpack.c.bf16 %v743_v13, %v743_v13  ;;  %v747_v17 = vadd.f32 %v746_v62, %v184_v9 }
 0x16a   :  { %v9911_v63 = vpack.c.bf16 %v745_v61, %v745_v61  ;;  %v749_v0 = vadd.f32 %v748_v49, %v188_v58 }
 0x16b   :  { %v9948_v18 = vpack.c.bf16 %v747_v17, %v747_v17 }
 0x16c   :  { %845 = vrot.lane.b32.xlu1 %v9911_v63, %s9437_s2  ;;  %v9938_v14 = vpack.c.bf16 %v749_v0, %v749_v0 }
 0x1a6   :  { %v785_v5 = vpop.f32.mrb[4].mxu0 }
 0x1a7   :  { %v786_v6 = vadd.f32 %v785_v5, %v192_v3  ;;  %v9928_v7 = vpop.f32.mrb[5].mxu0 }
 0x1a8   :  { %v789_v8 = vpop.f32.mrb[6].mxu0 }
 0x1a9   :  { %v9932_v10 = vpack.c.bf16 %v786_v6, %v786_v6  ;;  %v790_v11 = vadd.f32 %v789_v8, %v192_v3  ;;  %v9934_v12 = vpop.f32.mrb[7].mxu0  ;;  %v196_v6 = vrot.slane %v9907_v57, %v9993_v60  ;;  %v10001_v8 = vsub.s32 4, %v9899_v55 }
 0x1ab   :  { %1091 = vrot.lane.b32.xlu0 %v9932_v10, %s9440_s26  ;;  %847 = vrot.lane.b32.xlu1 %v9932_v10, %s9437_s2  ;;  %v9940_v15 = vpack.c.bf16 %v790_v11, %v790_v11 }
 0x1af   :  { %902 = vrot.lane.b32.xlu0 %v9940_v15, %s9437_s2  ;;  %900 = vrot.lane.b32.xlu1 %v9938_v14, %s9437_s2  ;;  %s9456_s2 = smov 15  }
 0x1b3   :  { %1142 = vrot.lane.b32.xlu0 %v9940_v15, %s9440_s26  ;;  %1089 = vrot.lane.b32.xlu1 %v9944_v16, %s9441_s27  ;;  %s9458_s26 = smov 106  }
 0x1b7   :  { %1140 = vrot.lane.b32.xlu1 %v9948_v18, %s9441_s27  ;;  %s9459_s27 = smov 118  }
 0x1de   :  { %v846_v23 = vpop.permute.xlu1 %845 }
 0x1e6   :  { %v9951_v19 = vpop.f32.mrb[8].mxu0 }
 0x1e7   :  { %v9953_v20 = vpop.f32.mrb[9].mxu0 }
 0x1e8   :  { %v9955_v21 = vpop.f32.mrb[10].mxu0 }
 0x1e9   :  { %v9957_v22 = vpop.f32.mrb[11].mxu0 }
 0x21d   :  { %v1092_v24 = vpop.permute.xlu0 %1091  ;;  %v848_v25 = vpop.permute.xlu1 %847 }
 0x21e   :  { %v850_v26 = vsel %vm849_vm3, %v846_v23, %v848_v25  ;;  %v1097_v27 = vsel %vm851_vm4, %v1092_v24, 0  ;;  %v788_v24 = vadd.f32 %v9928_v7, %v196_v6  ;;  %v200_v25 = vrot.slane %v9907_v57, %v10001_v8 }
 0x21f   :  { %v856_v28 = vsel %vm851_vm4, %v850_v26, 0  ;;  %8410 = vmatpush3.bf16.xpose.msra.mxu1 %v1097_v27 }
 0x220   :  { %8386 = vmatpush3.bf16.xpose.msra.mxu0 %v856_v28  ;;  %8415 = vmatprep.subr.bf16.mxu1 %v9438_v1  ;;  %v10010_v27 = vpack.c.bf16 %v788_v24, %v788_v24  ;;  %v829_v28 = vadd.f32 %v9951_v19, %v200_v25  ;;  %v833_v57 = vadd.f32 %v9955_v21, %v200_v25 }
 0x221   :  { %v903_v29 = vpop.permute.xlu0 %902  ;;  %v901_v30 = vpop.permute.xlu1 %900  ;;  %8391 = vmatprep.subr.bf16.mxu0 %v9438_v1 }
 0x222   :  { %v904_v31 = vsel %vm849_vm3, %v901_v30, %v903_v29  ;;  %v792_v29 = vadd.f32 %v9934_v12, %v196_v6  ;;  %v10016_v30 = vpack.c.bf16 %v829_v28, %v829_v28  ;;  %vm3184_vm3 = vcmask 384000  }
 0x223   :  { %v909_v35 = vsel %vm851_vm4, %v904_v31, 0  ;;  %v10024_v31 = vpack.c.bf16 %v833_v57, %v833_v57 }
 0x224   :  { %v10019_v7 = vpack.c.bf16 %v792_v29, %v792_v29 }
 0x225   :  { %v1143_v32 = vpop.permute.xlu0 %1142  ;;  %v1090_v33 = vpop.permute.xlu1 %1089 }
 0x226   :  { %v1148_v34 = vsel %vm851_vm4, %v1143_v32, 0  ;;  %8412 = vmatmul.mubr.msk.bf16.vlgmr.msra.gmra.mrb[0].mxu1 %vm851_vm4, %v1090_v33 }
 0x227   :  { %8388 = vmatmul.mubr.msk.bf16.vlgmr.msra.gmra.mrb[12].mxu0 %vm851_vm4, %v9944_v16  ;;  %8416 = vmatpush3.bf16.xpose.msra.mxu1 %v1148_v34 }
 0x228   :  { %8392 = vmatpush3.bf16.xpose.msra.mxu0 %v909_v35  ;;  %8417 = vmatprep.mubr.msk.bf16.mxu1 %vm9439_vm2, %v9438_v1 }
 0x229   :  { %8393 = vmatprep.mubr.msk.bf16.mxu0 %vm9439_vm2, %v9438_v1  ;;  %8421 = vmatprep.subr.bf16.mxu1 %v9438_v1  ;;  %v1141_v36 = vpop.permute.xlu1 %1140 }
 0x22a   :  { %8397 = vmatprep.subr.bf16.mxu0 %v9438_v1 }
 0x22e   :  { %8418 = vmatmul.mubr.msk.bf16.vlgmr.msra.gmra.mrb[4].mxu1 %vm851_vm4, %v1141_v36 }
 0x22f   :  { %8394 = vmatmul.mubr.msk.bf16.vlgmr.msra.gmra.mrb[16].mxu0 %vm851_vm4, %v9948_v18  ;;  %8423 = vmatprep.mubr.msk.bf16.mxu1 %vm9439_vm2, %v9438_v1 }
 0x230   :  { %8399 = vmatprep.mubr.msk.bf16.mxu0 %vm9439_vm2, %v9438_v1 }
 0x2f9   :  { %v1133_v40 = vpop.f32.mrb[0].mxu1 }
 0x2fa   :  { %v1134_v41 = vadd.f32 %v1133_v40, %v9986_v39  ;;  %v892_v46 = vpop.f32.mrb[12].mxu0  ;;  %v8413_v47 = vpop.f32.mrb[1].mxu1 }
 0x2fb   :  { %v893_v48 = vadd.f32 %v892_v46, %v9986_v39  ;;  %v8389_v50 = vpop.f32.mrb[13].mxu0  ;;  %v1136_v51 = vpop.f32.mrb[2].mxu1 }
 0x2fc   :  { %v895_v52 = vpop.f32.mrb[14].mxu0  ;;  %v8414_v53 = vpop.f32.mrb[3].mxu1  ;;  %v1190_v54 = vsel %vm951_vm6, %v1134_v41, -inf }
 0x2fd   :  { %1191 = vmax.xlane.f32.xlu1 %v1190_v54  ;;  %v8390_v58 = vpop.f32.mrb[15].mxu0  ;;  %v952_v59 = vsel %vm951_vm6, %v893_v48, -inf }
 0x2fe   :  { %953 = vmax.xlane.f32.xlu0 %v952_v59 }
 0x301   :  { %v1184_v61 = vpop.f32.mrb[4].mxu1 }
 0x302   :  { %v9996_v62 = vadd.f32 %v1184_v61, %v9986_v39  ;;  %v945_v49 = vpop.f32.mrb[16].mxu0  ;;  %v8419_v0 = vpop.f32.mrb[5].mxu1 }
 0x303   :  { %v8395_v3 = vpop.f32.mrb[17].mxu0  ;;  %v1187_v5 = vpop.f32.mrb[6].mxu1  ;;  %v946_v9 = vadd.f32 %v945_v49, %v9986_v39 }
 0x304   :  { %v948_v11 = vpop.f32.mrb[18].mxu0  ;;  %v8420_v13 = vpop.f32.mrb[7].mxu1  ;;  %v1193_v17 = vsel %vm951_vm6, %v9996_v62, -inf }
 0x305   :  { %1194 = vmax.xlane.f32.xlu0 %v1193_v17  ;;  %v8396_v23 = vpop.f32.mrb[19].mxu0  ;;  %v955_v26 = vsel %vm951_vm6, %v946_v9, -inf }
 0x309   :  { %956 = vmax.xlane.f32.xlu0 %v955_v26 }
 0x30e   :  { %982 = vrot.lane.b32.xlu1 %v10010_v27, %s9443_s28 }
 0x312   :  { %1214 = vrot.lane.b32.xlu1 %v10016_v30, %s9444_s29 }
 0x316   :  { %1037 = vrot.lane.b32.xlu1 %v10019_v7, %s9443_s28 }
 0x31a   :  { %1262 = vrot.lane.b32.xlu1 %v10024_v31, %s9444_s29  ;;  %s9461_s29 = smov 81  }
 0x31f   :  { %984 = vrot.lane.b32.xlu0 %v10016_v30, %s9443_s28 }
 0x38a   :  { %v1192_v12 = vpop.xlane.xlu1 %1191 }
 0x38b   :  { %v1196_v19 = vsub.f32 %v1134_v41, %v1192_v12  ;;  %v954_v32 = vpop.xlane.xlu0 %953 }
 0x38c   :  { %v958_v33 = vsub.f32 %v893_v48, %v954_v32 }
 0x38d   :  { %v1198_v34 = vmul.f32 1.442695, %v1196_v19 }
 0x38e   :  { %v960_v35 = vmul.f32 1.442695, %v958_v33  ;;  %v983_v36 = vpop.permute.xlu1 %982 }
 0x38f   :  { %9322 = vpow2.f32 %v1198_v34 }
 0x390   :  { %9324 = vpow2.f32 %v960_v35 }
 0x392   :  { %v1215_v21 = vpop.permute.xlu1 %1214  ;;  %v1195_v38 = vpop.xlane.xlu0 %1194 }
 0x393   :  { %v1220_v40 = vsel %vm991_vm7, %v1215_v21, 0  ;;  %v1197_v49 = vsub.f32 %v9996_v62, %v1195_v38 }
 0x394   :  { %8422 = vmatpush3.bf16.msra.mxu1 %v1220_v40 }
 0x395   :  { %8427 = vmatprep.subr.bf16.mxu1 %v9438_v1  ;;  %v1200_v0 = vmul.f32 1.442695, %v1197_v49 }
 0x396   :  { %v957_v46 = vpop.xlane.xlu0 %956  ;;  %v1038_v6 = vpop.permute.xlu1 %1037 }
 0x397   :  { %v959_v47 = vsub.f32 %v946_v9, %v957_v46 }
 0x399   :  { %v9323_v50 = vpop.eup %9322  ;;  %v962_v41 = vmul.f32 1.442695, %v959_v47 }
 0x39a   :  { %v9325_v51 = vpop.eup %9324  ;;  %v985_v48 = vpop.permute.xlu0 %984  ;;  %v1202_v52 = vsel %vm951_vm6, %v9323_v50, 0.0 }
 0x39b   :  { %9326 = vpow2.f32 %v962_v41  ;;  %v987_v53 = vsel %vm986_vm8, %v983_v36, %v985_v48  ;;  %1203 = vadd.xlane.f32.xlu0 %v1202_v52  ;;  %v964_v54 = vsel %vm951_vm6, %v9325_v51, 0.0  ;;  %v1263_v9 = vpop.permute.xlu1 %1262 }
 0x39c   :  { %v993_v58 = vsel %vm991_vm7, %v987_v53, 0  ;;  %965 = vadd.xlane.f32.xlu1 %v964_v54  ;;  %9328 = vpow2.f32 %v1200_v0  ;;  %v1268_v12 = vsel %vm991_vm7, %v1263_v9, 0 }
 0x39d   :  { %8398 = vmatpush3.bf16.msra.mxu0 %v993_v58 }
 0x39e   :  { %8403 = vmatprep.subr.bf16.mxu0 %v9438_v1 }
 0x3a5   :  { %v9327_v59 = vpop.eup %9326 }
 0x3a6   :  { %v967_v61 = vsel %vm951_vm6, %v9327_v59, 0.0  ;;  %v9329_v3 = vpop.eup %9328 }
 0x3a7   :  { %968 = vadd.xlane.f32.xlu1 %v967_v61  ;;  %v1205_v5 = vsel %vm951_vm6, %v9329_v3, 0.0 }
 0x3b1   :  { %1039 = vrot.lane.b32.xlu0 %v10024_v31, %s9443_s28  ;;  %s9460_s28 = smov 87  }
 0x3b8   :  { %1362 = vrot.lane.b32.xlu1 %v9940_v15, %s9445_s30 }
 0x3bc   :  { %1360 = vrot.lane.b32.xlu1 %v9948_v18, %s9446_s0 }
 0x3d0   :  { %1206 = vadd.xlane.f32.xlu0 %v1205_v5 }
 0x3e6   :  { %1312 = vrot.lane.b32.xlu0 %v9932_v10, %s9445_s30  ;;  %s9462_s30 = smov 93  }
 0x3ea   :  { %1310 = vrot.lane.b32.xlu0 %v9944_v16, %s9446_s0  ;;  %s9463_s0 = smov 62  }
 0x428   :  { %v1204_v11 = vpop.xlane.xlu0 %1203 }
 0x429   :  { %9330 = vrcp.f32 %v1204_v11  ;;  %v966_v13 = vpop.xlane.xlu1 %965 }
 0x42a   :  { %9332 = vrcp.f32 %v966_v13 }
 0x42c   :  { %v1040_v17 = vpop.permute.xlu0 %1039 }
 0x42d   :  { %v1041_v28 = vsel %vm986_vm8, %v1038_v6, %v1040_v17 }
 0x42e   :  { %v1046_v19 = vsel %vm991_vm7, %v1041_v28, 0 }
 0x433   :  { %v9331_v62 = vpop.eup %9330 }
 0x434   :  { %v9333_v23 = vpop.eup %9332  ;;  %v969_v24 = vpop.xlane.xlu1 %968  ;;  %v1210_v25 = vmul.f32 %v9331_v62, %v9323_v50 }
 0x435   :  { %9334 = vrcp.f32 %v969_v24  ;;  %v972_v26 = vmul.f32 %v9333_v23, %v9325_v51 }
 0x436   :  { %v1212_v29 = vpack.c.bf16 %v1210_v25, %v1210_v25 }
 0x437   :  { %v974_v57 = vpack.c.bf16 %v972_v26, %v972_v26 }
 0x438   :  { %8424 = vmatmul.mubr.msk.bf16.vlgmr.msra.gmra.mrb[8].mxu1 %vm951_vm6, %v1212_v29  ;;  %v1363_v47 = vpop.permute.xlu1 %1362 }
 0x439   :  { %8428 = vmatpush3.bf16.msra.mxu1 %v1268_v12  ;;  %8400 = vmatmul.mubr.msk.bf16.vlgmr.msra.gmra.mrb[20].mxu0 %vm951_vm6, %v974_v57  ;;  %v1368_v41 = vsel %vm851_vm4, %v1363_v47, 0 }
 0x43a   :  { %8404 = vmatpush3.bf16.msra.mxu0 %v1046_v19  ;;  %8405 = vmatprep.mubr.msk.bf16.mxu0 %vm9439_vm2, %v9438_v1 }
 0x43b   :  { %8433 = vmatprep.subr.bf16.mxu0 %v9438_v1  ;;  %8429 = vmatprep.mubr.msk.bf16.mxu1 %vm9439_vm2, %v9438_v1 }
 0x43c   :  { %8439 = vmatprep.subr.bf16.mxu1 %v9438_v1  ;;  %v1361_v51 = vpop.permute.xlu1 %1360 }
 0x43f   :  { %v9335_v32 = vpop.eup %9334 }
 0x440   :  { %v973_v33 = vmul.f32 %v9335_v32, %v9327_v59 }
 0x442   :  { %v975_v34 = vpack.c.bf16 %v973_v33, %v973_v33 }
 0x444   :  { %8406 = vmatmul.mubr.msk.bf16.vlgmr.msra.gmra.mrb[24].mxu0 %vm951_vm6, %v975_v34 }
 0x445   :  { %8435 = vmatprep.mubr.msk.bf16.mxu0 %vm9439_vm2, %v9438_v1 }
 0x45d   :  { %v1207_v35 = vpop.xlane.xlu0 %1206 }
 0x45e   :  { %9336 = vrcp.f32 %v1207_v35 }
 0x461   :  { %v1313_v36 = vpop.permute.xlu0 %1312 }
 0x462   :  { %v1318_v21 = vsel %vm851_vm4, %v1313_v36, 0 }
 0x463   :  { %8434 = vmatpush3.bf16.xpose.msra.mxu0 %v1318_v21 }
 0x464   :  { %8445 = vmatprep.subr.bf16.mxu0 %v9438_v1 }
 0x465   :  { %v1311_v40 = vpop.permute.xlu0 %1310 }
 0x468   :  { %v9337_v38 = vpop.eup %9336 }
 0x469   :  { %v1211_v46 = vmul.f32 %v9337_v38, %v9329_v3 }
 0x46a   :  { %8436 = vmatmul.mubr.msk.bf16.vlgmr.msra.gmra.mrb[28].mxu0 %vm851_vm4, %v1311_v40 }
 0x46b   :  { %v1213_v50 = vpack.c.bf16 %v1211_v46, %v1211_v46  ;;  %8447 = vmatprep.mubr.msk.bf16.mxu0 %vm9439_vm2, %v9438_v1 }
 0x46d   :  { %8430 = vmatmul.mubr.msk.bf16.vlgmr.msra.gmra.mrb[12].mxu1 %vm951_vm6, %v1213_v50 }
 0x46e   :  { %8440 = vmatpush3.bf16.xpose.msra.mxu1 %v1368_v41  ;;  %8441 = vmatprep.mubr.msk.bf16.mxu1 %vm9439_vm2, %v9438_v1 }
 0x46f   :  { %8451 = vmatprep.subr.bf16.mxu1 %v9438_v1 }
 0x475   :  { %8442 = vmatmul.mubr.msk.bf16.vlgmr.msra.gmra.mrb[16].mxu1 %vm851_vm4, %v1361_v51 }
 0x476   :  { %8453 = vmatprep.mubr.msk.bf16.mxu1 %vm9439_vm2, %v9438_v1 }
 0x50b   :  { %v10072_v48 = vpop.f32.mrb[8].mxu1 }
 0x50c   :  { %v10074_v52 = vpop.f32.mrb[20].mxu0  ;;  %v8425_v53 = vpop.f32.mrb[9].mxu1 }
 0x50d   :  { %v8401_v54 = vpop.f32.mrb[21].mxu0  ;;  %v1259_v58 = vpop.f32.mrb[10].mxu1 }
 0x50e   :  { %v1032_v59 = vpop.f32.mrb[22].mxu0  ;;  %v8426_v61 = vpop.f32.mrb[11].mxu1 }
 0x50f   :  { %v8402_v49 = vpop.f32.mrb[23].mxu0 }
 0x517   :  { %v10076_v0 = vpop.f32.mrb[24].mxu0 }
 0x518   :  { %v8407_v3 = vpop.f32.mrb[25].mxu0 }
 0x519   :  { %v1085_v5 = vpop.f32.mrb[26].mxu0 }
 0x51a   :  { %v8408_v6 = vpop.f32.mrb[27].mxu0 }
 0x53d   :  { %v1354_v9 = vpop.f32.mrb[28].mxu0 }
 0x53e   :  { %v1355_v11 = vadd.f32 %v1354_v9, %v9986_v39  ;;  %v8437_v13 = vpop.f32.mrb[29].mxu0 }
 0x53f   :  { %v1357_v62 = vpop.f32.mrb[30].mxu0 }
 0x540   :  { %v10079_v17 = vpop.f32.mrb[12].mxu1  ;;  %v8438_v23 = vpop.f32.mrb[31].mxu0  ;;  %v1410_v24 = vsel %vm951_vm6, %v1355_v11, -inf }
 0x541   :  { %v8701_v25 = vpack.i.bf16 %v10079_v17, %v10072_v48  ;;  %v8431_v26 = vpop.f32.mrb[13].mxu1  ;;  %1411 = vmax.xlane.f32.xlu0 %v1410_v24 }
 0x542   :  { %v1307_v28 = vpop.f32.mrb[14].mxu1 }
 0x543   :  { %v8432_v29 = vpop.f32.mrb[15].mxu1 }
 0x548   :  { %v1404_v57 = vpop.f32.mrb[16].mxu1 }
 0x549   :  { %v1405_v12 = vadd.f32 %v1404_v57, %v9986_v39  ;;  %v8443_v19 = vpop.f32.mrb[17].mxu1 }
 0x54a   :  { %v1407_v32 = vpop.f32.mrb[18].mxu1 }
 0x54b   :  { %v8444_v33 = vpop.f32.mrb[19].mxu1  ;;  %v1413_v34 = vsel %vm951_vm6, %v1405_v12, -inf }
 0x54c   :  { %1414 = vmax.xlane.f32.xlu1 %v1413_v34 }
 0x55d   :  { %1434 = vrot.lane.b32.xlu1 %v10016_v30, %s9447_s15 }
 0x561   :  { %1532 = vrot.lane.b32.xlu1 %v9932_v10, %s9448_s17 }
 0x565   :  { %1582 = vrot.lane.b32.xlu1 %v9940_v15, %s9448_s17  ;;  %s9465_s17 = smov 68  }
 0x569   :  { %1580 = vrot.lane.b32.xlu1 %v9948_v18, %s9449_s18 }
 0x5ce   :  { %v1412_v35 = vpop.xlane.xlu0 %1411 }
 0x5cf   :  { %v1416_v36 = vsub.f32 %v1355_v11, %v1412_v35 }
 0x5d1   :  { %v1418_v40 = vmul.f32 1.442695, %v1416_v36 }
 0x5d9   :  { %v1415_v21 = vpop.xlane.xlu1 %1414 }
 0x5da   :  { %v1417_v38 = vsub.f32 %v1405_v12, %v1415_v21 }
 0x5dc   :  { %v1420_v46 = vmul.f32 1.442695, %v1417_v38 }
 0x5dd   :  { %v1435_v47 = vpop.permute.xlu1 %1434 }
 0x5de   :  { %9338 = vpow2.f32 %v1420_v46  ;;  %v1440_v50 = vsel %vm991_vm7, %v1435_v47, 0 }
 0x5df   :  { %8446 = vmatpush3.bf16.msra.mxu0 %v1440_v50  ;;  %9340 = vpow2.f32 %v1418_v40 }
 0x5e0   :  { %8457 = vmatprep.subr.bf16.mxu0 %v9438_v1 }
 0x5e1   :  { %v1533_v49 = vpop.permute.xlu1 %1532 }
 0x5e2   :  { %v1538_v26 = vsel %vm851_vm4, %v1533_v49, 0 }
 0x5e5   :  { %v1583_v13 = vpop.permute.xlu1 %1582 }
 0x5e6   :  { %v1588_v23 = vsel %vm851_vm4, %v1583_v13, 0 }
 0x5e8   :  { %v9339_v41 = vpop.eup %9338 }
 0x5e9   :  { %v1425_v51 = vsel %vm951_vm6, %v9339_v41, 0.0  ;;  %v9341_v53 = vpop.eup %9340  ;;  %v1581_v28 = vpop.permute.xlu1 %1580 }
 0x5ea   :  { %1426 = vadd.xlane.f32.xlu0 %v1425_v51  ;;  %v1422_v54 = vsel %vm951_vm6, %v9341_v53, 0.0 }
 0x5ee   :  { %1423 = vadd.xlane.f32.xlu0 %v1422_v54 }
 0x604   :  { %1482 = vrot.lane.b32.xlu0 %v10024_v31, %s9447_s15  ;;  %s9464_s15 = smov 56  }
 0x608   :  { %1530 = vrot.lane.b32.xlu0 %v9944_v16, %s9449_s18  ;;  %s9466_s18 = smov 37  }
 0x677   :  { %v1427_v58 = vpop.xlane.xlu0 %1426 }
 0x678   :  { %9342 = vrcp.f32 %v1427_v58 }
 0x67b   :  { %v1424_v59 = vpop.xlane.xlu0 %1423 }
 0x67c   :  { %9344 = vrcp.f32 %v1424_v59 }
 0x67f   :  { %v1483_v61 = vpop.permute.xlu0 %1482 }
 0x680   :  { %v1488_v3 = vsel %vm991_vm7, %v1483_v61, 0 }
 0x681   :  { %8452 = vmatpush3.bf16.msra.mxu1 %v1488_v3 }
 0x682   :  { %v9343_v5 = vpop.eup %9342  ;;  %8463 = vmatprep.subr.bf16.mxu1 %v9438_v1 }
 0x683   :  { %v1431_v6 = vmul.f32 %v9343_v5, %v9339_v41  ;;  %v1531_v29 = vpop.permute.xlu0 %1530 }
 0x685   :  { %v1433_v9 = vpack.c.bf16 %v1431_v6, %v1431_v6 }
 0x686   :  { %v9345_v11 = vpop.eup %9344 }
 0x687   :  { %8454 = vmatmul.mubr.msk.bf16.vlgmr.msra.gmra.mrb[20].mxu1 %vm951_vm6, %v1433_v9  ;;  %v1430_v62 = vmul.f32 %v9345_v11, %v9341_v53 }
 0x688   :  { %8465 = vmatprep.mubr.msk.bf16.mxu1 %vm9439_vm2, %v9438_v1 }
 0x689   :  { %v1432_v24 = vpack.c.bf16 %v1430_v62, %v1430_v62 }
 0x68a   :  { %8464 = vmatpush3.bf16.xpose.msra.mxu1 %v1588_v23 }
 0x68b   :  { %8448 = vmatmul.mubr.msk.bf16.vlgmr.msra.gmra.mrb[32].mxu0 %vm951_vm6, %v1432_v24  ;;  %8475 = vmatprep.subr.bf16.mxu1 %v9438_v1 }
 0x68c   :  { %8458 = vmatpush3.bf16.xpose.msra.mxu0 %v1538_v26  ;;  %8459 = vmatprep.mubr.msk.bf16.mxu0 %vm9439_vm2, %v9438_v1 }
 0x68d   :  { %8469 = vmatprep.subr.bf16.mxu0 %v9438_v1 }
 0x691   :  { %8466 = vmatmul.mubr.msk.bf16.vlgmr.msra.gmra.mrb[24].mxu1 %vm851_vm4, %v1581_v28 }
 0x692   :  { %8477 = vmatprep.mubr.msk.bf16.mxu1 %vm9439_vm2, %v9438_v1 }
 0x693   :  { %8460 = vmatmul.mubr.msk.bf16.vlgmr.msra.gmra.mrb[36].mxu0 %vm851_vm4, %v1531_v29 }
 0x694   :  { %8471 = vmatprep.mubr.msk.bf16.mxu0 %vm9439_vm2, %v9438_v1 }
 0x75a   :  { %v10114_v57 = vpop.f32.mrb[20].mxu1 }
 0x75b   :  { %v8455_v12 = vpop.f32.mrb[21].mxu1 }
 0x75c   :  { %v1527_v19 = vpop.f32.mrb[22].mxu1 }
 0x75d   :  { %v8456_v32 = vpop.f32.mrb[23].mxu1 }
 0x75e   :  { %v10116_v33 = vpop.f32.mrb[32].mxu0 }
 0x75f   :  { %v8716_v34 = vpack.i.bf16 %v10114_v57, %v10116_v33  ;;  %v8449_v35 = vpop.f32.mrb[33].mxu0 }
 0x760   :  { %v1479_v36 = vpop.f32.mrb[34].mxu0 }
 0x761   :  { %v8450_v21 = vpop.f32.mrb[35].mxu0 }
 0x764   :  { %v1624_v38 = vpop.f32.mrb[24].mxu1 }
 0x765   :  { %v1625_v40 = vadd.f32 %v1624_v38, %v9986_v39  ;;  %v8467_v46 = vpop.f32.mrb[25].mxu1 }
 0x766   :  { %v1574_v47 = vpop.f32.mrb[36].mxu0  ;;  %v1627_v50 = vpop.f32.mrb[26].mxu1 }
 0x767   :  { %v1575_v41 = vadd.f32 %v1574_v47, %v9986_v39  ;;  %v8461_v51 = vpop.f32.mrb[37].mxu0  ;;  %v8468_v53 = vpop.f32.mrb[27].mxu1  ;;  %v1633_v54 = vsel %vm951_vm6, %v1625_v40, -inf }
 0x768   :  { %1634 = vmax.xlane.f32.xlu1 %v1633_v54  ;;  %v1577_v58 = vpop.f32.mrb[38].mxu0 }
 0x769   :  { %v8462_v59 = vpop.f32.mrb[39].mxu0  ;;  %v1630_v61 = vsel %vm951_vm6, %v1575_v41, -inf }
 0x76a   :  { %1631 = vmax.xlane.f32.xlu0 %v1630_v61 }
 0x779   :  { %1654 = vrot.lane.b32.xlu1 %v10016_v30, %s9450_s19 }
 0x77d   :  { %1752 = vrot.lane.b32.xlu1 %v9932_v10, %s9451_s20 }
 0x781   :  { %1802 = vrot.lane.b32.xlu1 %v9940_v15, %s9451_s20  ;;  %s9468_s20 = smov 43  }
 0x785   :  { %1800 = vrot.lane.b32.xlu1 %v9948_v18, %s9452_s21 }
 0x7f5   :  { %v1635_v49 = vpop.xlane.xlu1 %1634 }
 0x7f6   :  { %v1637_v3 = vsub.f32 %v1625_v40, %v1635_v49 }
 0x7f7   :  { %v1632_v5 = vpop.xlane.xlu0 %1631 }
 0x7f8   :  { %v1640_v6 = vmul.f32 1.442695, %v1637_v3  ;;  %v1636_v9 = vsub.f32 %v1575_v41, %v1632_v5 }
 0x7f9   :  { %v1655_v11 = vpop.permute.xlu1 %1654 }
 0x7fa   :  { %9346 = vpow2.f32 %v1640_v6  ;;  %v1638_v13 = vmul.f32 1.442695, %v1636_v9  ;;  %v1660_v62 = vsel %vm991_vm7, %v1655_v11, 0 }
 0x7fb   :  { %8470 = vmatpush3.bf16.msra.mxu0 %v1660_v62 }
 0x7fc   :  { %9348 = vpow2.f32 %v1638_v13  ;;  %8481 = vmatprep.subr.bf16.mxu0 %v9438_v1 }
 0x7fd   :  { %v1753_v32 = vpop.permute.xlu1 %1752 }
 0x7fe   :  { %v1758_v51 = vsel %vm851_vm4, %v1753_v32, 0 }
 0x801   :  { %v1803_v46 = vpop.permute.xlu1 %1802 }
 0x802   :  { %v1808_v50 = vsel %vm851_vm4, %v1803_v46, 0 }
 0x804   :  { %v9347_v23 = vpop.eup %9346 }
 0x805   :  { %v1645_v24 = vsel %vm951_vm6, %v9347_v23, 0.0  ;;  %v1801_v53 = vpop.permute.xlu1 %1800 }
 0x806   :  { %v9349_v26 = vpop.eup %9348  ;;  %1646 = vadd.xlane.f32.xlu0 %v1645_v24 }
 0x807   :  { %v1642_v28 = vsel %vm951_vm6, %v9349_v26, 0.0 }
 0x80a   :  { %1643 = vadd.xlane.f32.xlu0 %v1642_v28 }
 0x820   :  { %1702 = vrot.lane.b32.xlu0 %v10024_v31, %s9450_s19  ;;  %s9467_s19 = smov 31  }
 0x824   :  { %1750 = vrot.lane.b32.xlu0 %v9944_v16, %s9452_s21  ;;  %s9469_s21 = smov 25  }
 0x893   :  { %v1647_v29 = vpop.xlane.xlu0 %1646 }
 0x894   :  { %9350 = vrcp.f32 %v1647_v29 }
 0x897   :  { %v1644_v12 = vpop.xlane.xlu0 %1643 }
 0x898   :  { %9352 = vrcp.f32 %v1644_v12 }
 0x89b   :  { %v1703_v19 = vpop.permute.xlu0 %1702 }
 0x89c   :  { %v1708_v35 = vsel %vm991_vm7, %v1703_v19, 0 }
 0x89d   :  { %8476 = vmatpush3.bf16.msra.mxu1 %v1708_v35 }
 0x89e   :  { %v9351_v36 = vpop.eup %9350  ;;  %8487 = vmatprep.subr.bf16.mxu1 %v9438_v1 }
 0x89f   :  { %v1651_v21 = vmul.f32 %v9351_v36, %v9347_v23  ;;  %v1751_v54 = vpop.permute.xlu0 %1750 }
 0x8a1   :  { %v1653_v38 = vpack.c.bf16 %v1651_v21, %v1651_v21 }
 0x8a2   :  { %v9353_v40 = vpop.eup %9352 }
 0x8a3   :  { %v1650_v47 = vmul.f32 %v9353_v40, %v9349_v26  ;;  %8478 = vmatmul.mubr.msk.bf16.vlgmr.msra.gmra.mrb[28].mxu1 %vm951_vm6, %v1653_v38 }
 0x8a4   :  { %8489 = vmatprep.mubr.msk.bf16.mxu1 %vm9439_vm2, %v9438_v1 }
 0x8a5   :  { %v1652_v41 = vpack.c.bf16 %v1650_v47, %v1650_v47 }
 0x8a6   :  { %8488 = vmatpush3.bf16.xpose.msra.mxu1 %v1808_v50 }
 0x8a7   :  { %8472 = vmatmul.mubr.msk.bf16.vlgmr.msra.gmra.mrb[40].mxu0 %vm951_vm6, %v1652_v41  ;;  %8499 = vmatprep.subr.bf16.mxu1 %v9438_v1 }
 0x8a8   :  { %8482 = vmatpush3.bf16.xpose.msra.mxu0 %v1758_v51  ;;  %8483 = vmatprep.mubr.msk.bf16.mxu0 %vm9439_vm2, %v9438_v1 }
 0x8a9   :  { %8493 = vmatprep.subr.bf16.mxu0 %v9438_v1 }
 0x8ad   :  { %8490 = vmatmul.mubr.msk.bf16.vlgmr.msra.gmra.mrb[32].mxu1 %vm851_vm4, %v1801_v53 }
 0x8ae   :  { %8501 = vmatprep.mubr.msk.bf16.mxu1 %vm9439_vm2, %v9438_v1 }
 0x8af   :  { %8484 = vmatmul.mubr.msk.bf16.vlgmr.msra.gmra.mrb[44].mxu0 %vm851_vm4, %v1751_v54 }
 0x8b0   :  { %8495 = vmatprep.mubr.msk.bf16.mxu0 %vm9439_vm2, %v9438_v1 }
 0x976   :  { %v10152_v58 = vpop.f32.mrb[28].mxu1 }
 0x977   :  { %v8479_v59 = vpop.f32.mrb[29].mxu1 }
 0x978   :  { %v1747_v61 = vpop.f32.mrb[30].mxu1 }
 0x979   :  { %v8480_v49 = vpop.f32.mrb[31].mxu1 }
 0x97a   :  { %v10154_v3 = vpop.f32.mrb[40].mxu0 }
 0x97b   :  { %v8726_v5 = vpack.i.bf16 %v10152_v58, %v10154_v3  ;;  %v8473_v6 = vpop.f32.mrb[41].mxu0 }
 0x97c   :  { %v1699_v9 = vpop.f32.mrb[42].mxu0 }
 0x97d   :  { %v8474_v11 = vpop.f32.mrb[43].mxu0 }
 0x980   :  { %v1844_v13 = vpop.f32.mrb[32].mxu1 }
 0x981   :  { %v1845_v62 = vadd.f32 %v1844_v13, %v9986_v39  ;;  %v8491_v23 = vpop.f32.mrb[33].mxu1 }
 0x982   :  { %v1794_v24 = vpop.f32.mrb[44].mxu0  ;;  %v1847_v26 = vpop.f32.mrb[34].mxu1 }
 0x983   :  { %v1795_v28 = vadd.f32 %v1794_v24, %v9986_v39  ;;  %v8485_v29 = vpop.f32.mrb[45].mxu0  ;;  %v8492_v12 = vpop.f32.mrb[35].mxu1  ;;  %v1853_v19 = vsel %vm951_vm6, %v1845_v62, -inf }
 0x984   :  { %1854 = vmax.xlane.f32.xlu1 %v1853_v19  ;;  %v1797_v32 = vpop.f32.mrb[46].mxu0 }
 0x985   :  { %v8486_v35 = vpop.f32.mrb[47].mxu0  ;;  %v1850_v36 = vsel %vm951_vm6, %v1795_v28, -inf }
 0x986   :  { %1851 = vmax.xlane.f32.xlu0 %v1850_v36 }
 0x995   :  { %1874 = vrot.lane.b32.xlu1 %v10016_v30, %s9453_s1 }
 0x999   :  { %1976 = vrot.lane.b32.xlu1 %v9932_v10, %s9454_s22 }
 0x99c   :  { %1922 = vrot.lane.b32.xlu0 %v10024_v31, %s9453_s1  ;;  %s9470_s1 = smov 125  }
 0x99d   :  { %1978 = vrot.lane.b32.xlu1 %v10010_v27, %s9454_s22 }
 0x9a1   :  { %2035 = vrot.lane.b32.xlu1 %v10019_v7, %s9454_s22 }
 0x9a5   :  { %1972 = vrot.lane.b32.xlu1 %v9911_v63, %s9455_s23 }
 0x9a9   :  { %2030 = vrot.lane.b32.xlu1 %v9938_v14, %s9455_s23 }
 0xa11   :  { %v1855_v21 = vpop.xlane.xlu1 %1854 }
 0xa12   :  { %v1857_v38 = vsub.f32 %v1845_v62, %v1855_v21 }
 0xa13   :  { %v1852_v40 = vpop.xlane.xlu0 %1851 }
 0xa14   :  { %v1860_v46 = vmul.f32 1.442695, %v1857_v38  ;;  %v1856_v47 = vsub.f32 %v1795_v28, %v1852_v40 }
 0xa15   :  { %v1875_v50 = vpop.permute.xlu1 %1874 }
 0xa16   :  { %9354 = vpow2.f32 %v1860_v46  ;;  %v1858_v41 = vmul.f32 1.442695, %v1856_v47  ;;  %v1880_v10 = vsel %vm991_vm7, %v1875_v50, 0 }
 0xa17   :  { %8494 = vmatpush3.bf16.msra.mxu0 %v1880_v10  ;;  %v1923_v51 = vpop.permute.xlu0 %1922 }
 0xa18   :  { %9356 = vpow2.f32 %v1858_v41  ;;  %v1928_v53 = vsel %vm991_vm7, %v1923_v51, 0  ;;  %8505 = vmatprep.subr.bf16.mxu0 %v9438_v1 }
 0xa19   :  { %8500 = vmatpush3.bf16.msra.mxu1 %v1928_v53  ;;  %v1977_v6 = vpop.permute.xlu1 %1976 }
 0xa1a   :  { %8511 = vmatprep.subr.bf16.mxu1 %v9438_v1 }
 0xa1d   :  { %v1979_v11 = vpop.permute.xlu1 %1978 }
 0xa20   :  { %v9355_v54 = vpop.eup %9354 }
 0xa21   :  { %v1865_v59 = vsel %vm951_vm6, %v9355_v54, 0.0  ;;  %v2036_v23 = vpop.permute.xlu1 %2035 }
 0xa22   :  { %v9357_v61 = vpop.eup %9356  ;;  %1866 = vadd.xlane.f32.xlu0 %v1865_v59 }
 0xa23   :  { %v1862_v49 = vsel %vm951_vm6, %v9357_v61, 0.0 }
 0xa26   :  { %1863 = vadd.xlane.f32.xlu0 %v1862_v49 }
 0xa3c   :  { %2033 = vrot.lane.b32.xlu0 %v9940_v15, %s9454_s22  ;;  %v1973_v15 = vpop.permute.xlu1 %1972  ;;  %s9471_s22 = smov 50  }
 0xa40   :  { %1970 = vrot.lane.b32.xlu0 %v9944_v16, %s9455_s23  ;;  %v2031_v38 = vpop.permute.xlu1 %2030 }
 0xa44   :  { %2028 = vrot.lane.b32.xlu0 %v9948_v18, %s9455_s23  ;;  %v1981_v18 = vsel %vm1980_vm9, %v1977_v6, %v1979_v11  ;;  %s9472_s23 = smov 75  }
 0xa45   :  { %v1986_v36 = vsel %vm851_vm4, %v1981_v18, 0 }
 0xaaf   :  { %v1867_v9 = vpop.xlane.xlu0 %1866 }
 0xab0   :  { %9358 = vrcp.f32 %v1867_v9 }
 0xab3   :  { %v1864_v13 = vpop.xlane.xlu0 %1863 }
 0xab4   :  { %9360 = vrcp.f32 %v1864_v13 }
 0xab7   :  { %v2034_v62 = vpop.permute.xlu0 %2033 }
 0xab8   :  { %v2037_v28 = vsel %vm1980_vm9, %v2034_v62, %v2036_v23 }
 0xab9   :  { %v2042_v16 = vsel %vm851_vm4, %v2037_v28, 0 }
 0xaba   :  { %v9359_v24 = vpop.eup %9358 }
 0xabb   :  { %v1871_v26 = vmul.f32 %v9359_v24, %v9355_v54  ;;  %v1971_v29 = vpop.permute.xlu0 %1970 }
 0xabc   :  { %v1975_v46 = vsel %vm1974_vm10, %v1971_v29, %v1973_v15  ;;  %v9410_v15 = vld [vmem:[%s12305_s3] sm:$0x3f]  ;;  %s9457_s3 = smov 112  }
 0xabd   :  { %v1873_v12 = vpack.c.bf16 %v1871_v26, %v1871_v26 }
 0xabe   :  { %v9361_v19 = vpop.eup %9360 }
 0xabf   :  { %v1870_v32 = vmul.f32 %v9361_v19, %v9357_v61  ;;  %8502 = vmatmul.mubr.msk.bf16.vlgmr.msra.gmra.mrb[36].mxu1 %vm951_vm6, %v1873_v12  ;;  %v2029_v21 = vpop.permute.xlu0 %2028  ;;  %v10205_v19 = vsub.s32 5, %v9899_v55 }
 0xac0   :  { %8512 = vmatpush3.bf16.xpose.msra.mxu1 %v2042_v16  ;;  %8513 = vmatprep.mubr.msk.bf16.mxu1 %vm9439_vm2, %v9438_v1  ;;  %v2032_v40 = vsel %vm1974_vm10, %v2029_v21, %v2031_v38 }
 0xac1   :  { %v1872_v35 = vpack.c.bf16 %v1870_v32, %v1870_v32  ;;  %8523 = vmatprep.subr.bf16.mxu1 %v9438_v1  ;;  %v204_v32 = vrot.slane %v9410_v15, %v10205_v19 }
 0xac3   :  { %8496 = vmatmul.mubr.msk.bf16.vlgmr.msra.gmra.mrb[48].mxu0 %vm951_vm6, %v1872_v35  ;;  %v835_v16 = vadd.f32 %v9957_v22, %v204_v32  ;;  %v831_v18 = vadd.f32 %v9953_v20, %v204_v32 }
 0xac4   :  { %8506 = vmatpush3.bf16.xpose.msra.mxu0 %v1986_v36  ;;  %8507 = vmatprep.mubr.msk.bf16.mxu0 %vm9439_vm2, %v9438_v1 }
 0xac5   :  { %8517 = vmatprep.subr.bf16.mxu0 %v9438_v1  ;;  %v10215_v35 = vpack.c.bf16 %v835_v16, %v835_v16  ;;  %v10217_v36 = vpack.c.bf16 %v831_v18, %v831_v18 }
 0xac7   :  { %8514 = vmatmul.mubr.msk.bf16.vlgmr.msra.gmra.mrb[40].mxu1 %vm851_vm4, %v2032_v40 }
 0xac8   :  { %8525 = vmatprep.mubr.msk.bf16.mxu1 %vm9439_vm2, %v9438_v1 }
 0xacb   :  { %8508 = vmatmul.mubr.msk.bf16.vlgmr.msra.gmra.mrb[52].mxu0 %vm851_vm4, %v1975_v46 }
 0xacc   :  { %8519 = vmatprep.mubr.msk.bf16.mxu0 %vm9439_vm2, %v9438_v1 }
 0xb92   :  { %v10194_v47 = vpop.f32.mrb[36].mxu1 }
 0xb93   :  { %v8503_v50 = vpop.f32.mrb[37].mxu1 }
 0xb94   :  { %v1967_v41 = vpop.f32.mrb[38].mxu1 }
 0xb95   :  { %v8504_v10 = vpop.f32.mrb[39].mxu1 }
 0xb96   :  { %v10196_v51 = vpop.f32.mrb[48].mxu0 }
 0xb97   :  { %v8736_v53 = vpack.i.bf16 %v10194_v47, %v10196_v51  ;;  %v8497_v54 = vpop.f32.mrb[49].mxu0 }
 0xb98   :  { %v1919_v59 = vpop.f32.mrb[50].mxu0 }
 0xb99   :  { %v8498_v61 = vpop.f32.mrb[51].mxu0 }
 0xb9a   :  { %v2078_v49 = vpop.f32.mrb[40].mxu1 }
 0xb9b   :  { %v2079_v6 = vadd.f32 %v2078_v49, %v9986_v39  ;;  %v8515_v9 = vpop.f32.mrb[41].mxu1 }
 0xb9c   :  { %v2081_v11 = vpop.f32.mrb[42].mxu1 }
 0xb9d   :  { %v8516_v13 = vpop.f32.mrb[43].mxu1  ;;  %v2087_v62 = vsel %vm951_vm6, %v2079_v6, -inf }
 0xb9e   :  { %2088 = vmax.xlane.f32.xlu1 %v2087_v62  ;;  %v2022_v23 = vpop.f32.mrb[52].mxu0 }
 0xb9f   :  { %v2023_v24 = vadd.f32 %v2022_v23, %v9986_v39  ;;  %v8509_v26 = vpop.f32.mrb[53].mxu0 }
 0xba0   :  { %v2025_v28 = vpop.f32.mrb[54].mxu0 }
 0xba1   :  { %v8510_v29 = vpop.f32.mrb[55].mxu0  ;;  %v2084_v12 = vsel %vm951_vm6, %v2023_v24, -inf }
 0xba2   :  { %2085 = vmax.xlane.f32.xlu0 %v2084_v12 }
 0xbaf   :  { %2111 = vrot.lane.b32.xlu1 %v10016_v30, %s9456_s2 }
 0xbb3   :  { %2164 = vrot.lane.b32.xlu1 %v10024_v31, %s9456_s2 }
 0xbb7   :  { %2166 = vrot.lane.b32.xlu1 %v10215_v35, %s9456_s2 }
 0xbb8   :  { %2113 = vrot.lane.b32.xlu0 %v10217_v36, %s9456_s2  ;;  %s9475_s2 = smov 47  }
 0xbbb   :  { %2267 = vrot.lane.b32.xlu1 %v10019_v7, %s9457_s3 }
 0xbbf   :  { %2265 = vrot.lane.b32.xlu1 %v9938_v14, %s9458_s26 }
 0xc2b   :  { %v2089_v22 = vpop.xlane.xlu1 %2088 }
 0xc2c   :  { %v2091_v20 = vsub.f32 %v2079_v6, %v2089_v22 }
 0xc2e   :  { %v2094_v30 = vmul.f32 1.442695, %v2091_v20 }
 0xc2f   :  { %v2112_v31 = vpop.permute.xlu1 %2111  ;;  %v2086_v21 = vpop.xlane.xlu0 %2085 }
 0xc30   :  { %9362 = vpow2.f32 %v2094_v30  ;;  %v2090_v38 = vsub.f32 %v2023_v24, %v2086_v21 }
 0xc32   :  { %v2092_v40 = vmul.f32 1.442695, %v2090_v38 }
 0xc33   :  { %v2165_v46 = vpop.permute.xlu1 %2164  ;;  %v2114_v50 = vpop.permute.xlu0 %2113 }
 0xc34   :  { %9364 = vpow2.f32 %v2092_v40  ;;  %v2116_v41 = vsel %vm2115_vm11, %v2112_v31, %v2114_v50 }
 0xc35   :  { %v2121_v10 = vsel %vm991_vm7, %v2116_v41, 0 }
 0xc36   :  { %8518 = vmatpush3.bf16.msra.mxu0 %v2121_v10 }
 0xc37   :  { %v2167_v54 = vpop.permute.xlu1 %2166  ;;  %8529 = vmatprep.subr.bf16.mxu0 %v9438_v1 }
 0xc38   :  { %v2168_v59 = vsel %vm2115_vm11, %v2165_v46, %v2167_v54 }
 0xc39   :  { %v2173_v61 = vsel %vm991_vm7, %v2168_v59, 0 }
 0xc3a   :  { %v9363_v49 = vpop.eup %9362  ;;  %8524 = vmatpush3.bf16.msra.mxu1 %v2173_v61 }
 0xc3b   :  { %v2099_v6 = vsel %vm951_vm6, %v9363_v49, 0.0  ;;  %8535 = vmatprep.subr.bf16.mxu1 %v9438_v1  ;;  %v2268_v26 = vpop.permute.xlu1 %2267 }
 0xc3c   :  { %2100 = vadd.xlane.f32.xlu0 %v2099_v6  ;;  %v2273_v12 = vsel %vm851_vm4, %v2268_v26, 0 }
 0xc3e   :  { %v9365_v9 = vpop.eup %9364 }
 0xc3f   :  { %v2096_v11 = vsel %vm951_vm6, %v9365_v9, 0.0  ;;  %v2266_v22 = vpop.permute.xlu1 %2265 }
 0xc40   :  { %2097 = vadd.xlane.f32.xlu0 %v2096_v11 }
 0xc56   :  { %2217 = vrot.lane.b32.xlu0 %v10010_v27, %s9457_s3  ;;  %s9476_s3 = smov 72  }
 0xc5a   :  { %2215 = vrot.lane.b32.xlu0 %v9911_v63, %s9458_s26 }
 0xcc9   :  { %v2101_v13 = vpop.xlane.xlu0 %2100 }
 0xcca   :  { %9366 = vrcp.f32 %v2101_v13 }
 0xccd   :  { %v2098_v62 = vpop.xlane.xlu0 %2097 }
 0xcce   :  { %9368 = vrcp.f32 %v2098_v62 }
 0xcd1   :  { %v2218_v32 = vpop.permute.xlu0 %2217 }
 0xcd2   :  { %v2223_v18 = vsel %vm851_vm4, %v2218_v32, 0 }
 0xcd4   :  { %v9367_v23 = vpop.eup %9366 }
 0xcd5   :  { %v2105_v24 = vmul.f32 %v9367_v23, %v9363_v49  ;;  %v2216_v20 = vpop.permute.xlu0 %2215 }
 0xcd7   :  { %v2107_v28 = vpack.c.bf16 %v2105_v24, %v2105_v24 }
 0xcd8   :  { %v9369_v29 = vpop.eup %9368 }
 0xcd9   :  { %v2104_v15 = vmul.f32 %v9369_v29, %v9365_v9  ;;  %8526 = vmatmul.mubr.msk.bf16.vlgmr.msra.gmra.mrb[44].mxu1 %vm951_vm6, %v2107_v28 }
 0xcda   :  { %8536 = vmatpush3.bf16.xpose.msra.mxu1 %v2273_v12  ;;  %8537 = vmatprep.mubr.msk.bf16.mxu1 %vm9439_vm2, %v9438_v1 }
 0xcdb   :  { %v2106_v16 = vpack.c.bf16 %v2104_v15, %v2104_v15  ;;  %8547 = vmatprep.subr.bf16.mxu1 %v9438_v1 }
 0xcdd   :  { %8520 = vmatmul.mubr.msk.bf16.vlgmr.msra.gmra.mrb[56].mxu0 %vm951_vm6, %v2106_v16 }
 0xcde   :  { %8530 = vmatpush3.bf16.xpose.msra.mxu0 %v2223_v18  ;;  %8531 = vmatprep.mubr.msk.bf16.mxu0 %vm9439_vm2, %v9438_v1 }
 0xcdf   :  { %8541 = vmatprep.subr.bf16.mxu0 %v9438_v1 }
 0xce1   :  { %8538 = vmatmul.mubr.msk.bf16.vlgmr.msra.gmra.mrb[48].mxu1 %vm851_vm4, %v2266_v22 }
 0xce2   :  { %8549 = vmatprep.mubr.msk.bf16.mxu1 %vm9439_vm2, %v9438_v1 }
 0xce5   :  { %8532 = vmatmul.mubr.msk.bf16.vlgmr.msra.gmra.mrb[60].mxu0 %vm851_vm4, %v2216_v20 }
 0xce6   :  { %8543 = vmatprep.mubr.msk.bf16.mxu0 %vm9439_vm2, %v9438_v1 }
 0xdac   :  { %v10251_v30 = vpop.f32.mrb[44].mxu1 }
 0xdad   :  { %v8527_v31 = vpop.f32.mrb[45].mxu1 }
 0xdae   :  { %v2212_v21 = vpop.f32.mrb[46].mxu1 }
 0xdaf   :  { %v8528_v38 = vpop.f32.mrb[47].mxu1 }
 0xdb0   :  { %v10253_v40 = vpop.f32.mrb[56].mxu0 }
 0xdb1   :  { %v8706_v46 = vpack.i.bf16 %v10251_v30, %v10253_v40  ;;  %v8521_v50 = vpop.f32.mrb[57].mxu0 }
 0xdb2   :  { %v2160_v41 = vpop.f32.mrb[58].mxu0 }
 0xdb3   :  { %v8522_v10 = vpop.f32.mrb[59].mxu0 }
 0xdb4   :  { %v2309_v54 = vpop.f32.mrb[48].mxu1 }
 0xdb5   :  { %v2310_v59 = vadd.f32 %v2309_v54, %v9986_v39  ;;  %v8539_v61 = vpop.f32.mrb[49].mxu1 }
 0xdb6   :  { %v2312_v49 = vpop.f32.mrb[50].mxu1 }
 0xdb7   :  { %v8540_v6 = vpop.f32.mrb[51].mxu1  ;;  %v2318_v9 = vsel %vm951_vm6, %v2310_v59, -inf }
 0xdb8   :  { %2319 = vmax.xlane.f32.xlu1 %v2318_v9  ;;  %v2259_v11 = vpop.f32.mrb[60].mxu0 }
 0xdb9   :  { %v2260_v13 = vadd.f32 %v2259_v11, %v9986_v39  ;;  %v8533_v62 = vpop.f32.mrb[61].mxu0 }
 0xdba   :  { %v2262_v23 = vpop.f32.mrb[62].mxu0 }
 0xdbb   :  { %v8534_v24 = vpop.f32.mrb[63].mxu0  ;;  %v2315_v26 = vsel %vm951_vm6, %v2260_v13, -inf }
 0xdbc   :  { %2316 = vmax.xlane.f32.xlu0 %v2315_v26 }
 0xdc9   :  { %2339 = vrot.lane.b32.xlu1 %v10217_v36, %s9459_s27 }
 0xdcd   :  { %2437 = vrot.lane.b32.xlu1 %v10010_v27, %s9460_s28 }
 0xdd1   :  { %2487 = vrot.lane.b32.xlu1 %v10019_v7, %s9460_s28 }
 0xdd5   :  { %2485 = vrot.lane.b32.xlu1 %v9938_v14, %s9461_s29 }
 0xe45   :  { %v2320_v28 = vpop.xlane.xlu1 %2319 }
 0xe46   :  { %v2322_v29 = vsub.f32 %v2310_v59, %v2320_v28 }
 0xe48   :  { %v2325_v12 = vmul.f32 1.442695, %v2322_v29 }
 0xe49   :  { %v2340_v15 = vpop.permute.xlu1 %2339  ;;  %v2317_v32 = vpop.xlane.xlu0 %2316 }
 0xe4a   :  { %9370 = vpow2.f32 %v2325_v12  ;;  %v2345_v16 = vsel %vm991_vm7, %v2340_v15, 0  ;;  %v2321_v18 = vsub.f32 %v2260_v13, %v2317_v32 }
 0xe4b   :  { %8542 = vmatpush3.bf16.msra.mxu0 %v2345_v16 }
 0xe4c   :  { %v2323_v22 = vmul.f32 1.442695, %v2321_v18  ;;  %8553 = vmatprep.subr.bf16.mxu0 %v9438_v1 }
 0xe4d   :  { %v2438_v54 = vpop.permute.xlu1 %2437 }
 0xe4e   :  { %9372 = vpow2.f32 %v2323_v22  ;;  %v2443_v24 = vsel %vm851_vm4, %v2438_v54, 0 }
 0xe51   :  { %v2488_v11 = vpop.permute.xlu1 %2487 }
 0xe52   :  { %v2493_v62 = vsel %vm851_vm4, %v2488_v11, 0 }
 0xe54   :  { %v9371_v20 = vpop.eup %9370 }
 0xe55   :  { %v2330_v31 = vsel %vm951_vm6, %v9371_v20, 0.0  ;;  %v2486_v26 = vpop.permute.xlu1 %2485 }
 0xe56   :  { %2331 = vadd.xlane.f32.xlu0 %v2330_v31 }
 0xe58   :  { %v9373_v21 = vpop.eup %9372 }
 0xe59   :  { %v2327_v38 = vsel %vm951_vm6, %v9373_v21, 0.0 }
 0xe5a   :  { %2328 = vadd.xlane.f32.xlu0 %v2327_v38 }
 0xe70   :  { %2387 = vrot.lane.b32.xlu0 %v10215_v35, %s9459_s27 }
 0xe74   :  { %2435 = vrot.lane.b32.xlu0 %v9911_v63, %s9461_s29 }
 0xee3   :  { %v2332_v50 = vpop.xlane.xlu0 %2331 }
 0xee4   :  { %9374 = vrcp.f32 %v2332_v50 }
 0xee7   :  { %v2329_v41 = vpop.xlane.xlu0 %2328 }
 0xee8   :  { %9376 = vrcp.f32 %v2329_v41 }
 0xeeb   :  { %v2388_v10 = vpop.permute.xlu0 %2387 }
 0xeec   :  { %v2393_v59 = vsel %vm991_vm7, %v2388_v10, 0 }
 0xeed   :  { %8548 = vmatpush3.bf16.msra.mxu1 %v2393_v59 }
 0xeee   :  { %v9375_v61 = vpop.eup %9374  ;;  %8559 = vmatprep.subr.bf16.mxu1 %v9438_v1 }
 0xeef   :  { %v2336_v49 = vmul.f32 %v9375_v61, %v9371_v20  ;;  %v2436_v28 = vpop.permute.xlu0 %2435 }
 0xef1   :  { %v2338_v6 = vpack.c.bf16 %v2336_v49, %v2336_v49 }
 0xef2   :  { %v9377_v9 = vpop.eup %9376 }
 0xef3   :  { %v2335_v13 = vmul.f32 %v9377_v9, %v9373_v21  ;;  %8550 = vmatmul.mubr.msk.bf16.vlgmr.msra.gmra.mrb[52].mxu1 %vm951_vm6, %v2338_v6 }
 0xef4   :  { %8561 = vmatprep.mubr.msk.bf16.mxu1 %vm9439_vm2, %v9438_v1 }
 0xef5   :  { %v2337_v23 = vpack.c.bf16 %v2335_v13, %v2335_v13 }
 0xef6   :  { %8560 = vmatpush3.bf16.xpose.msra.mxu1 %v2493_v62 }
 0xef7   :  { %8544 = vmatmul.mubr.msk.bf16.vlgmr.msra.gmra.mrb[64].mxu0 %vm951_vm6, %v2337_v23  ;;  %8571 = vmatprep.subr.bf16.mxu1 %v9438_v1 }
 0xef8   :  { %8554 = vmatpush3.bf16.xpose.msra.mxu0 %v2443_v24  ;;  %8555 = vmatprep.mubr.msk.bf16.mxu0 %vm9439_vm2, %v9438_v1 }
 0xef9   :  { %8565 = vmatprep.subr.bf16.mxu0 %v9438_v1 }
 0xefd   :  { %8562 = vmatmul.mubr.msk.bf16.vlgmr.msra.gmra.mrb[56].mxu1 %vm851_vm4, %v2486_v26 }
 0xefe   :  { %8573 = vmatprep.mubr.msk.bf16.mxu1 %vm9439_vm2, %v9438_v1 }
 0xeff   :  { %8556 = vmatmul.mubr.msk.bf16.vlgmr.msra.gmra.mrb[68].mxu0 %vm851_vm4, %v2436_v28 }
 0xf00   :  { %8567 = vmatprep.mubr.msk.bf16.mxu0 %vm9439_vm2, %v9438_v1 }
 0xfc6   :  { %v10289_v29 = vpop.f32.mrb[52].mxu1 }
 0xfc7   :  { %v8551_v12 = vpop.f32.mrb[53].mxu1 }
 0xfc8   :  { %v2432_v15 = vpop.f32.mrb[54].mxu1 }
 0xfc9   :  { %v8552_v32 = vpop.f32.mrb[55].mxu1 }
 0xfca   :  { %v10291_v16 = vpop.f32.mrb[64].mxu0 }
 0xfcb   :  { %v8711_v18 = vpack.i.bf16 %v10289_v29, %v10291_v16  ;;  %v8545_v22 = vpop.f32.mrb[65].mxu0 }
 0xfcc   :  { %v2384_v20 = vpop.f32.mrb[66].mxu0 }
 0xfcd   :  { %v8546_v31 = vpop.f32.mrb[67].mxu0 }
 0xfd0   :  { %v2529_v21 = vpop.f32.mrb[56].mxu1 }
 0xfd1   :  { %v2530_v38 = vadd.f32 %v2529_v21, %v9986_v39  ;;  %v8563_v50 = vpop.f32.mrb[57].mxu1 }
 0xfd2   :  { %v2479_v41 = vpop.f32.mrb[68].mxu0  ;;  %v2532_v10 = vpop.f32.mrb[58].mxu1 }
 0xfd3   :  { %v2480_v54 = vadd.f32 %v2479_v41, %v9986_v39  ;;  %v8557_v59 = vpop.f32.mrb[69].mxu0  ;;  %v8564_v61 = vpop.f32.mrb[59].mxu1  ;;  %v2538_v49 = vsel %vm951_vm6, %v2530_v38, -inf }
 0xfd4   :  { %2539 = vmax.xlane.f32.xlu1 %v2538_v49  ;;  %v2482_v6 = vpop.f32.mrb[70].mxu0 }
 0xfd5   :  { %v8558_v9 = vpop.f32.mrb[71].mxu0  ;;  %v2535_v11 = vsel %vm951_vm6, %v2480_v54, -inf }
 0xfd6   :  { %2536 = vmax.xlane.f32.xlu0 %v2535_v11 }
 0xfe5   :  { %2559 = vrot.lane.b32.xlu1 %v10217_v36, %s9462_s30 }
 0xfe9   :  { %2657 = vrot.lane.b32.xlu1 %v10010_v27, %s9463_s0 }
 0xfed   :  { %2707 = vrot.lane.b32.xlu1 %v10019_v7, %s9463_s0 }
 0xff1   :  { %2705 = vrot.lane.b32.xlu1 %v9938_v14, %s9464_s15 }
0x1061   :  { %v2540_v13 = vpop.xlane.xlu1 %2539 }
0x1062   :  { %v2542_v62 = vsub.f32 %v2530_v38, %v2540_v13 }
0x1063   :  { %v2537_v23 = vpop.xlane.xlu0 %2536 }
0x1064   :  { %v2545_v24 = vmul.f32 1.442695, %v2542_v62  ;;  %v2541_v26 = vsub.f32 %v2480_v54, %v2537_v23 }
0x1065   :  { %v2560_v28 = vpop.permute.xlu1 %2559 }
0x1066   :  { %9378 = vpow2.f32 %v2545_v24  ;;  %v2543_v12 = vmul.f32 1.442695, %v2541_v26  ;;  %v2565_v15 = vsel %vm991_vm7, %v2560_v28, 0 }
0x1067   :  { %8566 = vmatpush3.bf16.msra.mxu0 %v2565_v15 }
0x1068   :  { %9380 = vpow2.f32 %v2543_v12  ;;  %8577 = vmatprep.subr.bf16.mxu0 %v9438_v1 }
0x1069   :  { %v2658_v41 = vpop.permute.xlu1 %2657 }
0x106a   :  { %v2663_v62 = vsel %vm851_vm4, %v2658_v41, 0 }
0x106d   :  { %v2708_v6 = vpop.permute.xlu1 %2707 }
0x106e   :  { %v2713_v11 = vsel %vm851_vm4, %v2708_v6, 0 }
0x1070   :  { %v9379_v32 = vpop.eup %9378 }
0x1071   :  { %v2550_v22 = vsel %vm951_vm6, %v9379_v32, 0.0  ;;  %v2706_v23 = vpop.permute.xlu1 %2705 }
0x1072   :  { %v9381_v20 = vpop.eup %9380  ;;  %2551 = vadd.xlane.f32.xlu0 %v2550_v22 }
0x1073   :  { %v2547_v31 = vsel %vm951_vm6, %v9381_v20, 0.0 }
0x1076   :  { %2548 = vadd.xlane.f32.xlu0 %v2547_v31 }
0x108c   :  { %2607 = vrot.lane.b32.xlu0 %v10215_v35, %s9462_s30 }
0x1090   :  { %2655 = vrot.lane.b32.xlu0 %v9911_v63, %s9464_s15 }
0x10ff   :  { %v2552_v21 = vpop.xlane.xlu0 %2551 }
0x1100   :  { %9382 = vrcp.f32 %v2552_v21 }
0x1103   :  { %v2549_v38 = vpop.xlane.xlu0 %2548 }
0x1104   :  { %9384 = vrcp.f32 %v2549_v38 }
0x1107   :  { %v2608_v50 = vpop.permute.xlu0 %2607 }
0x1108   :  { %v2613_v10 = vsel %vm991_vm7, %v2608_v50, 0 }
0x1109   :  { %8572 = vmatpush3.bf16.msra.mxu1 %v2613_v10 }
0x110a   :  { %v9383_v54 = vpop.eup %9382  ;;  %8583 = vmatprep.subr.bf16.mxu1 %v9438_v1 }
0x110b   :  { %v2556_v59 = vmul.f32 %v9383_v54, %v9379_v32  ;;  %v2656_v24 = vpop.permute.xlu0 %2655 }
0x110d   :  { %v2558_v61 = vpack.c.bf16 %v2556_v59, %v2556_v59 }
0x110e   :  { %v9385_v49 = vpop.eup %9384 }
0x110f   :  { %v2555_v9 = vmul.f32 %v9385_v49, %v9381_v20  ;;  %8574 = vmatmul.mubr.msk.bf16.vlgmr.msra.gmra.mrb[60].mxu1 %vm951_vm6, %v2558_v61 }
0x1110   :  { %8585 = vmatprep.mubr.msk.bf16.mxu1 %vm9439_vm2, %v9438_v1 }
0x1111   :  { %v2557_v13 = vpack.c.bf16 %v2555_v9, %v2555_v9 }
0x1112   :  { %8584 = vmatpush3.bf16.xpose.msra.mxu1 %v2713_v11 }
0x1113   :  { %8568 = vmatmul.mubr.msk.bf16.vlgmr.msra.gmra.mrb[72].mxu0 %vm951_vm6, %v2557_v13  ;;  %8595 = vmatprep.subr.bf16.mxu1 %v9438_v1 }
0x1114   :  { %8578 = vmatpush3.bf16.xpose.msra.mxu0 %v2663_v62  ;;  %8579 = vmatprep.mubr.msk.bf16.mxu0 %vm9439_vm2, %v9438_v1 }
0x1115   :  { %8589 = vmatprep.subr.bf16.mxu0 %v9438_v1 }
0x1119   :  { %8586 = vmatmul.mubr.msk.bf16.vlgmr.msra.gmra.mrb[64].mxu1 %vm851_vm4, %v2706_v23 }
0x111a   :  { %8597 = vmatprep.mubr.msk.bf16.mxu1 %vm9439_vm2, %v9438_v1 }
0x111b   :  { %8580 = vmatmul.mubr.msk.bf16.vlgmr.msra.gmra.mrb[76].mxu0 %vm851_vm4, %v2656_v24 }
0x111c   :  { %8591 = vmatprep.mubr.msk.bf16.mxu0 %vm9439_vm2, %v9438_v1 }
0x11e2   :  { %v10327_v26 = vpop.f32.mrb[60].mxu1 }
0x11e3   :  { %v8575_v28 = vpop.f32.mrb[61].mxu1 }
0x11e4   :  { %v2652_v12 = vpop.f32.mrb[62].mxu1 }
0x11e5   :  { %v8576_v15 = vpop.f32.mrb[63].mxu1 }
0x11e6   :  { %v10329_v32 = vpop.f32.mrb[72].mxu0 }
0x11e7   :  { %v8721_v22 = vpack.i.bf16 %v10327_v26, %v10329_v32  ;;  %v8569_v20 = vpop.f32.mrb[73].mxu0  ;;  %v8890_v32 = vld [vmem:[%s12306_s4] ss:$8 sps:$4 sm:$0xff]  }
0x11e8   :  { %v2604_v31 = vpop.f32.mrb[74].mxu0 }
0x11e9   :  { %v8570_v21 = vpop.f32.mrb[75].mxu0 }
0x11ec   :  { %v2749_v38 = vpop.f32.mrb[64].mxu1 }
0x11ed   :  { %v2750_v50 = vadd.f32 %v2749_v38, %v9986_v39  ;;  %v8587_v41 = vpop.f32.mrb[65].mxu1 }
0x11ee   :  { %v2699_v10 = vpop.f32.mrb[76].mxu0  ;;  %v2752_v54 = vpop.f32.mrb[66].mxu1 }
0x11ef   :  { %v2700_v59 = vadd.f32 %v2699_v10, %v9986_v39  ;;  %v8581_v61 = vpop.f32.mrb[77].mxu0  ;;  %v8588_v49 = vpop.f32.mrb[67].mxu1  ;;  %v2758_v6 = vsel %vm951_vm6, %v2750_v50, -inf }
0x11f0   :  { %2759 = vmax.xlane.f32.xlu1 %v2758_v6  ;;  %v2702_v9 = vpop.f32.mrb[78].mxu0 }
0x11f1   :  { %v8582_v11 = vpop.f32.mrb[79].mxu0  ;;  %v2755_v13 = vsel %vm951_vm6, %v2700_v59, -inf }
0x11f2   :  { %2756 = vmax.xlane.f32.xlu0 %v2755_v13 }
0x1201   :  { %2779 = vrot.lane.b32.xlu1 %v10217_v36, %s9465_s17 }
0x1205   :  { %2877 = vrot.lane.b32.xlu1 %v10010_v27, %s9466_s18 }
0x1209   :  { %2927 = vrot.lane.b32.xlu1 %v10019_v7, %s9466_s18 }
0x120d   :  { %2925 = vrot.lane.b32.xlu1 %v9938_v14, %s9467_s19 }
0x127d   :  { %v2760_v62 = vpop.xlane.xlu1 %2759 }
0x127e   :  { %v2762_v23 = vsub.f32 %v2750_v50, %v2760_v62 }
0x127f   :  { %v2757_v24 = vpop.xlane.xlu0 %2756 }
0x1280   :  { %v2765_v28 = vmul.f32 1.442695, %v2762_v23  ;;  %v2761_v12 = vsub.f32 %v2700_v59, %v2757_v24 }
0x1281   :  { %v2780_v15 = vpop.permute.xlu1 %2779 }
0x1282   :  { %9386 = vpow2.f32 %v2765_v28  ;;  %v2763_v20 = vmul.f32 1.442695, %v2761_v12  ;;  %v2785_v31 = vsel %vm991_vm7, %v2780_v15, 0 }
0x1283   :  { %8590 = vmatpush3.bf16.msra.mxu0 %v2785_v31 }
0x1284   :  { %9388 = vpow2.f32 %v2763_v20  ;;  %8601 = vmatprep.subr.bf16.mxu0 %v9438_v1 }
0x1285   :  { %v2878_v10 = vpop.permute.xlu1 %2877 }
0x1286   :  { %v2883_v62 = vsel %vm851_vm4, %v2878_v10, 0 }
0x1289   :  { %v2928_v9 = vpop.permute.xlu1 %2927 }
0x128c   :  { %v9387_v27 = vpop.eup %9386 }
0x128d   :  { %v2770_v7 = vsel %vm951_vm6, %v9387_v27, 0.0  ;;  %v2926_v23 = vpop.permute.xlu1 %2925 }
0x128e   :  { %v9389_v21 = vpop.eup %9388  ;;  %2771 = vadd.xlane.f32.xlu0 %v2770_v7 }
0x128f   :  { %v2767_v14 = vsel %vm951_vm6, %v9389_v21, 0.0 }
0x1292   :  { %2768 = vadd.xlane.f32.xlu0 %v2767_v14 }
0x12a8   :  { %2827 = vrot.lane.b32.xlu0 %v10215_v35, %s9465_s17  ;;  %s9477_s17 = smov 97  }
0x12ac   :  { %2875 = vrot.lane.b32.xlu0 %v9911_v63, %s9467_s19  ;;  %v2933_v63 = vsel %vm851_vm4, %v2928_v9, 0 }
0x131b   :  { %v2772_v38 = vpop.xlane.xlu0 %2771 }
0x131c   :  { %9390 = vrcp.f32 %v2772_v38 }
0x131f   :  { %v2769_v50 = vpop.xlane.xlu0 %2768 }
0x1320   :  { %9392 = vrcp.f32 %v2769_v50 }
0x1323   :  { %v2828_v41 = vpop.permute.xlu0 %2827 }
0x1324   :  { %v2833_v54 = vsel %vm991_vm7, %v2828_v41, 0 }
0x1325   :  { %8596 = vmatpush3.bf16.msra.mxu1 %v2833_v54 }
0x1326   :  { %v9391_v59 = vpop.eup %9390  ;;  %8607 = vmatprep.subr.bf16.mxu1 %v9438_v1 }
0x1327   :  { %v2776_v61 = vmul.f32 %v9391_v59, %v9387_v27  ;;  %v2876_v24 = vpop.permute.xlu0 %2875 }
0x1329   :  { %v2778_v49 = vpack.c.bf16 %v2776_v61, %v2776_v61 }
0x132a   :  { %v9393_v6 = vpop.eup %9392 }
0x132b   :  { %v2775_v11 = vmul.f32 %v9393_v6, %v9389_v21  ;;  %8598 = vmatmul.mubr.msk.bf16.vlgmr.msra.gmra.mrb[68].mxu1 %vm951_vm6, %v2778_v49 }
0x132c   :  { %8609 = vmatprep.mubr.msk.bf16.mxu1 %vm9439_vm2, %v9438_v1 }
0x132d   :  { %v2777_v13 = vpack.c.bf16 %v2775_v11, %v2775_v11 }
0x132e   :  { %8608 = vmatpush3.bf16.xpose.msra.mxu1 %v2933_v63 }
0x132f   :  { %8592 = vmatmul.mubr.msk.bf16.vlgmr.msra.gmra.mrb[80].mxu0 %vm951_vm6, %v2777_v13  ;;  %8619 = vmatprep.subr.bf16.mxu1 %v9438_v1 }
0x1330   :  { %8602 = vmatpush3.bf16.xpose.msra.mxu0 %v2883_v62  ;;  %8603 = vmatprep.mubr.msk.bf16.mxu0 %vm9439_vm2, %v9438_v1 }
0x1331   :  { %8613 = vmatprep.subr.bf16.mxu0 %v9438_v1 }
0x1335   :  { %8610 = vmatmul.mubr.msk.bf16.vlgmr.msra.gmra.mrb[72].mxu1 %vm851_vm4, %v2926_v23 }
0x1336   :  { %8621 = vmatprep.mubr.msk.bf16.mxu1 %vm9439_vm2, %v9438_v1 }
0x1337   :  { %8604 = vmatmul.mubr.msk.bf16.vlgmr.msra.gmra.mrb[84].mxu0 %vm851_vm4, %v2876_v24 }
0x1338   :  { %8615 = vmatprep.mubr.msk.bf16.mxu0 %vm9439_vm2, %v9438_v1  ;;  %vm3181_vm2 = vcmask 179200  }
0x13fe   :  { %v10365_v28 = vpop.f32.mrb[68].mxu1 }
0x13ff   :  { %v8599_v12 = vpop.f32.mrb[69].mxu1 }
0x1400   :  { %v2872_v15 = vpop.f32.mrb[70].mxu1 }
0x1401   :  { %v8600_v20 = vpop.f32.mrb[71].mxu1 }
0x1402   :  { %v10367_v31 = vpop.f32.mrb[80].mxu0 }
0x1403   :  { %v8731_v27 = vpack.i.bf16 %v10365_v28, %v10367_v31  ;;  %v8593_v7 = vpop.f32.mrb[81].mxu0  ;;  %v8895_v28 = vld [vmem:[%s12306_s4 + $0x14] ss:$8 sps:$4 sm:$0xff]   ;;  %v8893_v31 = vld [vmem:[%s12306_s4 + $0x10] ss:$8 sps:$4 sm:$0xff]  }
0x1404   :  { %v2824_v21 = vpop.f32.mrb[82].mxu0 }
0x1405   :  { %v8594_v14 = vpop.f32.mrb[83].mxu0 }
0x1408   :  { %v2969_v38 = vpop.f32.mrb[72].mxu1 }
0x1409   :  { %v2970_v50 = vadd.f32 %v2969_v38, %v9986_v39  ;;  %v8611_v41 = vpop.f32.mrb[73].mxu1 }
0x140a   :  { %v2919_v10 = vpop.f32.mrb[84].mxu0  ;;  %v2972_v54 = vpop.f32.mrb[74].mxu1 }
0x140b   :  { %v2920_v1 = vadd.f32 %v2919_v10, %v9986_v39  ;;  %v8605_v59 = vpop.f32.mrb[85].mxu0  ;;  %v8612_v61 = vpop.f32.mrb[75].mxu1  ;;  %v2978_v49 = vsel %vm951_vm6, %v2970_v50, -inf }
0x140c   :  { %2979 = vmax.xlane.f32.xlu1 %v2978_v49  ;;  %v2922_v6 = vpop.f32.mrb[86].mxu0 }
0x140d   :  { %v8606_v9 = vpop.f32.mrb[87].mxu0  ;;  %v2975_v11 = vsel %vm951_vm6, %v2920_v1, -inf }
0x140e   :  { %2976 = vmax.xlane.f32.xlu0 %v2975_v11 }
0x141d   :  { %2999 = vrot.lane.b32.xlu1 %v10217_v36, %s9468_s20 }
0x1421   :  { %8702 = vrot.lane.b32.xlu1 %v8701_v25, %s9469_s21 }
0x1425   :  { %8707 = vrot.lane.b32.xlu1 %v8706_v46, %s9470_s1 }
0x1429   :  { %8717 = vrot.lane.b32.xlu1 %v8716_v34, %s9471_s22 }
0x142d   :  { %8727 = vrot.lane.b32.xlu1 %v8726_v5, %s9472_s23 }
0x1431   :  { %8737 = vrot.lane.b32.xlu1 %v8736_v53, %s9473_s24 }
0x1499   :  { %v2980_v39 = vpop.xlane.xlu1 %2979 }
0x149a   :  { %v2982_v48 = vsub.f32 %v2970_v50, %v2980_v39 }
0x149b   :  { %v2977_v17 = vpop.xlane.xlu0 %2976 }
0x149c   :  { %v2985_v25 = vmul.f32 1.442695, %v2982_v48  ;;  %v2981_v36 = vsub.f32 %v2920_v1, %v2977_v17  ;;  %v8896_v48 = vld [vmem:[%s12306_s4 + $0x20] ss:$8 sps:$4 sm:$0xff]   ;;  %v8901_v17 = vld [vmem:[%s12306_s4 + $0x34] ss:$8 sps:$4 sm:$0xff]  }
0x149d   :  { %v3000_v30 = vpop.permute.xlu1 %2999 }
0x149e   :  { %9394 = vpow2.f32 %v2985_v25  ;;  %v2983_v40 = vmul.f32 1.442695, %v2981_v36  ;;  %v3005_v57 = vsel %vm991_vm7, %v3000_v30, 0  ;;  %v8899_v25 = vld [vmem:[%s12306_s4 + $0x30] ss:$8 sps:$4 sm:$0xff]  }
0x149f   :  { %8614 = vmatpush3.bf16.msra.mxu0 %v3005_v57  ;;  %v8904_v36 = vld [vmem:[%s12306_s4 + $0x44] ss:$8 sps:$4 sm:$0xff]   ;;  %v8902_v30 = vld [vmem:[%s12306_s4 + $0x40] ss:$8 sps:$4 sm:$0xff]   ;;  %v8905_v57 = vld [vmem:[%s12306_s4 + $0x50] ss:$8 sps:$4 sm:$0xff]  }
0x14a0   :  { %9396 = vpow2.f32 %v2983_v40  ;;  %v8907_v40 = vld [vmem:[%s12306_s4 + $0x54] ss:$8 sps:$4 sm:$0xff]  }
0x14a1   :  { %v8703_v33 = vpop.permute.xlu1 %8702 }
0x14a2   :  { %v8705_v51 = vunpack.i.h.bf16 %v8703_v33  ;;  %v8704_v53 = vunpack.i.l.bf16 %v8703_v33  ;;  %v8910_v33 = vld [vmem:[%s12306_s4 + $0x64] ss:$8 sps:$4 sm:$0xff]  }
0x14a4   :  { %v3168_v12 = vsel %vm851_vm4, %v10076_v0, %v8705_v51  ;;  %v3167_v15 = vsel %vm851_vm4, %v10074_v52, %v8704_v53  ;;  %v8914_v51 = vld [vmem:[%s12306_s4 + $0x80] ss:$8 sps:$4 sm:$0xff]   ;;  %v8919_v53 = vld [vmem:[%s12306_s4 + $0x94] ss:$8 sps:$4 sm:$0xff]   ;;  %vm3187_vm4 = vcmask 588800  }
0x14a5   :  { %v10393_v34 = vpop.permute.xlu1 %8707 }
0x14a6   :  { %v8710_v50 = vunpack.i.h.bf16 %v10393_v34  ;;  %v8709_v41 = vunpack.i.l.bf16 %v10393_v34  ;;  %v3227_v34 = vld [vmem:[%s12307_s5] sm:$0x3] }
0x14a8   :  { %v9395_v58 = vpop.eup %9394 }
0x14a9   :  { %v8718_v3 = vpop.permute.xlu1 %8717  ;;  %v2990_v5 = vsel %vm951_vm6, %v9395_v58, 0.0 }
0x14aa   :  { %v9397_v47 = vpop.eup %9396  ;;  %2991 = vadd.xlane.f32.xlu0 %v2990_v5  ;;  %v8720_v13 = vunpack.i.h.bf16 %v8718_v3  ;;  %v8719_v62 = vunpack.i.l.bf16 %v8718_v3  ;;  %v8913_v3 = vld [vmem:[%s12306_s4 + $0x74] ss:$8 sps:$4 sm:$0xff]   ;;  %v8911_v5 = vld [vmem:[%s12306_s4 + $0x70] ss:$8 sps:$4 sm:$0xff]  }
0x14ab   :  { %v2987_v63 = vsel %vm951_vm6, %v9397_v47, 0.0 }
0x14ac   :  { %v3170_v7 = vsel %vm3169_vm12, %v3167_v15, %v8719_v62  ;;  %v3171_v21 = vsel %vm3169_vm12, %v3168_v12, %v8720_v13  ;;  %v8920_v13 = vld [vmem:[%s12306_s4 + $0xa0] ss:$8 sps:$4 sm:$0xff]   ;;  %v8925_v62 = vld [vmem:[%s12306_s4 + $0xb4] ss:$8 sps:$4 sm:$0xff]  }
0x14ad   :  { %v8728_v46 = vpop.permute.xlu1 %8727  ;;  %v8926_v12 = vld [vmem:[%s12306_s4 + $0xc0] ss:$8 sps:$4 sm:$0xff]   ;;  %v8931_v15 = vld [vmem:[%s12306_s4 + $0xd4] ss:$8 sps:$4 sm:$0xff]  }
0x14ae   :  { %2988 = vadd.xlane.f32.xlu0 %v2987_v63  ;;  %v8730_v23 = vunpack.i.h.bf16 %v8728_v46  ;;  %v8729_v24 = vunpack.i.l.bf16 %v8728_v46  ;;  %v8917_v46 = vld [vmem:[%s12306_s4 + $0x90] ss:$8 sps:$4 sm:$0xff]   ;;  %v8922_v63 = vld [vmem:[%s12306_s4 + $0xa4] ss:$8 sps:$4 sm:$0xff]  }
0x14b0   :  { %v3173_v10 = vsel %vm3172_vm13, %v3170_v7, %v8729_v24  ;;  %v3174_v54 = vsel %vm3172_vm13, %v3171_v21, %v8730_v23  ;;  %v8923_v23 = vld [vmem:[%s12306_s4 + $0xb0] ss:$8 sps:$4 sm:$0xff]   ;;  %v8928_v24 = vld [vmem:[%s12306_s4 + $0xc4] ss:$8 sps:$4 sm:$0xff]   ;;  %v8932_v21 = vld [vmem:[%s12306_s4 + $0xe0] ss:$8 sps:$4 sm:$0xff]  }
0x14b1   :  { %v8738_v20 = vpop.permute.xlu1 %8737  ;;  %v8934_v7 = vld [vmem:[%s12306_s4 + $0xe4] ss:$8 sps:$4 sm:$0xff]  }
0x14b2   :  { %v8740_v14 = vunpack.i.h.bf16 %v8738_v20  ;;  %v8739_v38 = vunpack.i.l.bf16 %v8738_v20  ;;  %v8929_v20 = vld [vmem:[%s12306_s4 + $0xd0] ss:$8 sps:$4 sm:$0xff]  }
0x14b4   :  { %v3176_v1 = vsel %vm3175_vm14, %v3173_v10, %v8739_v38  ;;  %v3177_v59 = vsel %vm3175_vm14, %v3174_v54, %v8740_v14  ;;  %v8935_v14 = vld [vmem:[%s12306_s4 + $0xf4] ss:$8 sps:$4 sm:$0x1f]   ;;  %v8937_v38 = vld [vmem:[%s12306_s4 + $0xf0] ss:$8 sps:$4 sm:$0x1f]  }
0x14b5   :  { %v10405_v0 = vsel %vm3178_vm15, %v3176_v1, %v8709_v41  ;;  %v10409_v52 = vsel %vm3178_vm15, %v3177_v59, %v8710_v50  ;;  %v3401_v10 = vsel %vm689_vm0, %v8937_v38, 0  ;;  %v3536_v38 = vld [vmem:[%s12310_s8 + $0x60] sm:$0xff] }
0x14b6   :  { %v3193_v61 = vpack.c.bf16 %v10409_v52, %v10405_v0 }
0x14c4   :  { %3047 = vrot.lane.b32.xlu0 %v10215_v35, %s9468_s20 }
0x14c8   :  { %8712 = vrot.lane.b32.xlu0 %v8711_v18, %s9474_s25 }
0x14cc   :  { %8722 = vrot.lane.b32.xlu0 %v8721_v22, %s9475_s2  ;;  %v8892_v22 = vld [vmem:[%s12306_s4 + $0x4] ss:$8 sps:$4 sm:$0xff]  }
0x14cd   :  { %3406 = vmatprep.subr.bf16.mxu0 %v8892_v22 }
0x14d0   :  { %8732 = vrot.lane.b32.xlu0 %v8731_v27, %s9476_s3  ;;  %v8898_v27 = vld [vmem:[%s12306_s4 + $0x24] ss:$8 sps:$4 sm:$0xff]  }
0x1537   :  { %v2992_v49 = vpop.xlane.xlu0 %2991 }
0x1538   :  { %9398 = vrcp.f32 %v2992_v49 }
0x153b   :  { %v2989_v6 = vpop.xlane.xlu0 %2988 }
0x153c   :  { %9400 = vrcp.f32 %v2989_v6 }
0x153f   :  { %v3048_v35 = vpop.permute.xlu0 %3047 }
0x1540   :  { %v3053_v9 = vsel %vm991_vm7, %v3048_v35, 0 }
0x1541   :  { %8620 = vmatpush3.bf16.msra.mxu1 %v3053_v9 }
0x1542   :  { %v9399_v29 = vpop.eup %9398 }
0x1543   :  { %v2996_v16 = vmul.f32 %v9399_v29, %v9395_v58  ;;  %v8908_v58 = vld [vmem:[%s12306_s4 + $0x60] ss:$8 sps:$4 sm:$0xff]  }
0x1545   :  { %v2998_v18 = vpack.c.bf16 %v2996_v16, %v2996_v16 }
0x1546   :  { %v9401_v11 = vpop.eup %9400 }
0x1547   :  { %v2995_v39 = vmul.f32 %v9401_v11, %v9397_v47  ;;  %8622 = vmatmul.mubr.msk.bf16.vlgmr.msra.gmra.mrb[76].mxu1 %vm951_vm6, %v2998_v18  ;;  %v8916_v47 = vld [vmem:[%s12306_s4 + $0x84] ss:$8 sps:$4 sm:$0xff]   ;;  %v8713_v18 = vpop.permute.xlu0 %8712 }
0x1549   :  { %v2997_v26 = vpack.c.bf16 %v2995_v39, %v2995_v39 }
0x154b   :  { %8616 = vmatmul.mubr.msk.bf16.vlgmr.msra.gmra.mrb[88].mxu0 %vm951_vm6, %v2997_v26  ;;  %v8723_v11 = vpop.permute.xlu0 %8722  ;;  %v8715_v26 = vunpack.i.h.bf16 %v8713_v18  ;;  %vm7584_vm6 = vcmask 58368  }
0x154c   :  { %3407 = vmatpush1.bf16.msra.mxu0 %v8890_v32  ;;  %v8714_v32 = vunpack.i.l.bf16 %v8713_v18  ;;  %v8725_v22 = vunpack.i.h.bf16 %v8723_v11  ;;  %v3560_v18 = vld [vmem:[%s12310_s8 + $0x120] sm:$0xff] }
0x154d   :  { %3408 = vmatprep.subr.bf16.mxu0 %v8895_v28  ;;  %v8724_v28 = vunpack.i.l.bf16 %v8723_v11  ;;  %v3568_v11 = vld [vmem:[%s12310_s8 + $0x160] sm:$0xff] }
0x154f   :  { %v8733_v39 = vpop.permute.xlu0 %8732 }
0x1550   :  { %3409 = vmatpush1.bf16.msra.mxu0 %v8893_v31  ;;  %v8735_v31 = vunpack.i.h.bf16 %v8733_v39 }
0x1551   :  { %3410 = vmatprep.subr.bf16.mxu0 %v8898_v27  ;;  %v8734_v27 = vunpack.i.l.bf16 %v8733_v39 }
0x1554   :  { %3411 = vmatpush1.bf16.msra.mxu0 %v8896_v48  ;;  %v3183_v48 = vsel %vm3181_vm2, %v8710_v50, %v8715_v26  ;;  %v3232_v50 = vrot.slane %v3227_v34, %v9926_v4 }
0x1555   :  { %3412 = vmatprep.subr.bf16.mxu0 %v8901_v17  ;;  %v3182_v17 = vsel %vm3181_vm2, %v8709_v41, %v8714_v32  ;;  %v3236_v41 = vrot.slane %v3227_v34, %v9902_v56 }
0x1558   :  { %3413 = vmatpush1.bf16.msra.mxu0 %v8899_v25 }
0x1559   :  { %3414 = vmatprep.subr.bf16.mxu0 %v8904_v36  ;;  %v3185_v36 = vsel %vm3184_vm3, %v3182_v17, %v8724_v28  ;;  %v3572_v28 = vld [vmem:[%s12310_s8 + $0x180] sm:$0xff] }
0x155c   :  { %3415 = vmatpush1.bf16.msra.mxu0 %v8902_v30  ;;  %v3186_v30 = vsel %vm3184_vm3, %v3183_v48, %v8725_v22  ;;  %v7817_v22 = vcombine.high %v3560_v18, %v3568_v11  ;;  %v3584_v48 = vld [vmem:[%s12310_s8 + $0x1e0] sm:$0xff] }
0x155d   :  { %3416 = vmatprep.subr.bf16.mxu0 %v8907_v40 }
0x1560   :  { %3417 = vmatpush1.bf16.msra.mxu0 %v8905_v57 }
0x1561   :  { %3418 = vmatprep.subr.bf16.mxu0 %v8910_v33  ;;  %v3188_v33 = vsel %vm3187_vm4, %v3185_v36, %v8734_v27  ;;  %v3576_v27 = vld [vmem:[%s12310_s8 + $0x1a0] sm:$0xff] }
0x1564   :  { %3419 = vmatpush1.bf16.msra.mxu0 %v8908_v58  ;;  %v3189_v58 = vsel %vm3187_vm4, %v3186_v30, %v8735_v31  ;;  %v3580_v31 = vld [vmem:[%s12310_s8 + $0x1c0] sm:$0xff]  ;;  %v7833_v30 = vcombine.high %v3576_v27, %v3584_v48 }
0x1565   :  { %3420 = vmatprep.subr.bf16.mxu0 %v8913_v3  ;;  %v7825_v36 = vcombine.high %v3572_v28, %v3580_v31 }
0x1568   :  { %3421 = vmatpush1.bf16.msra.mxu0 %v8911_v5 }
0x1569   :  { %3422 = vmatprep.subr.bf16.mxu0 %v8916_v47 }
0x156c   :  { %3423 = vmatpush1.bf16.msra.mxu0 %v8914_v51 }
0x156d   :  { %3424 = vmatprep.subr.bf16.mxu0 %v8919_v53 }
0x1570   :  { %3425 = vmatpush1.bf16.msra.mxu0 %v8917_v46 }
0x1571   :  { %3426 = vmatprep.subr.bf16.mxu0 %v8922_v63 }
0x1574   :  { %3427 = vmatpush1.bf16.msra.mxu0 %v8920_v13 }
0x1575   :  { %3428 = vmatprep.subr.bf16.mxu0 %v8925_v62 }
0x1578   :  { %3429 = vmatpush1.bf16.msra.mxu0 %v8923_v23 }
0x1579   :  { %3430 = vmatprep.subr.bf16.mxu0 %v8928_v24 }
0x157c   :  { %3431 = vmatpush1.bf16.msra.mxu0 %v8926_v12 }
0x157d   :  { %3432 = vmatprep.subr.bf16.mxu0 %v8931_v15 }
0x1580   :  { %3433 = vmatpush1.bf16.msra.mxu0 %v8929_v20 }
0x1581   :  { %3434 = vmatprep.subr.bf16.mxu0 %v8934_v7 }
0x1584   :  { %3435 = vmatpush1.bf16.msra.mxu0 %v8932_v21 }
0x1585   :  { %7774 = vmatprep.subr.msk.bf16.mxu0 %vm689_vm0, %v8935_v14 }
0x1588   :  { %3437 = vmatpush1.bf16.msra.mxu0 %v3401_v10  ;;  %v3540_v10 = vld [vmem:[%s12310_s8 + $0x80] sm:$0xff] }
0x161a   :  { %v3089_v54 = vpop.f32.mrb[76].mxu1 }
0x161b   :  { %v8623_v1 = vpop.f32.mrb[77].mxu1 }
0x161c   :  { %v3092_v59 = vpop.f32.mrb[78].mxu1 }
0x161d   :  { %v8624_v49 = vpop.f32.mrb[79].mxu1 }
0x161e   :  { %v3041_v6 = vpop.f32.mrb[88].mxu0 }
0x161f   :  { %v8741_v35 = vpack.i.bf16 %v3089_v54, %v3041_v6  ;;  %v8617_v9 = vpop.f32.mrb[89].mxu0  ;;  %v3548_v54 = vld [vmem:[%s12310_s8 + $0xc0] sm:$0xff] }
0x1620   :  { %v3044_v29 = vpop.f32.mrb[90].mxu0  ;;  %v7793_v49 = vcombine.high %v3540_v10, %v3548_v54  ;;  %v3544_v6 = vld [vmem:[%s12310_s8 + $0xa0] sm:$0xff]  ;;  %v7792_v39 = vcombine.low %v3540_v10, %v3548_v54 }
0x1621   :  { %8742 = vrot.lane.b32.xlu0 %v8741_v35, %s9477_s17  ;;  %v8618_v16 = vpop.f32.mrb[91].mxu0  ;;  %v3552_v35 = vld [vmem:[%s12310_s8 + $0xe0] sm:$0xff] }
0x1622   :  { %v3556_v9 = vld [vmem:[%s12310_s8 + $0x100] sm:$0xff]  ;;  %v7801_v29 = vcombine.high %v3544_v6, %v3552_v35  ;;  %v7800_v26 = vcombine.low %v3544_v6, %v3552_v35 }
0x1623   :  { %v3564_v16 = vld [vmem:[%s12310_s8 + $0x140] sm:$0xff] }
0x1624   :  { %v7809_v32 = vcombine.high %v3556_v9, %v3564_v16  ;;  %v7808_v17 = vcombine.low %v3556_v9, %v3564_v16  ;;  %v3660_v6 = vld [vmem:[%s12310_s8 + $0x440] sm:$0xff] }
0x1625   :  { %v3656_v35 = vld [vmem:[%s12310_s8 + $0x420] sm:$0xff] }
0x1626   :  { %v3664_v9 = vld [vmem:[%s12310_s8 + $0x460] sm:$0xff] }
0x1693   :  { %v8743_v25 = vpop.permute.xlu0 %8742 }
0x1694   :  { %v8745_v40 = vunpack.i.h.bf16 %v8743_v25  ;;  %v8744_v57 = vunpack.i.l.bf16 %v8743_v25  ;;  %v7816_v25 = vcombine.low %v3560_v18, %v3568_v11  ;;  %v7913_v11 = vcombine.high %v3656_v35, %v3664_v9 }
0x1696   :  { %v3192_v3 = vsel %vm3190_vm5, %v3189_v58, %v8745_v40  ;;  %v3191_v5 = vsel %vm3190_vm5, %v3188_v33, %v8744_v57  ;;  %v3588_v40 = vld [vmem:[%s12310_s8 + $0x200] sm:$0xff] }
0x1697   :  { %v3194_v47 = vpack.c.bf16 %v3192_v3, %v3191_v5  ;;  %v3596_v57 = vld [vmem:[%s12310_s8 + $0x240] sm:$0xff]  ;;  %v7824_v3 = vcombine.low %v3572_v28, %v3580_v31  ;;  %v7832_v5 = vcombine.low %v3576_v27, %v3584_v48  ;;  %v7912_v31 = vcombine.low %v3656_v35, %v3664_v9 }
0x1698   :  { %v3592_v33 = vld [vmem:[%s12310_s8 + $0x220] sm:$0xff] }
0x1699   :  { %7775 = vmatprep.mubr.msk.bf16.mxu0 %vm685_vm1, %v3194_v47  ;;  %v3600_v58 = vld [vmem:[%s12310_s8 + $0x260] sm:$0xff]  ;;  %v7841_v47 = vcombine.high %v3588_v40, %v3596_v57 }
0x169a   :  { %3439 = vmatmul.mubr.bf16.vlgmr.msra.gmra.mrb[92].mxu0 %v3193_v61  ;;  %v7849_v34 = vcombine.high %v3592_v33, %v3600_v58  ;;  %v3732_v35 = vld [vmem:[%s12310_s8 + $0x680] sm:$0xff] }
0x169b   :  { %v3740_v9 = vld [vmem:[%s12310_s8 + $0x6c0] sm:$0xff] }
0x176d   :  { %v3440_v51 = vpop.f32.mrb[92].mxu0 }
0x176e   :  { %v3441_v53 = vadd.f32 %v3440_v51, %v3232_v50  ;;  %v3442_v46 = vpop.f32.mrb[93].mxu0  ;;  %v3608_v51 = vld [vmem:[%s12310_s8 + $0x2a0] sm:$0xff] }
0x176f   :  { %v3443_v63 = vadd.f32 %v3442_v46, %v3236_v41  ;;  %v3444_v13 = vpop.f32.mrb[94].mxu0  ;;  %v7840_v46 = vcombine.low %v3588_v40, %v3596_v57 }
0x1770   :  { %v3445_v62 = vadd.f32 %v3444_v13, %v3232_v50  ;;  %v3446_v23 = vpop.f32.mrb[95].mxu0  ;;  %v10542_v52 = vadd.f32 %v3441_v53, %v9680_v42  ;;  %v3524_v42 = vld [vmem:[%s12310_s8] sm:$0xff] }
0x1771   :  { %v10539_v24 = vadd.f32 %v3443_v63, %v9682_v43  ;;  %v3447_v0 = vadd.f32 %v3446_v23, %v3236_v41  ;;  %v3604_v50 = vld [vmem:[%s12310_s8 + $0x280] sm:$0xff]  ;;  %v7848_v63 = vcombine.low %v3592_v33, %v3600_v58 }
0x1772   :  { %v10550_v15 = vadd.f32 %v3445_v62, %v9684_v44  ;;  %v3528_v44 = vld [vmem:[%s12310_s8 + $0x20] sm:$0xff] }
0x1773   :  { %v3455_v61 = vsel %vm685_vm1, %v10539_v24, 0.0  ;;  %v10547_v12 = vadd.f32 %v3447_v0, %v9686_v45  ;;  %v3532_v45 = vld [vmem:[%s12310_s8 + $0x40] sm:$0xff]  ;;  %v7784_v1 = vcombine.low %v3528_v44, %v3536_v38  ;;  %v7785_v59 = vcombine.high %v3528_v44, %v3536_v38 }
0x1774   :  { %v3456_v20 = vadd.f32 %v3455_v61, %v10542_v52  ;;  %v7776_v21 = vcombine.low %v3524_v42, %v3532_v45  ;;  %v7777_v14 = vcombine.high %v3524_v42, %v3532_v45  ;;  %v3612_v41 = vld [vmem:[%s12310_s8 + $0x2c0] sm:$0xff] }
0x1775   :  { %v3459_v7 = vsel %vm685_vm1, %v10547_v12, 0.0  ;;  %5351 = vmatprep.subr.bf16.mxu1 %v7785_v59  ;;  %v3616_v53 = vld [vmem:[%s12310_s8 + $0x2e0] sm:$0xff]  ;;  %v7857_v13 = vcombine.high %v3604_v50, %v3612_v41 }
0x1776   :  { %3457 = vadd.xlane.f32.xlu1 %v3456_v20  ;;  %v3460_v43 = vadd.f32 %v3459_v7, %v10550_v15  ;;  %5179 = vmatprep.subr.bf16.mxu0 %v7777_v14  ;;  %v7865_v62 = vcombine.high %v3608_v51, %v3616_v53  ;;  %v3620_v23 = vld [vmem:[%s12310_s8 + $0x300] sm:$0xff]  ;;  %v7856_v7 = vcombine.low %v3604_v50, %v3612_v41 }
0x1777   :  { %5180 = vmatpush1.bf16.msra.mxu0 %v7776_v21  ;;  %5352 = vmatpush1.bf16.msra.mxu1 %v7784_v1  ;;  %v3628_v0 = vld [vmem:[%s12310_s8 + $0x340] sm:$0xff] }
0x1778   :  { %3461 = vadd.xlane.f32.xlu0 %v3460_v43  ;;  %5181 = vmatprep.subr.bf16.mxu0 %v7793_v49  ;;  %v3624_v61 = vld [vmem:[%s12310_s8 + $0x320] sm:$0xff]  ;;  %v7864_v43 = vcombine.low %v3608_v51, %v3616_v53  ;;  %v7873_v42 = vcombine.high %v3620_v23, %v3628_v0  ;;  %v7872_v10 = vcombine.low %v3620_v23, %v3628_v0 }
0x1779   :  { %5353 = vmatprep.subr.bf16.mxu1 %v7801_v29  ;;  %v3632_v20 = vld [vmem:[%s12310_s8 + $0x360] sm:$0xff] }
0x177a   :  { %v7881_v45 = vcombine.high %v3624_v61, %v3632_v20  ;;  %v3636_v44 = vld [vmem:[%s12310_s8 + $0x380] sm:$0xff]  ;;  %v7880_v54 = vcombine.low %v3624_v61, %v3632_v20 }
0x177b   :  { %5182 = vmatpush1.bf16.msra.mxu0 %v7792_v39  ;;  %5354 = vmatpush1.bf16.msra.mxu1 %v7800_v26  ;;  %v3644_v21 = vld [vmem:[%s12310_s8 + $0x3c0] sm:$0xff] }
0x177c   :  { %5183 = vmatprep.subr.bf16.mxu0 %v7809_v32  ;;  %5355 = vmatprep.subr.bf16.mxu1 %v7817_v22  ;;  %v3640_v14 = vld [vmem:[%s12310_s8 + $0x3a0] sm:$0xff]  ;;  %v7889_v1 = vcombine.high %v3636_v44, %v3644_v21  ;;  %v7888_v29 = vcombine.low %v3636_v44, %v3644_v21 }
0x177d   :  { %v3648_v38 = vld [vmem:[%s12310_s8 + $0x3e0] sm:$0xff] }
0x177e   :  { %v7897_v59 = vcombine.high %v3640_v14, %v3648_v38  ;;  %v3652_v49 = vld [vmem:[%s12310_s8 + $0x400] sm:$0xff]  ;;  %v7896_v16 = vcombine.low %v3640_v14, %v3648_v38 }
0x177f   :  { %5184 = vmatpush1.bf16.msra.mxu0 %v7808_v17  ;;  %5356 = vmatpush1.bf16.msra.mxu1 %v7816_v25  ;;  %v7905_v18 = vcombine.high %v3652_v49, %v3660_v6  ;;  %v3668_v39 = vld [vmem:[%s12310_s8 + $0x480] sm:$0xff]  ;;  %v7904_v28 = vcombine.low %v3652_v49, %v3660_v6 }
0x1780   :  { %5185 = vmatprep.subr.bf16.mxu0 %v7825_v36  ;;  %5357 = vmatprep.subr.bf16.mxu1 %v7833_v30  ;;  %v3676_v26 = vld [vmem:[%s12310_s8 + $0x4c0] sm:$0xff] }
0x1781   :  { %v3672_v32 = vld [vmem:[%s12310_s8 + $0x4a0] sm:$0xff]  ;;  %v7921_v27 = vcombine.high %v3668_v39, %v3676_v26  ;;  %v7920_v17 = vcombine.low %v3668_v39, %v3676_v26 }
0x1782   :  { %v3680_v22 = vld [vmem:[%s12310_s8 + $0x4e0] sm:$0xff] }
0x1783   :  { %5186 = vmatpush1.bf16.msra.mxu0 %v7824_v3  ;;  %5358 = vmatpush1.bf16.msra.mxu1 %v7832_v5  ;;  %v7929_v48 = vcombine.high %v3672_v32, %v3680_v22  ;;  %v7928_v25 = vcombine.low %v3672_v32, %v3680_v22  ;;  %v3700_v61 = vld [vmem:[%s12310_s8 + $0x580] sm:$0xff] }
0x1784   :  { %5187 = vmatprep.subr.bf16.mxu0 %v7841_v47  ;;  %5359 = vmatprep.subr.bf16.mxu1 %v7849_v34  ;;  %v3708_v20 = vld [vmem:[%s12310_s8 + $0x5c0] sm:$0xff] }
0x1785   :  { %v3716_v14 = vld [vmem:[%s12310_s8 + $0x600] sm:$0xff] }
0x1786   :  { %v3724_v38 = vld [vmem:[%s12310_s8 + $0x640] sm:$0xff] }
0x1787   :  { %5188 = vmatpush1.bf16.msra.mxu0 %v7840_v46  ;;  %5360 = vmatpush1.bf16.msra.mxu1 %v7848_v63  ;;  %v3688_v46 = vld [vmem:[%s12310_s8 + $0x520] sm:$0xff] }
0x1788   :  { %5189 = vmatprep.subr.bf16.mxu0 %v7857_v13  ;;  %5361 = vmatprep.subr.bf16.mxu1 %v7865_v62  ;;  %v3696_v13 = vld [vmem:[%s12310_s8 + $0x560] sm:$0xff] }
0x1789   :  { %v7944_v23 = vcombine.low %v3688_v46, %v3696_v13  ;;  %v7945_v0 = vcombine.high %v3688_v46, %v3696_v13  ;;  %v3748_v32 = vld [vmem:[%s12310_s8 + $0x700] sm:$0xff]  ;;  %v3538_v46 = vld [vmem:[%s12310_s8 + $0x70] sm:$0xff] }
0x178a   :  { %v3756_v22 = vld [vmem:[%s12310_s8 + $0x740] sm:$0xff] }
0x178b   :  { %5190 = vmatpush1.bf16.msra.mxu0 %v7856_v7  ;;  %5362 = vmatpush1.bf16.msra.mxu1 %v7864_v43  ;;  %v3704_v7 = vld [vmem:[%s12310_s8 + $0x5a0] sm:$0xff]  ;;  %v7953_v43 = vcombine.high %v3700_v61, %v3708_v20 }
0x178c   :  { %5191 = vmatprep.subr.bf16.mxu0 %v7873_v42  ;;  %5363 = vmatprep.subr.bf16.mxu1 %v7881_v45  ;;  %v3712_v42 = vld [vmem:[%s12310_s8 + $0x5e0] sm:$0xff]  ;;  %v7952_v45 = vcombine.low %v3700_v61, %v3708_v20 }
0x178d   :  { %v7960_v44 = vcombine.low %v3704_v7, %v3712_v42  ;;  %v7961_v21 = vcombine.high %v3704_v7, %v3712_v42  ;;  %v3453_v42 = vld [vmem:[%s12308_s6] sm:$0x3] }
0x178f   :  { %5192 = vmatpush1.bf16.msra.mxu0 %v7872_v10  ;;  %5364 = vmatpush1.bf16.msra.mxu1 %v7880_v54  ;;  %v3720_v10 = vld [vmem:[%s12310_s8 + $0x620] sm:$0xff]  ;;  %v7969_v54 = vcombine.high %v3716_v14, %v3724_v38 }
0x1790   :  { %5193 = vmatprep.subr.bf16.mxu0 %v7889_v1  ;;  %5365 = vmatprep.subr.bf16.mxu1 %v7897_v59  ;;  %v3728_v1 = vld [vmem:[%s12310_s8 + $0x660] sm:$0xff]  ;;  %v7968_v59 = vcombine.low %v3716_v14, %v3724_v38 }
0x1791   :  { %v7976_v49 = vcombine.low %v3720_v10, %v3728_v1  ;;  %v7977_v6 = vcombine.high %v3720_v10, %v3728_v1 }
0x1793   :  { %5194 = vmatpush1.bf16.msra.mxu0 %v7888_v29  ;;  %5366 = vmatpush1.bf16.msra.mxu1 %v7896_v16  ;;  %v3736_v29 = vld [vmem:[%s12310_s8 + $0x6a0] sm:$0xff]  ;;  %v7985_v16 = vcombine.high %v3732_v35, %v3740_v9 }
0x1794   :  { %5195 = vmatprep.subr.bf16.mxu0 %v7905_v18  ;;  %5367 = vmatprep.subr.bf16.mxu1 %v7913_v11  ;;  %v3744_v18 = vld [vmem:[%s12310_s8 + $0x6e0] sm:$0xff]  ;;  %v7984_v11 = vcombine.low %v3732_v35, %v3740_v9 }
0x1795   :  { %v7992_v39 = vcombine.low %v3736_v29, %v3744_v18  ;;  %v7993_v26 = vcombine.high %v3736_v29, %v3744_v18 }
0x1797   :  { %5196 = vmatpush1.bf16.msra.mxu0 %v7904_v28  ;;  %5368 = vmatpush1.bf16.msra.mxu1 %v7912_v31  ;;  %v3752_v28 = vld [vmem:[%s12310_s8 + $0x720] sm:$0xff]  ;;  %v8001_v31 = vcombine.high %v3748_v32, %v3756_v22 }
0x1798   :  { %5197 = vmatprep.subr.bf16.mxu0 %v7921_v27  ;;  %5369 = vmatprep.subr.bf16.mxu1 %v7929_v48  ;;  %v3760_v27 = vld [vmem:[%s12310_s8 + $0x760] sm:$0xff]  ;;  %v8000_v48 = vcombine.low %v3748_v32, %v3756_v22 }
0x179b   :  { %5198 = vmatpush1.bf16.msra.mxu0 %v7920_v17  ;;  %5370 = vmatpush1.bf16.msra.mxu1 %v7928_v25  ;;  %v8008_v17 = vcombine.low %v3752_v28, %v3760_v27  ;;  %v8009_v25 = vcombine.high %v3752_v28, %v3760_v27  ;;  %v3557_v28 = vld [vmem:[%s12310_s8 + $0x108] sm:$0xff] }
0x179c   :  { %5371 = vmatprep.subr.bf16.mxu1 %v7945_v0 }
0x179f   :  { %5372 = vmatpush1.bf16.msra.mxu1 %v7944_v23 }
0x17a0   :  { %5373 = vmatprep.subr.bf16.mxu1 %v7961_v21  ;;  %v3500_v21 = vrot.slane %v3453_v42, %v9902_v56 }
0x17a3   :  { %5374 = vmatpush1.bf16.msra.mxu1 %v7960_v44  ;;  %v3496_v44 = vrot.slane %v3453_v42, %v9926_v4 }
0x17a4   :  { %5375 = vmatprep.subr.bf16.mxu1 %v7977_v6 }
0x17a7   :  { %5376 = vmatpush1.bf16.msra.mxu1 %v7976_v49 }
0x17a8   :  { %5377 = vmatprep.subr.bf16.mxu1 %v7993_v26  ;;  %v3554_v26 = vld [vmem:[%s12310_s8 + $0xf0] sm:$0xff] }
0x17ab   :  { %5378 = vmatpush1.bf16.msra.mxu1 %v7992_v39  ;;  %v3541_v39 = vld [vmem:[%s12310_s8 + $0x88] sm:$0xff] }
0x17ac   :  { %5379 = vmatprep.subr.bf16.mxu1 %v8009_v25  ;;  %v3570_v25 = vld [vmem:[%s12310_s8 + $0x170] sm:$0xff] }
0x17af   :  { %5380 = vmatpush1.bf16.msra.mxu1 %v8008_v17  ;;  %v3562_v17 = vld [vmem:[%s12310_s8 + $0x130] sm:$0xff] }
0x1803   :  { %v3458_v36 = vpop.xlane.xlu1 %3457 }
0x1804   :  { %v3464_v30 = vmul.f32 0.004, %v3458_v36  ;;  %v3764_v36 = vld [vmem:[%s12310_s8 + $0x780] sm:$0xff] }
0x1805   :  { %v3462_v40 = vpop.xlane.xlu0 %3461 }
0x1806   :  { %v10677_v57 = vsub.f32 %v10542_v52, %v3464_v30  ;;  %v10680_v33 = vsub.f32 %v10539_v24, %v3464_v30  ;;  %v3465_v58 = vmul.f32 0.004, %v3462_v40  ;;  %v3772_v30 = vld [vmem:[%s12310_s8 + $0x7c0] sm:$0x11] }
0x1807   :  { %v3768_v40 = vld [vmem:[%s12310_s8 + $0x7a0] sm:$0xff] }
0x1808   :  { %v3470_v3 = vmul.f32 %v10677_v57, %v10677_v57  ;;  %v3471_v5 = vmul.f32 %v10680_v33, %v10680_v33  ;;  %v10687_v47 = vsub.f32 %v10550_v15, %v3465_v58  ;;  %v10690_v34 = vsub.f32 %v10547_v12, %v3465_v58  ;;  %v3684_v15 = vld [vmem:[%s12310_s8 + $0x500] sm:$0xff] }
0x1809   :  { %v3692_v12 = vld [vmem:[%s12310_s8 + $0x540] sm:$0xff]  ;;  %v8017_v58 = vcombine.high %v3764_v36, %v3772_v30 }
0x180a   :  { %v3472_v52 = vmul.f32 %v10687_v47, %v10687_v47  ;;  %v3473_v24 = vmul.f32 %v10690_v34, %v10690_v34  ;;  %v3474_v50 = vsel %vm685_vm1, %v3471_v5, 0.0  ;;  %v7937_v63 = vcombine.high %v3684_v15, %v3692_v12 }
0x180b   :  { %v3475_v41 = vadd.f32 %v3474_v50, %v3470_v3  ;;  %v7936_v62 = vcombine.low %v3684_v15, %v3692_v12  ;;  %v3776_v3 = vld [vmem:[%s12310_s8 + $0x7e0] sm:$0x11]  ;;  %v8016_v5 = vcombine.low %v3764_v36, %v3772_v30  ;;  %v3530_v15 = vld [vmem:[%s12310_s8 + $0x30] sm:$0xff] }
0x180c   :  { %v3478_v51 = vsel %vm685_vm1, %v3473_v24, 0.0  ;;  %5199 = vmatprep.subr.bf16.mxu0 %v7937_v63  ;;  %v8024_v24 = vcombine.low %v3768_v40, %v3776_v3  ;;  %v7788_v13 = vcombine.low %v3530_v15, %v3538_v46 }
0x180d   :  { %3476 = vadd.xlane.f32.xlu0 %v3475_v41  ;;  %v3479_v53 = vadd.f32 %v3478_v51, %v3472_v52  ;;  %5200 = vmatpush1.bf16.msra.mxu0 %v7936_v62  ;;  %v8025_v52 = vcombine.high %v3768_v40, %v3776_v3  ;;  %v5132_v50 = vsel %vm689_vm0, %v8016_v5, 0  ;;  %v3525_v51 = vld [vmem:[%s12310_s8 + $0x8] sm:$0xff]  ;;  %v7789_v62 = vcombine.high %v3530_v15, %v3538_v46  ;;  %v3594_v46 = vld [vmem:[%s12310_s8 + $0x230] sm:$0xff] }
0x180e   :  { %5201 = vmatprep.subr.bf16.mxu0 %v7953_v43  ;;  %v5156_v41 = vsel %vm689_vm0, %v8024_v24, 0  ;;  %v3573_v3 = vld [vmem:[%s12310_s8 + $0x188] sm:$0xff]  ;;  %v3586_v24 = vld [vmem:[%s12310_s8 + $0x1f0] sm:$0xff] }
0x180f   :  { %3480 = vadd.xlane.f32.xlu1 %v3479_v53  ;;  %8040 = vmatprep.subr.msk.bf16.mxu1 %vm689_vm0, %v8025_v52  ;;  %v3533_v53 = vld [vmem:[%s12310_s8 + $0x48] sm:$0xff]  ;;  %v3578_v52 = vld [vmem:[%s12310_s8 + $0x1b0] sm:$0xff] }
0x1810   :  { %5382 = vmatpush1.bf16.msra.mxu1 %v5156_v41  ;;  %v7779_v12 = vcombine.high %v3525_v51, %v3533_v53  ;;  %v7778_v63 = vcombine.low %v3525_v51, %v3533_v53  ;;  %v3581_v5 = vld [vmem:[%s12310_s8 + $0x1c8] sm:$0xff]  ;;  %v7820_v41 = vcombine.low %v3562_v17, %v3570_v25  ;;  %v7837_v53 = vcombine.high %v3578_v52, %v3586_v24 }
0x1811   :  { %5202 = vmatpush1.bf16.msra.mxu0 %v7952_v45  ;;  %5437 = vmatprep.subr.bf16.mxu1 %v7789_v62  ;;  %v3454_v45 = vld [vmem:[%s12309_s7] sm:$0x3]  ;;  %v7827_v51 = vcombine.high %v3573_v3, %v3581_v5  ;;  %v3589_v15 = vld [vmem:[%s12310_s8 + $0x208] sm:$0xff]  ;;  %v7836_v62 = vcombine.low %v3578_v52, %v3586_v24 }
0x1812   :  { %5203 = vmatprep.subr.bf16.mxu0 %v7969_v54  ;;  %v3511_v1 = vrot.slane %v3454_v45, %v9926_v4 }
0x1815   :  { %5204 = vmatpush1.bf16.msra.mxu0 %v7968_v59  ;;  %v3515_v59 = vrot.slane %v3454_v45, %v9902_v56 }
0x1816   :  { %5205 = vmatprep.subr.bf16.mxu0 %v7985_v16 }
0x1819   :  { %5206 = vmatpush1.bf16.msra.mxu0 %v7984_v11 }
0x181a   :  { %5207 = vmatprep.subr.bf16.mxu0 %v8001_v31 }
0x181d   :  { %5208 = vmatpush1.bf16.msra.mxu0 %v8000_v48  ;;  %v3565_v48 = vld [vmem:[%s12310_s8 + $0x148] sm:$0xff] }
0x181e   :  { %8032 = vmatprep.subr.msk.bf16.mxu0 %vm689_vm0, %v8017_v58  ;;  %v7811_v40 = vcombine.high %v3557_v28, %v3565_v48  ;;  %v7821_v58 = vcombine.high %v3562_v17, %v3570_v25 }
0x1821   :  { %5210 = vmatpush1.bf16.msra.mxu0 %v5132_v50  ;;  %v7810_v50 = vcombine.low %v3557_v28, %v3565_v48  ;;  %v3653_v28 = vld [vmem:[%s12310_s8 + $0x408] sm:$0xff]  ;;  %v3666_v48 = vld [vmem:[%s12310_s8 + $0x470] sm:$0xff] }
0x1822   :  { %5222 = vmatprep.subr.bf16.mxu0 %v7779_v12  ;;  %v3597_v12 = vld [vmem:[%s12310_s8 + $0x248] sm:$0xff] }
0x1823   :  { %v7842_v42 = vcombine.low %v3589_v15, %v3597_v12 }
0x189a   :  { %v3477_v23 = vpop.xlane.xlu0 %3476 }
0x189b   :  { %v3482_v0 = vmul.f32 0.004, %v3477_v23  ;;  %v7843_v23 = vcombine.high %v3589_v15, %v3597_v12  ;;  %v3690_v15 = vld [vmem:[%s12310_s8 + $0x530] sm:$0xff] }
0x189c   :  { %v3481_v61 = vpop.xlane.xlu1 %3480  ;;  %v3698_v12 = vld [vmem:[%s12310_s8 + $0x570] sm:$0xff] }
0x189d   :  { %v3484_v20 = vadd.f32 1e-05, %v3482_v0  ;;  %v3483_v7 = vmul.f32 0.004, %v3481_v61  ;;  %v3605_v61 = vld [vmem:[%s12310_s8 + $0x288] sm:$0xff] }
0x189f   :  { %9402 = vrsqrt.f32 %v3484_v20  ;;  %v3485_v43 = vadd.f32 1e-05, %v3483_v7  ;;  %v3613_v20 = vld [vmem:[%s12310_s8 + $0x2c8] sm:$0xff]  ;;  %v3610_v7 = vld [vmem:[%s12310_s8 + $0x2b0] sm:$0xff] }
0x18a1   :  { %9404 = vrsqrt.f32 %v3485_v43  ;;  %v3618_v43 = vld [vmem:[%s12310_s8 + $0x2f0] sm:$0xff] }
0x18a9   :  { %v9403_v14 = vpop.eup %9402 }
0x18aa   :  { %v3488_v38 = vmul.f32 %v9403_v14, %v10677_v57  ;;  %v3489_v10 = vmul.f32 %v9403_v14, %v10680_v33  ;;  %v3621_v14 = vld [vmem:[%s12310_s8 + $0x308] sm:$0xff] }
0x18ab   :  { %v9405_v54 = vpop.eup %9404 }
0x18ac   :  { %v3503_v49 = vmul.f32 %v3496_v44, %v3488_v38  ;;  %v3504_v6 = vmul.f32 %v3500_v21, %v3489_v10  ;;  %v3490_v35 = vmul.f32 %v9405_v54, %v10687_v47  ;;  %v3491_v9 = vmul.f32 %v9405_v54, %v10690_v34  ;;  %v3549_v47 = vld [vmem:[%s12310_s8 + $0xc8] sm:$0xff]  ;;  %v3546_v34 = vld [vmem:[%s12310_s8 + $0xb0] sm:$0xff] }
0x18ad   :  { %v7795_v31 = vcombine.high %v3541_v39, %v3549_v47  ;;  %v7805_v27 = vcombine.high %v3546_v34, %v3554_v26  ;;  %v7794_v36 = vcombine.low %v3541_v39, %v3549_v47  ;;  %v7804_v30 = vcombine.low %v3546_v34, %v3554_v26  ;;  %v3629_v38 = vld [vmem:[%s12310_s8 + $0x348] sm:$0xff]  ;;  %v3626_v10 = vld [vmem:[%s12310_s8 + $0x330] sm:$0xff] }
0x18ae   :  { %v3505_v29 = vmul.f32 %v3496_v44, %v3490_v35  ;;  %v3506_v16 = vmul.f32 %v3500_v21, %v3491_v9  ;;  %v10800_v18 = vadd.f32 %v3511_v1, %v3503_v49  ;;  %v10802_v11 = vadd.f32 %v3515_v59, %v3504_v6  ;;  %v3634_v54 = vld [vmem:[%s12310_s8 + $0x370] sm:$0xff]  ;;  %v3637_v35 = vld [vmem:[%s12310_s8 + $0x388] sm:$0xff] }
0x18af   :  { %v7859_v44 = vcombine.high %v3605_v61, %v3613_v20  ;;  %v7869_v21 = vcombine.high %v3610_v7, %v3618_v43  ;;  %v7875_v49 = vcombine.high %v3621_v14, %v3629_v38  ;;  %v7885_v6 = vcombine.high %v3626_v10, %v3634_v54  ;;  %v3645_v9 = vld [vmem:[%s12310_s8 + $0x3c8] sm:$0xff] }
0x18b0   :  { %v10804_v57 = vadd.f32 %v3511_v1, %v3505_v29  ;;  %v10806_v33 = vadd.f32 %v3515_v59, %v3506_v16  ;;  %v7858_v1 = vcombine.low %v3605_v61, %v3613_v20  ;;  %v7868_v59 = vcombine.low %v3610_v7, %v3618_v43  ;;  %v3642_v29 = vld [vmem:[%s12310_s8 + $0x3b0] sm:$0xff] }
0x18b1   :  { %v3650_v16 = vld [vmem:[%s12310_s8 + $0x3f0] sm:$0xff]  ;;  %v7874_v39 = vcombine.low %v3621_v14, %v3629_v38  ;;  %v7884_v47 = vcombine.low %v3626_v10, %v3634_v54  ;;  %v7891_v34 = vcombine.high %v3637_v35, %v3645_v9  ;;  %v7890_v17 = vcombine.low %v3637_v35, %v3645_v9 }
0x18b2   :  { %v10822_v32 = vpack.c.bf16 %v10804_v57, %v10800_v18  ;;  %v10826_v22 = vpack.c.bf16 %v10806_v33, %v10802_v11  ;;  %v7901_v26 = vcombine.high %v3642_v29, %v3650_v16  ;;  %v7900_v25 = vcombine.low %v3642_v29, %v3650_v16  ;;  %v3706_v61 = vld [vmem:[%s12310_s8 + $0x5b0] sm:$0xff] }
0x18b3   :  { %v3714_v20 = vld [vmem:[%s12310_s8 + $0x5f0] sm:$0xff]  ;;  %v7948_v43 = vcombine.low %v3690_v15, %v3698_v12 }
0x18b4   :  { %8033 = vmatprep.mubr.msk.bf16.mxu0 %vm685_vm1, %v10826_v22  ;;  %8041 = vmatprep.mubr.msk.bf16.mxu1 %vm685_vm1, %v10826_v22  ;;  %v3722_v14 = vld [vmem:[%s12310_s8 + $0x630] sm:$0xff]  ;;  %v7964_v54 = vcombine.low %v3706_v61, %v3714_v20 }
0x18b5   :  { %5212 = vmatmul.mubr.bf16.vlgmr.msra.gmra.mrb[96].mxu0 %v10822_v32  ;;  %5384 = vmatmul.mubr.bf16.vlgmr.msra.gmra.mrb[80].mxu1 %v10822_v32  ;;  %v3730_v38 = vld [vmem:[%s12310_s8 + $0x670] sm:$0xff] }
0x18b6   :  { %5223 = vmatpush1.bf16.msra.mxu0 %v7778_v63  ;;  %5438 = vmatpush1.bf16.msra.mxu1 %v7788_v13  ;;  %v3602_v63 = vld [vmem:[%s12310_s8 + $0x270] sm:$0xff]  ;;  %v7826_v13 = vcombine.low %v3573_v3, %v3581_v5  ;;  %v7980_v16 = vcombine.low %v3722_v14, %v3730_v38 }
0x18b7   :  { %8035 = vmatprep.mubr.msk.bf16.mxu0 %vm685_vm1, %v10826_v22  ;;  %8045 = vmatprep.mubr.msk.bf16.mxu1 %vm685_vm1, %v10826_v22  ;;  %v7853_v0 = vcombine.high %v3594_v46, %v3602_v63  ;;  %v7852_v45 = vcombine.low %v3594_v46, %v3602_v63  ;;  %v3674_v3 = vld [vmem:[%s12310_s8 + $0x4b0] sm:$0xff] }
0x18b8   :  { %5224 = vmatprep.subr.bf16.mxu0 %v7795_v31  ;;  %5439 = vmatprep.subr.bf16.mxu1 %v7805_v27  ;;  %v3661_v31 = vld [vmem:[%s12310_s8 + $0x448] sm:$0xff]  ;;  %v3658_v27 = vld [vmem:[%s12310_s8 + $0x430] sm:$0xff] }
0x18b9   :  { %v3682_v5 = vld [vmem:[%s12310_s8 + $0x4f0] sm:$0xff]  ;;  %v7906_v52 = vcombine.low %v3653_v28, %v3661_v31  ;;  %v7916_v24 = vcombine.low %v3658_v27, %v3666_v48 }
0x18ba   :  { %5225 = vmatpush1.bf16.msra.mxu0 %v7794_v36  ;;  %5440 = vmatpush1.bf16.msra.mxu1 %v7804_v30  ;;  %v7907_v36 = vcombine.high %v3653_v28, %v3661_v31  ;;  %v7917_v30 = vcombine.high %v3658_v27, %v3666_v48  ;;  %v7932_v63 = vcombine.low %v3674_v3, %v3682_v5  ;;  %v3738_v35 = vld [vmem:[%s12310_s8 + $0x6b0] sm:$0xff] }
0x18bb   :  { %5226 = vmatprep.subr.bf16.mxu0 %v7811_v40  ;;  %5441 = vmatprep.subr.bf16.mxu1 %v7821_v58  ;;  %v3669_v40 = vld [vmem:[%s12310_s8 + $0x488] sm:$0xff]  ;;  %v3746_v9 = vld [vmem:[%s12310_s8 + $0x6f0] sm:$0xff] }
0x18bc   :  { %v3677_v58 = vld [vmem:[%s12310_s8 + $0x4c8] sm:$0xff]  ;;  %v3754_v28 = vld [vmem:[%s12310_s8 + $0x730] sm:$0xff]  ;;  %v7996_v48 = vcombine.low %v3738_v35, %v3746_v9 }
0x18bd   :  { %v7922_v46 = vcombine.low %v3669_v40, %v3677_v58  ;;  %v3762_v31 = vld [vmem:[%s12310_s8 + $0x770] sm:$0xff] }
0x18be   :  { %5227 = vmatpush1.bf16.msra.mxu0 %v7810_v50  ;;  %5442 = vmatpush1.bf16.msra.mxu1 %v7820_v41  ;;  %v7923_v50 = vcombine.high %v3669_v40, %v3677_v58  ;;  %v7933_v41 = vcombine.high %v3674_v3, %v3682_v5  ;;  %v3770_v40 = vld [vmem:[%s12310_s8 + $0x7b0] sm:$0xff]  ;;  %v8012_v5 = vcombine.low %v3754_v28, %v3762_v31 }
0x18bf   :  { %5228 = vmatprep.subr.bf16.mxu0 %v7827_v51  ;;  %5443 = vmatprep.subr.bf16.mxu1 %v7837_v53  ;;  %v3685_v51 = vld [vmem:[%s12310_s8 + $0x508] sm:$0xff]  ;;  %v3778_v58 = vld [vmem:[%s12310_s8 + $0x7f0] sm:$0x11] }
0x18c0   :  { %v3693_v53 = vld [vmem:[%s12310_s8 + $0x548] sm:$0xff] }
0x18c1   :  { %v7938_v7 = vcombine.low %v3685_v51, %v3693_v53 }
0x18c2   :  { %5229 = vmatpush1.bf16.msra.mxu0 %v7826_v13  ;;  %5444 = vmatpush1.bf16.msra.mxu1 %v7836_v62  ;;  %v7939_v13 = vcombine.high %v3685_v51, %v3693_v53  ;;  %v7949_v62 = vcombine.high %v3690_v15, %v3698_v12  ;;  %v3526_v51 = vld [vmem:[%s12310_s8 + $0x10] sm:$0xff] }
0x18c3   :  { %5230 = vmatprep.subr.bf16.mxu0 %v7843_v23  ;;  %5445 = vmatprep.subr.bf16.mxu1 %v7853_v0  ;;  %v3701_v23 = vld [vmem:[%s12310_s8 + $0x588] sm:$0xff]  ;;  %v3534_v53 = vld [vmem:[%s12310_s8 + $0x50] sm:$0xff] }
0x18c4   :  { %v3709_v0 = vld [vmem:[%s12310_s8 + $0x5c8] sm:$0xff] }
0x18c5   :  { %v7954_v10 = vcombine.low %v3701_v23, %v3709_v0 }
0x18c6   :  { %5231 = vmatpush1.bf16.msra.mxu0 %v7842_v42  ;;  %5446 = vmatpush1.bf16.msra.mxu1 %v7852_v45  ;;  %v7955_v42 = vcombine.high %v3701_v23, %v3709_v0  ;;  %v7965_v45 = vcombine.high %v3706_v61, %v3714_v20  ;;  %v7780_v23 = vcombine.low %v3526_v51, %v3534_v53  ;;  %v8938_v61 = vld [vmem:[%s12312_s10] ss:$8 sps:$4 sm:$0xff]   ;;  %v3558_v20 = vld [vmem:[%s12310_s8 + $0x110] sm:$0xff] }
0x18c7   :  { %5232 = vmatprep.subr.bf16.mxu0 %v7859_v44  ;;  %5447 = vmatprep.subr.bf16.mxu1 %v7869_v21  ;;  %v3717_v44 = vld [vmem:[%s12310_s8 + $0x608] sm:$0xff] }
0x18c8   :  { %v3725_v21 = vld [vmem:[%s12310_s8 + $0x648] sm:$0xff] }
0x18c9   :  { %v7970_v29 = vcombine.low %v3717_v44, %v3725_v21 }
0x18ca   :  { %5233 = vmatpush1.bf16.msra.mxu0 %v7858_v1  ;;  %5448 = vmatpush1.bf16.msra.mxu1 %v7868_v59  ;;  %v7971_v1 = vcombine.high %v3717_v44, %v3725_v21  ;;  %v7981_v59 = vcombine.high %v3722_v14, %v3730_v38  ;;  %v8941_v44 = vld [vmem:[%s12312_s10 + $0x10] ss:$8 sps:$4 sm:$0xff]   ;;  %v8946_v38 = vld [vmem:[%s12312_s10 + $0x24] ss:$8 sps:$4 sm:$0xff]  }
0x18cb   :  { %5234 = vmatprep.subr.bf16.mxu0 %v7875_v49  ;;  %5449 = vmatprep.subr.bf16.mxu1 %v7885_v6  ;;  %v3733_v49 = vld [vmem:[%s12310_s8 + $0x688] sm:$0xff]  ;;  %v3574_v21 = vld [vmem:[%s12310_s8 + $0x190] sm:$0xff] }
0x18cc   :  { %v3741_v6 = vld [vmem:[%s12310_s8 + $0x6c8] sm:$0xff]  ;;  %v3582_v14 = vld [vmem:[%s12310_s8 + $0x1d0] sm:$0xff] }
0x18cd   :  { %v7986_v27 = vcombine.low %v3733_v49, %v3741_v6 }
0x18ce   :  { %5235 = vmatpush1.bf16.msra.mxu0 %v7874_v39  ;;  %5450 = vmatpush1.bf16.msra.mxu1 %v7884_v47  ;;  %v7987_v39 = vcombine.high %v3733_v49, %v3741_v6  ;;  %v7997_v47 = vcombine.high %v3738_v35, %v3746_v9  ;;  %v3598_v49 = vld [vmem:[%s12310_s8 + $0x250] sm:$0xff]  ;;  %v7828_v35 = vcombine.low %v3574_v21, %v3582_v14 }
0x18cf   :  { %5236 = vmatprep.subr.bf16.mxu0 %v7891_v34  ;;  %5451 = vmatprep.subr.bf16.mxu1 %v7901_v26  ;;  %v3749_v34 = vld [vmem:[%s12310_s8 + $0x708] sm:$0xff]  ;;  %v8949_v6 = vld [vmem:[%s12312_s10 + $0x34] ss:$8 sps:$4 sm:$0xff]  }
0x18d0   :  { %v3757_v26 = vld [vmem:[%s12310_s8 + $0x748] sm:$0xff] }
0x18d1   :  { %v8002_v3 = vcombine.low %v3749_v34, %v3757_v26 }
0x18d2   :  { %5237 = vmatpush1.bf16.msra.mxu0 %v7890_v17  ;;  %5452 = vmatpush1.bf16.msra.mxu1 %v7900_v25  ;;  %v8003_v17 = vcombine.high %v3749_v34, %v3757_v26  ;;  %v8013_v25 = vcombine.high %v3754_v28, %v3762_v31  ;;  %v8950_v28 = vld [vmem:[%s12312_s10 + $0x40] ss:$8 sps:$4 sm:$0xff]   ;;  %v3622_v31 = vld [vmem:[%s12310_s8 + $0x310] sm:$0xff] }
0x18d3   :  { %5238 = vmatprep.subr.bf16.mxu0 %v7907_v36  ;;  %5453 = vmatprep.subr.bf16.mxu1 %v7917_v30  ;;  %v3765_v36 = vld [vmem:[%s12310_s8 + $0x788] sm:$0xff] }
0x18d4   :  { %v3773_v30 = vld [vmem:[%s12310_s8 + $0x7c8] sm:$0x11] }
0x18d6   :  { %5239 = vmatpush1.bf16.msra.mxu0 %v7906_v52  ;;  %5454 = vmatpush1.bf16.msra.mxu1 %v7916_v24  ;;  %v8019_v52 = vcombine.high %v3765_v36, %v3773_v30  ;;  %v8029_v24 = vcombine.high %v3770_v40, %v3778_v58 }
0x18d7   :  { %5240 = vmatprep.subr.bf16.mxu0 %v7923_v50  ;;  %5455 = vmatprep.subr.bf16.mxu1 %v7933_v41  ;;  %v8018_v50 = vcombine.low %v3765_v36, %v3773_v30  ;;  %v8028_v41 = vcombine.low %v3770_v40, %v3778_v58  ;;  %v8953_v36 = vld [vmem:[%s12312_s10 + $0x50] ss:$8 sps:$4 sm:$0xff]   ;;  %v8958_v58 = vld [vmem:[%s12312_s10 + $0x64] ss:$8 sps:$4 sm:$0xff]  }
0x18d8   :  { %v3638_v30 = vld [vmem:[%s12310_s8 + $0x390] sm:$0xff] }
0x18d9   :  { %v5138_v15 = vsel %vm689_vm0, %v8018_v50, 0  ;;  %v5168_v12 = vsel %vm689_vm0, %v8028_v41, 0  ;;  %v3646_v40 = vld [vmem:[%s12310_s8 + $0x3d0] sm:$0xff] }
0x18da   :  { %5241 = vmatpush1.bf16.msra.mxu0 %v7922_v46  ;;  %5456 = vmatpush1.bf16.msra.mxu1 %v7932_v63  ;;  %v7781_v46 = vcombine.high %v3526_v51, %v3534_v53  ;;  %v8940_v63 = vld [vmem:[%s12312_s10 + $0x4] ss:$8 sps:$4 sm:$0xff]   ;;  %v3662_v50 = vld [vmem:[%s12310_s8 + $0x450] sm:$0xff]  ;;  %v7892_v51 = vcombine.low %v3638_v30, %v3646_v40 }
0x18db   :  { %5242 = vmatprep.subr.bf16.mxu0 %v7939_v13  ;;  %5457 = vmatprep.subr.bf16.mxu1 %v7949_v62  ;;  %v3542_v13 = vld [vmem:[%s12310_s8 + $0x90] sm:$0xff] }
0x18dc   :  { %v3550_v62 = vld [vmem:[%s12310_s8 + $0xd0] sm:$0xff] }
0x18dd   :  { %v7797_v0 = vcombine.high %v3542_v13, %v3550_v62  ;;  %v8961_v41 = vld [vmem:[%s12312_s10 + $0x74] ss:$8 sps:$4 sm:$0xff]  }
0x18de   :  { %5243 = vmatpush1.bf16.msra.mxu0 %v7938_v7  ;;  %5458 = vmatpush1.bf16.msra.mxu1 %v7948_v43  ;;  %v3566_v7 = vld [vmem:[%s12310_s8 + $0x150] sm:$0xff] }
0x18df   :  { %5244 = vmatprep.subr.bf16.mxu0 %v7955_v42  ;;  %5459 = vmatprep.subr.bf16.mxu1 %v7965_v45  ;;  %v8943_v43 = vld [vmem:[%s12312_s10 + $0x14] ss:$8 sps:$4 sm:$0xff]   ;;  %v7796_v42 = vcombine.low %v3542_v13, %v3550_v62  ;;  %v7813_v45 = vcombine.high %v3558_v20, %v3566_v7 }
0x18e2   :  { %5245 = vmatpush1.bf16.msra.mxu0 %v7954_v10  ;;  %5460 = vmatpush1.bf16.msra.mxu1 %v7964_v54  ;;  %v7812_v10 = vcombine.low %v3558_v20, %v3566_v7  ;;  %v7829_v54 = vcombine.high %v3574_v21, %v3582_v14  ;;  %v8967_v20 = vld [vmem:[%s12312_s10 + $0x94] ss:$8 sps:$4 sm:$0xff]   ;;  %v8970_v21 = vld [vmem:[%s12312_s10 + $0xa4] ss:$8 sps:$4 sm:$0xff]  }
0x18e3   :  { %5246 = vmatprep.subr.bf16.mxu0 %v7971_v1  ;;  %5461 = vmatprep.subr.bf16.mxu1 %v7981_v59  ;;  %v8944_v1 = vld [vmem:[%s12312_s10 + $0x20] ss:$8 sps:$4 sm:$0xff]   ;;  %v3590_v59 = vld [vmem:[%s12310_s8 + $0x210] sm:$0xff] }
0x18e4   :  { %v7845_v9 = vcombine.high %v3590_v59, %v3598_v49  ;;  %v7844_v34 = vcombine.low %v3590_v59, %v3598_v49  ;;  %v8973_v59 = vld [vmem:[%s12312_s10 + $0xb4] ss:$8 sps:$4 sm:$0xff]  }
0x18e6   :  { %5247 = vmatpush1.bf16.msra.mxu0 %v7970_v29  ;;  %5462 = vmatpush1.bf16.msra.mxu1 %v7980_v16  ;;  %v8947_v29 = vld [vmem:[%s12312_s10 + $0x30] ss:$8 sps:$4 sm:$0xff]  }
0x18e7   :  { %5248 = vmatprep.subr.bf16.mxu0 %v7987_v39  ;;  %5463 = vmatprep.subr.bf16.mxu1 %v7997_v47  ;;  %v3606_v16 = vld [vmem:[%s12310_s8 + $0x290] sm:$0xff]  ;;  %v8952_v47 = vld [vmem:[%s12312_s10 + $0x44] ss:$8 sps:$4 sm:$0xff]  }
0x18e8   :  { %v3614_v39 = vld [vmem:[%s12310_s8 + $0x2d0] sm:$0xff] }
0x18e9   :  { %v7861_v26 = vcombine.high %v3606_v16, %v3614_v39 }
0x18ea   :  { %5249 = vmatpush1.bf16.msra.mxu0 %v7986_v27  ;;  %5464 = vmatpush1.bf16.msra.mxu1 %v7996_v48  ;;  %v3630_v27 = vld [vmem:[%s12310_s8 + $0x350] sm:$0xff] }
0x18eb   :  { %5250 = vmatprep.subr.bf16.mxu0 %v8003_v17  ;;  %5465 = vmatprep.subr.bf16.mxu1 %v8013_v25  ;;  %v8955_v48 = vld [vmem:[%s12312_s10 + $0x54] ss:$8 sps:$4 sm:$0xff]   ;;  %v7860_v17 = vcombine.low %v3606_v16, %v3614_v39  ;;  %v7877_v25 = vcombine.high %v3622_v31, %v3630_v27  ;;  %v8976_v16 = vld [vmem:[%s12312_s10 + $0xc4] ss:$8 sps:$4 sm:$0xff]  }
0x18ee   :  { %5251 = vmatpush1.bf16.msra.mxu0 %v8002_v3  ;;  %5466 = vmatpush1.bf16.msra.mxu1 %v8012_v5  ;;  %v7876_v3 = vcombine.low %v3622_v31, %v3630_v27  ;;  %v7893_v5 = vcombine.high %v3638_v30, %v3646_v40  ;;  %v8979_v31 = vld [vmem:[%s12312_s10 + $0xd4] ss:$8 sps:$4 sm:$0xff]   ;;  %v8982_v30 = vld [vmem:[%s12312_s10 + $0xe4] ss:$8 sps:$4 sm:$0xff]  }
0x18ef   :  { %8034 = vmatprep.subr.msk.bf16.mxu0 %vm689_vm0, %v8019_v52  ;;  %8044 = vmatprep.subr.msk.bf16.mxu1 %vm689_vm0, %v8029_v24  ;;  %v8956_v52 = vld [vmem:[%s12312_s10 + $0x60] ss:$8 sps:$4 sm:$0xff]   ;;  %v3654_v24 = vld [vmem:[%s12310_s8 + $0x410] sm:$0xff] }
0x18f0   :  { %v7909_v53 = vcombine.high %v3654_v24, %v3662_v50  ;;  %v7908_v13 = vcombine.low %v3654_v24, %v3662_v50  ;;  %v3535_v24 = vld [vmem:[%s12310_s8 + $0x58] sm:$0xff] }
0x18f1   :  { %v8985_v50 = vld [vmem:[%s12312_s10 + $0xf4] ss:$8 sps:$4 sm:$0xff]  }
0x18f2   :  { %5253 = vmatpush1.bf16.msra.mxu0 %v5138_v15  ;;  %5468 = vmatpush1.bf16.msra.mxu1 %v5168_v12  ;;  %v8959_v15 = vld [vmem:[%s12312_s10 + $0x70] ss:$8 sps:$4 sm:$0xff]  }
0x18f3   :  { %5265 = vmatprep.subr.bf16.mxu0 %v7781_v46  ;;  %7119 = vmatprep.subr.bf16.mxu1 %v8940_v63  ;;  %v3670_v12 = vld [vmem:[%s12310_s8 + $0x490] sm:$0xff]  ;;  %v8964_v63 = vld [vmem:[%s12312_s10 + $0x84] ss:$8 sps:$4 sm:$0xff]  }
0x18f4   :  { %v3678_v46 = vld [vmem:[%s12310_s8 + $0x4d0] sm:$0xff] }
0x18f5   :  { %5255 = vmatmul.mubr.bf16.vlgmr.msra.gmra.mrb[100].mxu0 %v10822_v32  ;;  %5470 = vmatmul.mubr.bf16.vlgmr.msra.gmra.mrb[84].mxu1 %v10822_v32  ;;  %v7925_v62 = vcombine.high %v3670_v12, %v3678_v46  ;;  %v7924_v7 = vcombine.low %v3670_v12, %v3678_v46  ;;  %v3551_v12 = vld [vmem:[%s12310_s8 + $0xd8] sm:$0xff]  ;;  %v8988_v46 = vld [vmem:[%s12312_s10 + $0x104] ss:$8 sps:$4 sm:$0xff]  }
0x18f6   :  { %5266 = vmatpush1.bf16.msra.mxu0 %v7780_v23  ;;  %8037 = vmatprep.mubr.msk.bf16.mxu0 %vm685_vm1, %v10826_v22  ;;  %v8962_v23 = vld [vmem:[%s12312_s10 + $0x80] ss:$8 sps:$4 sm:$0xff]  }
0x18f7   :  { %5267 = vmatprep.subr.bf16.mxu0 %v7797_v0  ;;  %7120 = vmatpush1.bf16.msra.mxu1 %v8938_v61  ;;  %v3686_v0 = vld [vmem:[%s12310_s8 + $0x510] sm:$0xff] }
0x18f8   :  { %7121 = vmatprep.subr.bf16.mxu1 %v8943_v43  ;;  %v3694_v61 = vld [vmem:[%s12310_s8 + $0x550] sm:$0xff] }
0x18f9   :  { %v7941_v43 = vcombine.high %v3686_v0, %v3694_v61  ;;  %v7940_v14 = vcombine.low %v3686_v0, %v3694_v61 }
0x18fa   :  { %5268 = vmatpush1.bf16.msra.mxu0 %v7796_v42  ;;  %v8965_v42 = vld [vmem:[%s12312_s10 + $0x90] ss:$8 sps:$4 sm:$0xff]  }
0x18fb   :  { %5269 = vmatprep.subr.bf16.mxu0 %v7813_v45  ;;  %7122 = vmatpush1.bf16.msra.mxu1 %v8941_v44  ;;  %v3702_v45 = vld [vmem:[%s12310_s8 + $0x590] sm:$0xff] }
0x18fc   :  { %7123 = vmatprep.subr.bf16.mxu1 %v8946_v38  ;;  %v3710_v44 = vld [vmem:[%s12310_s8 + $0x5d0] sm:$0xff] }
0x18fd   :  { %v7957_v38 = vcombine.high %v3702_v45, %v3710_v44  ;;  %v7956_v49 = vcombine.low %v3702_v45, %v3710_v44  ;;  %v3591_v45 = vld [vmem:[%s12310_s8 + $0x218] sm:$0xff] }
0x18fe   :  { %5270 = vmatpush1.bf16.msra.mxu0 %v7812_v10  ;;  %v8968_v10 = vld [vmem:[%s12312_s10 + $0xa0] ss:$8 sps:$4 sm:$0xff]   ;;  %v3599_v44 = vld [vmem:[%s12310_s8 + $0x258] sm:$0xff] }
0x18ff   :  { %5271 = vmatprep.subr.bf16.mxu0 %v7829_v54  ;;  %7124 = vmatpush1.bf16.msra.mxu1 %v8944_v1  ;;  %v3718_v54 = vld [vmem:[%s12310_s8 + $0x610] sm:$0xff] }
0x1900   :  { %7125 = vmatprep.subr.bf16.mxu1 %v8949_v6  ;;  %v3726_v1 = vld [vmem:[%s12310_s8 + $0x650] sm:$0xff] }
0x1901   :  { %v7973_v6 = vcombine.high %v3718_v54, %v3726_v1  ;;  %v7972_v39 = vcombine.low %v3718_v54, %v3726_v1  ;;  %v7846_v54 = vcombine.low %v3591_v45, %v3599_v44 }
0x1902   :  { %5272 = vmatpush1.bf16.msra.mxu0 %v7828_v35  ;;  %v8971_v35 = vld [vmem:[%s12312_s10 + $0xb0] ss:$8 sps:$4 sm:$0xff]  }
0x1903   :  { %5273 = vmatprep.subr.bf16.mxu0 %v7845_v9  ;;  %7126 = vmatpush1.bf16.msra.mxu1 %v8947_v29  ;;  %v3734_v9 = vld [vmem:[%s12310_s8 + $0x690] sm:$0xff] }
0x1904   :  { %7127 = vmatprep.subr.bf16.mxu1 %v8952_v47  ;;  %v3742_v29 = vld [vmem:[%s12310_s8 + $0x6d0] sm:$0xff] }
0x1905   :  { %v7989_v47 = vcombine.high %v3734_v9, %v3742_v29  ;;  %v7988_v27 = vcombine.low %v3734_v9, %v3742_v29  ;;  %v3639_v9 = vld [vmem:[%s12310_s8 + $0x398] sm:$0xff] }
0x1906   :  { %5274 = vmatpush1.bf16.msra.mxu0 %v7844_v34  ;;  %v8974_v34 = vld [vmem:[%s12312_s10 + $0xc0] ss:$8 sps:$4 sm:$0xff]   ;;  %v3647_v29 = vld [vmem:[%s12310_s8 + $0x3d8] sm:$0xff] }
0x1907   :  { %5275 = vmatprep.subr.bf16.mxu0 %v7861_v26  ;;  %7128 = vmatpush1.bf16.msra.mxu1 %v8950_v28  ;;  %v3750_v26 = vld [vmem:[%s12310_s8 + $0x710] sm:$0xff] }
0x1908   :  { %7129 = vmatprep.subr.bf16.mxu1 %v8955_v48  ;;  %v3758_v28 = vld [vmem:[%s12310_s8 + $0x750] sm:$0xff] }
0x1909   :  { %v8005_v48 = vcombine.high %v3750_v26, %v3758_v28  ;;  %v8004_v40 = vcombine.low %v3750_v26, %v3758_v28  ;;  %v7894_v26 = vcombine.low %v3639_v9, %v3647_v29 }
0x190a   :  { %5276 = vmatpush1.bf16.msra.mxu0 %v7860_v17  ;;  %v8977_v17 = vld [vmem:[%s12312_s10 + $0xd0] ss:$8 sps:$4 sm:$0xff]  }
0x190b   :  { %5277 = vmatprep.subr.bf16.mxu0 %v7877_v25  ;;  %7130 = vmatpush1.bf16.msra.mxu1 %v8953_v36  ;;  %v3766_v25 = vld [vmem:[%s12310_s8 + $0x790] sm:$0xff] }
0x190c   :  { %7131 = vmatprep.subr.bf16.mxu1 %v8958_v58  ;;  %v3774_v36 = vld [vmem:[%s12310_s8 + $0x7d0] sm:$0x11] }
0x190d   :  { %v8021_v58 = vcombine.high %v3766_v25, %v3774_v36 }
0x190e   :  { %5278 = vmatpush1.bf16.msra.mxu0 %v7876_v3  ;;  %v8020_v3 = vcombine.low %v3766_v25, %v3774_v36  ;;  %v3687_v25 = vld [vmem:[%s12310_s8 + $0x518] sm:$0xff] }
0x190f   :  { %5279 = vmatprep.subr.bf16.mxu0 %v7893_v5  ;;  %7132 = vmatpush1.bf16.msra.mxu1 %v8956_v52  ;;  %v8980_v5 = vld [vmem:[%s12312_s10 + $0xe0] ss:$8 sps:$4 sm:$0xff]   ;;  %v3527_v52 = vld [vmem:[%s12310_s8 + $0x18] sm:$0xff] }
0x1910   :  { %7133 = vmatprep.subr.bf16.mxu1 %v8961_v41  ;;  %v5144_v41 = vsel %vm689_vm0, %v8020_v3, 0  ;;  %v3695_v36 = vld [vmem:[%s12310_s8 + $0x558] sm:$0xff] }
0x1911   :  { %v3711_v3 = vld [vmem:[%s12310_s8 + $0x5d8] sm:$0xff] }
0x1912   :  { %5280 = vmatpush1.bf16.msra.mxu0 %v7892_v51  ;;  %v7783_v51 = vcombine.high %v3527_v52, %v3535_v24 }
0x1913   :  { %5281 = vmatprep.subr.bf16.mxu0 %v7909_v53  ;;  %7134 = vmatpush1.bf16.msra.mxu1 %v8959_v15  ;;  %v8983_v53 = vld [vmem:[%s12312_s10 + $0xf0] ss:$8 sps:$4 sm:$0xff]  }
0x1914   :  { %7135 = vmatprep.subr.bf16.mxu1 %v8964_v63  ;;  %v3543_v15 = vld [vmem:[%s12310_s8 + $0x98] sm:$0xff]  ;;  %v7782_v63 = vcombine.low %v3527_v52, %v3535_v24 }
0x1915   :  { %v7798_v0 = vcombine.low %v3543_v15, %v3551_v12  ;;  %v3719_v24 = vld [vmem:[%s12310_s8 + $0x618] sm:$0xff] }
0x1916   :  { %5282 = vmatpush1.bf16.msra.mxu0 %v7908_v13  ;;  %v7799_v13 = vcombine.high %v3543_v15, %v3551_v12  ;;  %v3743_v15 = vld [vmem:[%s12310_s8 + $0x6d8] sm:$0xff] }
0x1917   :  { %5283 = vmatprep.subr.bf16.mxu0 %v7925_v62  ;;  %7136 = vmatpush1.bf16.msra.mxu1 %v8962_v23  ;;  %v3559_v62 = vld [vmem:[%s12310_s8 + $0x118] sm:$0xff] }
0x1918   :  { %7137 = vmatprep.subr.bf16.mxu1 %v8967_v20  ;;  %v3567_v23 = vld [vmem:[%s12310_s8 + $0x158] sm:$0xff] }
0x1919   :  { %v7815_v61 = vcombine.high %v3559_v62, %v3567_v23  ;;  %v3575_v20 = vld [vmem:[%s12310_s8 + $0x198] sm:$0xff] }
0x191a   :  { %5284 = vmatpush1.bf16.msra.mxu0 %v7924_v7  ;;  %v3583_v7 = vld [vmem:[%s12310_s8 + $0x1d8] sm:$0xff] }
0x191b   :  { %5285 = vmatprep.subr.bf16.mxu0 %v7941_v43  ;;  %7138 = vmatpush1.bf16.msra.mxu1 %v8965_v42  ;;  %v7814_v43 = vcombine.low %v3559_v62, %v3567_v23  ;;  %v7831_v42 = vcombine.high %v3575_v20, %v3583_v7 }
0x191c   :  { %7139 = vmatprep.subr.bf16.mxu1 %v8970_v21  ;;  %v7830_v21 = vcombine.low %v3575_v20, %v3583_v7 }
0x191e   :  { %5286 = vmatpush1.bf16.msra.mxu0 %v7940_v14  ;;  %v7847_v14 = vcombine.high %v3591_v45, %v3599_v44  ;;  %v3537_v45 = vld [vmem:[%s12310_s8 + $0x68] sm:$0xff] }
0x191f   :  { %5287 = vmatprep.subr.bf16.mxu0 %v7957_v38  ;;  %7140 = vmatpush1.bf16.msra.mxu1 %v8968_v10  ;;  %v3607_v38 = vld [vmem:[%s12310_s8 + $0x298] sm:$0xff] }
0x1920   :  { %7141 = vmatprep.subr.bf16.mxu1 %v8973_v59  ;;  %v3615_v10 = vld [vmem:[%s12310_s8 + $0x2d8] sm:$0xff] }
0x1921   :  { %v7863_v1 = vcombine.high %v3607_v38, %v3615_v10  ;;  %v3623_v59 = vld [vmem:[%s12310_s8 + $0x318] sm:$0xff] }
0x1922   :  { %5288 = vmatpush1.bf16.msra.mxu0 %v7956_v49  ;;  %v3631_v49 = vld [vmem:[%s12310_s8 + $0x358] sm:$0xff] }
0x1923   :  { %5289 = vmatprep.subr.bf16.mxu0 %v7973_v6  ;;  %7142 = vmatpush1.bf16.msra.mxu1 %v8971_v35  ;;  %v7862_v6 = vcombine.low %v3607_v38, %v3615_v10  ;;  %v7879_v35 = vcombine.high %v3623_v59, %v3631_v49  ;;  %v3553_v38 = vld [vmem:[%s12310_s8 + $0xe8] sm:$0xff] }
0x1924   :  { %7143 = vmatprep.subr.bf16.mxu1 %v8976_v16  ;;  %v7878_v16 = vcombine.low %v3623_v59, %v3631_v49  ;;  %v3569_v59 = vld [vmem:[%s12310_s8 + $0x168] sm:$0xff] }
0x1926   :  { %5290 = vmatpush1.bf16.msra.mxu0 %v7972_v39  ;;  %v7895_v39 = vcombine.high %v3639_v9, %v3647_v29  ;;  %v3585_v9 = vld [vmem:[%s12310_s8 + $0x1e8] sm:$0xff] }
0x1927   :  { %5291 = vmatprep.subr.bf16.mxu0 %v7989_v47  ;;  %7144 = vmatpush1.bf16.msra.mxu1 %v8974_v34  ;;  %v3655_v47 = vld [vmem:[%s12310_s8 + $0x418] sm:$0xff] }
0x1928   :  { %7145 = vmatprep.subr.bf16.mxu1 %v8979_v31  ;;  %v3663_v34 = vld [vmem:[%s12310_s8 + $0x458] sm:$0xff] }
0x1929   :  { %v7911_v28 = vcombine.high %v3655_v47, %v3663_v34  ;;  %v3671_v31 = vld [vmem:[%s12310_s8 + $0x498] sm:$0xff] }
0x192a   :  { %5292 = vmatpush1.bf16.msra.mxu0 %v7988_v27  ;;  %v3679_v27 = vld [vmem:[%s12310_s8 + $0x4d8] sm:$0xff] }
0x192b   :  { %5293 = vmatprep.subr.bf16.mxu0 %v8005_v48  ;;  %7146 = vmatpush1.bf16.msra.mxu1 %v8977_v17  ;;  %v7910_v48 = vcombine.low %v3655_v47, %v3663_v34  ;;  %v7927_v17 = vcombine.high %v3671_v31, %v3679_v27  ;;  %v3601_v47 = vld [vmem:[%s12310_s8 + $0x268] sm:$0xff] }
0x192c   :  { %7147 = vmatprep.subr.bf16.mxu1 %v8982_v30  ;;  %v7926_v30 = vcombine.low %v3671_v31, %v3679_v27  ;;  %v3617_v31 = vld [vmem:[%s12310_s8 + $0x2e8] sm:$0xff] }
0x192e   :  { %5294 = vmatpush1.bf16.msra.mxu0 %v8004_v40  ;;  %v7943_v40 = vcombine.high %v3687_v25, %v3695_v36 }
0x192f   :  { %8036 = vmatprep.subr.msk.bf16.mxu0 %vm689_vm0, %v8021_v58  ;;  %7148 = vmatpush1.bf16.msra.mxu1 %v8980_v5  ;;  %v3703_v58 = vld [vmem:[%s12310_s8 + $0x598] sm:$0xff]  ;;  %v7942_v5 = vcombine.low %v3687_v25, %v3695_v36  ;;  %v3625_v36 = vld [vmem:[%s12310_s8 + $0x328] sm:$0xff] }
0x1930   :  { %7149 = vmatprep.subr.bf16.mxu1 %v8985_v50  ;;  %v7959_v52 = vcombine.high %v3703_v58, %v3711_v3  ;;  %v3727_v50 = vld [vmem:[%s12310_s8 + $0x658] sm:$0xff] }
0x1931   :  { %v7974_v12 = vcombine.low %v3719_v24, %v3727_v50 }
0x1932   :  { %5296 = vmatpush1.bf16.msra.mxu0 %v5144_v41  ;;  %v7958_v41 = vcombine.low %v3703_v58, %v3711_v3 }
0x1933   :  { %5308 = vmatprep.subr.bf16.mxu0 %v7783_v51  ;;  %7150 = vmatpush1.bf16.msra.mxu1 %v8983_v53  ;;  %v7975_v51 = vcombine.high %v3719_v24, %v3727_v50  ;;  %v3735_v53 = vld [vmem:[%s12310_s8 + $0x698] sm:$0xff] }
0x1934   :  { %7162 = vmatprep.subr.bf16.mxu1 %v8988_v46  ;;  %v7991_v46 = vcombine.high %v3735_v53, %v3743_v15  ;;  %v7990_v62 = vcombine.low %v3735_v53, %v3743_v15  ;;  %v3649_v53 = vld [vmem:[%s12310_s8 + $0x3e8] sm:$0xff] }
0x1935   :  { %5298 = vmatmul.mubr.bf16.vlgmr.msra.gmra.mrb[104].mxu0 %v10822_v32 }
0x1936   :  { %5309 = vmatpush1.bf16.msra.mxu0 %v7782_v63  ;;  %8039 = vmatprep.mubr.msk.bf16.mxu0 %vm685_vm1, %v10826_v22  ;;  %v3751_v63 = vld [vmem:[%s12310_s8 + $0x718] sm:$0xff] }
0x1937   :  { %5310 = vmatprep.subr.bf16.mxu0 %v7799_v13  ;;  %v3759_v13 = vld [vmem:[%s12310_s8 + $0x758] sm:$0xff] }
0x1938   :  { %v8007_v23 = vcombine.high %v3751_v63, %v3759_v13  ;;  %v8006_v20 = vcombine.low %v3751_v63, %v3759_v13 }
0x193a   :  { %5311 = vmatpush1.bf16.msra.mxu0 %v7798_v0  ;;  %v3767_v0 = vld [vmem:[%s12310_s8 + $0x798] sm:$0xff] }
0x193b   :  { %5312 = vmatprep.subr.bf16.mxu0 %v7815_v61  ;;  %v3775_v61 = vld [vmem:[%s12310_s8 + $0x7d8] sm:$0x11] }
0x193c   :  { %v8023_v7 = vcombine.high %v3767_v0, %v3775_v61 }
0x193e   :  { %5313 = vmatpush1.bf16.msra.mxu0 %v7814_v43  ;;  %v8022_v43 = vcombine.low %v3767_v0, %v3775_v61 }
0x193f   :  { %5314 = vmatprep.subr.bf16.mxu0 %v7831_v42  ;;  %v3529_v42 = vld [vmem:[%s12310_s8 + $0x28] sm:$0xff] }
0x1940   :  { %v5150_v44 = vsel %vm689_vm0, %v8022_v43, 0  ;;  %v7786_v10 = vcombine.low %v3529_v42, %v3537_v45 }
0x1942   :  { %5315 = vmatpush1.bf16.msra.mxu0 %v7830_v21  ;;  %v7787_v21 = vcombine.high %v3529_v42, %v3537_v45 }
0x1943   :  { %5316 = vmatprep.subr.bf16.mxu0 %v7847_v14  ;;  %v3545_v14 = vld [vmem:[%s12310_s8 + $0xa8] sm:$0xff] }
0x1944   :  { %v7802_v49 = vcombine.low %v3545_v14, %v3553_v38 }
0x1946   :  { %5317 = vmatpush1.bf16.msra.mxu0 %v7846_v54  ;;  %v7803_v54 = vcombine.high %v3545_v14, %v3553_v38  ;;  %v3657_v38 = vld [vmem:[%s12310_s8 + $0x428] sm:$0xff] }
0x1947   :  { %5318 = vmatprep.subr.bf16.mxu0 %v7863_v1  ;;  %v3561_v1 = vld [vmem:[%s12310_s8 + $0x128] sm:$0xff] }
0x1948   :  { %v7818_v29 = vcombine.low %v3561_v1, %v3569_v59 }
0x194a   :  { %5319 = vmatpush1.bf16.msra.mxu0 %v7862_v6  ;;  %v7819_v6 = vcombine.high %v3561_v1, %v3569_v59 }
0x194b   :  { %5320 = vmatprep.subr.bf16.mxu0 %v7879_v35  ;;  %v3577_v35 = vld [vmem:[%s12310_s8 + $0x1a8] sm:$0xff] }
0x194c   :  { %v7834_v34 = vcombine.low %v3577_v35, %v3585_v9 }
0x194e   :  { %5321 = vmatpush1.bf16.msra.mxu0 %v7878_v16  ;;  %v7835_v16 = vcombine.high %v3577_v35, %v3585_v9 }
0x194f   :  { %5322 = vmatprep.subr.bf16.mxu0 %v7895_v39  ;;  %v3593_v39 = vld [vmem:[%s12310_s8 + $0x228] sm:$0xff] }
0x1950   :  { %v7850_v27 = vcombine.low %v3593_v39, %v3601_v47 }
0x1952   :  { %5323 = vmatpush1.bf16.msra.mxu0 %v7894_v26  ;;  %v7851_v26 = vcombine.high %v3593_v39, %v3601_v47 }
0x1953   :  { %5324 = vmatprep.subr.bf16.mxu0 %v7911_v28  ;;  %v3609_v28 = vld [vmem:[%s12310_s8 + $0x2a8] sm:$0xff] }
0x1954   :  { %v7867_v25 = vcombine.high %v3609_v28, %v3617_v31  ;;  %v7866_v3 = vcombine.low %v3609_v28, %v3617_v31  ;;  %v8986_v28 = vld [vmem:[%s12312_s10 + $0x100] ss:$8 sps:$4 sm:$0xff]  }
0x1955   :  { %v3673_v31 = vld [vmem:[%s12310_s8 + $0x4a8] sm:$0xff] }
0x1956   :  { %5325 = vmatpush1.bf16.msra.mxu0 %v7910_v48  ;;  %v11354_v48 = vld [vmem:[%s12311_s9] sm:$0xff] }
0x1957   :  { %5326 = vmatprep.subr.bf16.mxu0 %v7927_v17  ;;  %v11359_v17 = vld [vmem:[%s12311_s9 + $0x8] sm:$0xff] }
0x1958   :  { %v3819_v58 = vrot.slane %v11359_v17, %v9926_v4 }
0x195a   :  { %5327 = vmatpush1.bf16.msra.mxu0 %v7926_v30  ;;  %v3633_v30 = vld [vmem:[%s12310_s8 + $0x368] sm:$0xff] }
0x195b   :  { %5328 = vmatprep.subr.bf16.mxu0 %v7943_v40  ;;  %v3787_v40 = vrot.slane %v11354_v48, %v9926_v4  ;;  %v7883_v24 = vcombine.high %v3625_v36, %v3633_v30  ;;  %v7882_v61 = vcombine.low %v3625_v36, %v3633_v30 }
0x195e   :  { %5329 = vmatpush1.bf16.msra.mxu0 %v7942_v5  ;;  %v3791_v5 = vrot.slane %v11354_v48, %v9902_v56 }
0x195f   :  { %5330 = vmatprep.subr.bf16.mxu0 %v7959_v52  ;;  %v3823_v52 = vrot.slane %v11359_v17, %v9902_v56 }
0x1962   :  { %5331 = vmatpush1.bf16.msra.mxu0 %v7958_v41 }
0x1963   :  { %5332 = vmatprep.subr.bf16.mxu0 %v7975_v51  ;;  %v3641_v51 = vld [vmem:[%s12310_s8 + $0x3a8] sm:$0xff] }
0x1964   :  { %v7899_v45 = vcombine.high %v3641_v51, %v3649_v53  ;;  %v7898_v14 = vcombine.low %v3641_v51, %v3649_v53  ;;  %v3713_v51 = vld [vmem:[%s12310_s8 + $0x5e8] sm:$0xff]  ;;  %v8997_v53 = vld [vmem:[%s12312_s10 + $0x134] ss:$8 sps:$4 sm:$0xff]  }
0x1966   :  { %5333 = vmatpush1.bf16.msra.mxu0 %v7974_v12 }
0x1967   :  { %5334 = vmatprep.subr.bf16.mxu0 %v7991_v46 }
0x196a   :  { %5335 = vmatpush1.bf16.msra.mxu0 %v7990_v62 }
0x196b   :  { %5336 = vmatprep.subr.bf16.mxu0 %v8007_v23 }
0x196e   :  { %5337 = vmatpush1.bf16.msra.mxu0 %v8006_v20 }
0x196f   :  { %8038 = vmatprep.subr.msk.bf16.mxu0 %vm689_vm0, %v8023_v7 }
0x1972   :  { %5339 = vmatpush1.bf16.msra.mxu0 %v5150_v44 }
0x1973   :  { %5394 = vmatprep.subr.bf16.mxu0 %v7787_v21 }
0x1975   :  { %5341 = vmatmul.mubr.bf16.vlgmr.msra.gmra.mrb[108].mxu0 %v10822_v32 }
0x1976   :  { %5395 = vmatpush1.bf16.msra.mxu0 %v7786_v10  ;;  %8043 = vmatprep.mubr.msk.bf16.mxu0 %vm685_vm1, %v10826_v22  ;;  %v3665_v10 = vld [vmem:[%s12310_s8 + $0x468] sm:$0xff] }
0x1977   :  { %5396 = vmatprep.subr.bf16.mxu0 %v7803_v54  ;;  %v7915_v47 = vcombine.high %v3657_v38, %v3665_v10  ;;  %v7914_v36 = vcombine.low %v3657_v38, %v3665_v10  ;;  %v9006_v38 = vld [vmem:[%s12312_s10 + $0x164] ss:$8 sps:$4 sm:$0xff]  }
0x197a   :  { %5397 = vmatpush1.bf16.msra.mxu0 %v7802_v49 }
0x197b   :  { %5398 = vmatprep.subr.bf16.mxu0 %v7819_v6 }
0x197e   :  { %5399 = vmatpush1.bf16.msra.mxu0 %v7818_v29 }
0x197f   :  { %5400 = vmatprep.subr.bf16.mxu0 %v7835_v16 }
0x1982   :  { %5401 = vmatpush1.bf16.msra.mxu0 %v7834_v34 }
0x1983   :  { %5402 = vmatprep.subr.bf16.mxu0 %v7851_v26 }
0x1986   :  { %5403 = vmatpush1.bf16.msra.mxu0 %v7850_v27  ;;  %v3681_v27 = vld [vmem:[%s12310_s8 + $0x4e8] sm:$0xff] }
0x1987   :  { %5404 = vmatprep.subr.bf16.mxu0 %v7867_v25  ;;  %v8991_v25 = vld [vmem:[%s12312_s10 + $0x114] ss:$8 sps:$4 sm:$0xff]   ;;  %v7931_v30 = vcombine.high %v3673_v31, %v3681_v27 }
0x1988   :  { %v5213_v50 = vpop.f32.mrb[96].mxu0  ;;  %v5385_v41 = vpop.f32.mrb[80].mxu1 }
0x1989   :  { %v5214_v15 = vadd.f32 %v5213_v50, %v3787_v40  ;;  %v5386_v12 = vadd.f32 %v5385_v41, %v3819_v58  ;;  %v5215_v46 = vpop.f32.mrb[97].mxu0  ;;  %v5387_v63 = vpop.f32.mrb[81].mxu1  ;;  %v8992_v50 = vld [vmem:[%s12312_s10 + $0x120] ss:$8 sps:$4 sm:$0xff]  }
0x198a   :  { %v5216_v13 = vadd.f32 %v5215_v46, %v3791_v5  ;;  %v5388_v62 = vadd.f32 %v5387_v63, %v3823_v52  ;;  %5405 = vmatpush1.bf16.msra.mxu0 %v7866_v3  ;;  %v5217_v23 = vpop.f32.mrb[98].mxu0  ;;  %v5389_v0 = vpop.f32.mrb[82].mxu1  ;;  %v3697_v3 = vld [vmem:[%s12310_s8 + $0x568] sm:$0xff]  ;;  %v8995_v46 = vld [vmem:[%s12312_s10 + $0x130] ss:$8 sps:$4 sm:$0xff]  }
0x198b   :  { %v5218_v20 = vadd.f32 %v5217_v23, %v3787_v40  ;;  %v5390_v7 = vadd.f32 %v5389_v0, %v3819_v58  ;;  %v5219_v43 = vpop.f32.mrb[99].mxu0  ;;  %v5391_v42 = vpop.f32.mrb[83].mxu1  ;;  %5406 = vmatprep.subr.bf16.mxu0 %v7883_v24  ;;  %v5523_v54 = vmax.f32 %v5214_v15, 0.0  ;;  %v5531_v1 = vmax.f32 %v5386_v12, 0.0  ;;  %v8989_v40 = vld [vmem:[%s12312_s10 + $0x110] ss:$8 sps:$4 sm:$0xff]  }
0x198c   :  { %v5220_v44 = vadd.f32 %v5219_v43, %v3791_v5  ;;  %v5392_v21 = vadd.f32 %v5391_v42, %v3823_v52  ;;  %v5524_v6 = vmax.f32 %v5216_v13, 0.0  ;;  %v5532_v35 = vmax.f32 %v5388_v62, 0.0  ;;  %v3689_v58 = vld [vmem:[%s12310_s8 + $0x528] sm:$0xff]  ;;  %v9003_v43 = vld [vmem:[%s12312_s10 + $0x154] ss:$8 sps:$4 sm:$0xff]  }
0x198d   :  { %v5539_v59 = vmax.f32 %v5218_v20, 0.0  ;;  %v5547_v49 = vmax.f32 %v5390_v7, 0.0  ;;  %v8994_v5 = vld [vmem:[%s12312_s10 + $0x124] ss:$8 sps:$4 sm:$0xff]   ;;  %v7930_v52 = vcombine.low %v3673_v31, %v3681_v27  ;;  %v7947_v24 = vcombine.high %v3689_v58, %v3697_v3 }
0x198e   :  { %v5540_v9 = vmax.f32 %v5220_v44, 0.0  ;;  %v5548_v29 = vmax.f32 %v5392_v21, 0.0  ;;  %5407 = vmatpush1.bf16.msra.mxu0 %v7882_v61  ;;  %v3705_v41 = vld [vmem:[%s12310_s8 + $0x5a8] sm:$0xff]  ;;  %v7946_v15 = vcombine.low %v3689_v58, %v3697_v3  ;;  %v9001_v44 = vld [vmem:[%s12312_s10 + $0x150] ss:$8 sps:$4 sm:$0xff]  }
0x198f   :  { %v5555_v16 = vpack.c.bf16 %v5539_v59, %v5523_v54  ;;  %v11387_v39 = vpack.c.bf16 %v5547_v49, %v5531_v1  ;;  %5408 = vmatprep.subr.bf16.mxu0 %v7899_v45  ;;  %v7963_v12 = vcombine.high %v3705_v41, %v3713_v51  ;;  %v3721_v63 = vld [vmem:[%s12310_s8 + $0x628] sm:$0xff]  ;;  %v7962_v23 = vcombine.low %v3705_v41, %v3713_v51 }
0x1990   :  { %v5556_v34 = vpack.c.bf16 %v5540_v9, %v5524_v6  ;;  %v11389_v26 = vpack.c.bf16 %v5548_v29, %v5532_v35  ;;  %v3729_v13 = vld [vmem:[%s12310_s8 + $0x668] sm:$0xff]  ;;  %v9009_v6 = vld [vmem:[%s12312_s10 + $0x174] ss:$8 sps:$4 sm:$0xff]  }
0x1991   :  { %v9000_v62 = vld [vmem:[%s12312_s10 + $0x144] ss:$8 sps:$4 sm:$0xff]   ;;  %v7979_v0 = vcombine.high %v3721_v63, %v3729_v13  ;;  %v8998_v61 = vld [vmem:[%s12312_s10 + $0x140] ss:$8 sps:$4 sm:$0xff]   ;;  %v7978_v42 = vcombine.low %v3721_v63, %v3729_v13  ;;  %v9019_v13 = vld [vmem:[%s12312_s10 + $0x1b0] ss:$8 sps:$4 sm:$0xff]  }
0x1992   :  { %5409 = vmatpush1.bf16.msra.mxu0 %v7898_v14  ;;  %7151 = vmatprep.mubr.bf16.mxu1 %v5556_v34  ;;  %v3737_v20 = vld [vmem:[%s12310_s8 + $0x6a8] sm:$0xff]  ;;  %v3539_v34 = vld [vmem:[%s12310_s8 + $0x78] sm:$0xff] }
0x1993   :  { %7152 = vmatmul.mubr.bf16.vlgmr.msra.gmra.mrb[88].mxu1 %v5555_v16  ;;  %5410 = vmatprep.subr.bf16.mxu0 %v7915_v47  ;;  %v3745_v7 = vld [vmem:[%s12310_s8 + $0x6e8] sm:$0xff]  ;;  %v9007_v16 = vld [vmem:[%s12312_s10 + $0x170] ss:$8 sps:$4 sm:$0xff]  }
0x1994   :  { %7163 = vmatpush1.bf16.msra.mxu1 %v8986_v28  ;;  %v7995_v45 = vcombine.high %v3737_v20, %v3745_v7  ;;  %v3753_v21 = vld [vmem:[%s12310_s8 + $0x728] sm:$0xff]  ;;  %v7994_v10 = vcombine.low %v3737_v20, %v3745_v7  ;;  %v3531_v47 = vld [vmem:[%s12310_s8 + $0x38] sm:$0xff] }
0x1995   :  { %7164 = vmatprep.subr.bf16.mxu1 %v8991_v25  ;;  %v3761_v14 = vld [vmem:[%s12310_s8 + $0x768] sm:$0xff]  ;;  %v7791_v27 = vcombine.high %v3531_v47, %v3539_v34  ;;  %v7790_v58 = vcombine.low %v3531_v47, %v3539_v34  ;;  %v3643_v34 = vld [vmem:[%s12310_s8 + $0x3b8] sm:$0xff] }
0x1996   :  { %5411 = vmatpush1.bf16.msra.mxu0 %v7914_v36  ;;  %v8011_v54 = vcombine.high %v3753_v21, %v3761_v14  ;;  %v9004_v1 = vld [vmem:[%s12312_s10 + $0x160] ss:$8 sps:$4 sm:$0xff]   ;;  %v8010_v35 = vcombine.low %v3753_v21, %v3761_v14  ;;  %v9012_v28 = vld [vmem:[%s12312_s10 + $0x184] ss:$8 sps:$4 sm:$0xff]   ;;  %v3547_v36 = vld [vmem:[%s12310_s8 + $0xb8] sm:$0xff] }
0x1997   :  { %5412 = vmatprep.subr.bf16.mxu0 %v7931_v30  ;;  %v3769_v59 = vld [vmem:[%s12310_s8 + $0x7a8] sm:$0xff]  ;;  %v3555_v30 = vld [vmem:[%s12310_s8 + $0xf8] sm:$0xff] }
0x1998   :  { %7165 = vmatpush1.bf16.msra.mxu1 %v8989_v40  ;;  %v3777_v49 = vld [vmem:[%s12310_s8 + $0x7e8] sm:$0x11]  ;;  %v9015_v40 = vld [vmem:[%s12312_s10 + $0x194] ss:$8 sps:$4 sm:$0xff]   ;;  %v7807_v3 = vcombine.high %v3547_v36, %v3555_v30  ;;  %v7806_v41 = vcombine.low %v3547_v36, %v3555_v30  ;;  %v9025_v14 = vld [vmem:[%s12312_s10 + $0x1d0] ss:$8 sps:$4 sm:$0xff]  }
0x1999   :  { %7166 = vmatprep.subr.bf16.mxu1 %v8994_v5  ;;  %v8027_v9 = vcombine.high %v3769_v59, %v3777_v49  ;;  %v8026_v29 = vcombine.low %v3769_v59, %v3777_v49  ;;  %v9010_v25 = vld [vmem:[%s12312_s10 + $0x180] ss:$8 sps:$4 sm:$0xff]   ;;  %v9013_v5 = vld [vmem:[%s12312_s10 + $0x190] ss:$8 sps:$4 sm:$0xff]   ;;  %v9030_v59 = vld [vmem:[%s12312_s10 + $0x1e4] ss:$8 sps:$4 sm:$0xff]   ;;  %v3799_v49 = vrot.slane %v11354_v48, %v9993_v60 }
0x199a   :  { %5413 = vmatpush1.bf16.msra.mxu0 %v7930_v52  ;;  %v3563_v52 = vld [vmem:[%s12310_s8 + $0x138] sm:$0xff]  ;;  %v9022_v7 = vld [vmem:[%s12312_s10 + $0x1c0] ss:$8 sps:$4 sm:$0xff]  }
0x199b   :  { %5414 = vmatprep.subr.bf16.mxu0 %v7947_v24  ;;  %v5162_v31 = vsel %vm689_vm0, %v8026_v29, 0  ;;  %v3571_v24 = vld [vmem:[%s12310_s8 + $0x178] sm:$0xff]  ;;  %v9028_v47 = vld [vmem:[%s12312_s10 + $0x1e0] ss:$8 sps:$4 sm:$0xff]  }
0x199c   :  { %7167 = vmatpush1.bf16.msra.mxu1 %v8992_v50  ;;  %v9018_v50 = vld [vmem:[%s12312_s10 + $0x1a4] ss:$8 sps:$4 sm:$0xff]   ;;  %v7823_v51 = vcombine.high %v3563_v52, %v3571_v24  ;;  %v9033_v36 = vld [vmem:[%s12312_s10 + $0x1f4] ss:$8 sps:$4 sm:$0xff]  }
0x199d   :  { %7168 = vmatprep.subr.bf16.mxu1 %v8997_v53  ;;  %v9016_v53 = vld [vmem:[%s12312_s10 + $0x1a0] ss:$8 sps:$4 sm:$0xff]  }
0x199e   :  { %5415 = vmatpush1.bf16.msra.mxu0 %v7946_v15  ;;  %v3579_v15 = vld [vmem:[%s12310_s8 + $0x1b8] sm:$0xff] }
0x199f   :  { %5416 = vmatprep.subr.bf16.mxu0 %v7963_v12  ;;  %v3587_v12 = vld [vmem:[%s12310_s8 + $0x1f8] sm:$0xff] }
0x19a0   :  { %7169 = vmatpush1.bf16.msra.mxu1 %v8995_v46  ;;  %v7822_v46 = vcombine.low %v3563_v52, %v3571_v24  ;;  %v7839_v63 = vcombine.high %v3579_v15, %v3587_v12 }
0x19a1   :  { %7170 = vmatprep.subr.bf16.mxu1 %v9000_v62  ;;  %v3595_v62 = vld [vmem:[%s12310_s8 + $0x238] sm:$0xff] }
0x19a2   :  { %5417 = vmatpush1.bf16.msra.mxu0 %v7962_v23  ;;  %v3603_v23 = vld [vmem:[%s12310_s8 + $0x278] sm:$0xff] }
0x19a3   :  { %5418 = vmatprep.subr.bf16.mxu0 %v7979_v0  ;;  %v9024_v0 = vld [vmem:[%s12312_s10 + $0x1c4] ss:$8 sps:$4 sm:$0xff]   ;;  %v7855_v20 = vcombine.high %v3595_v62, %v3603_v23 }
0x19a4   :  { %7171 = vmatpush1.bf16.msra.mxu1 %v8998_v61  ;;  %v7838_v61 = vcombine.low %v3579_v15, %v3587_v12  ;;  %v9031_v12 = vld [vmem:[%s12312_s10 + $0x1f0] ss:$8 sps:$4 sm:$0xff]  }
0x19a5   :  { %7172 = vmatprep.subr.bf16.mxu1 %v9003_v43  ;;  %v3611_v43 = vld [vmem:[%s12310_s8 + $0x2b8] sm:$0xff] }
0x19a6   :  { %5419 = vmatpush1.bf16.msra.mxu0 %v7978_v42  ;;  %v3619_v42 = vld [vmem:[%s12310_s8 + $0x2f8] sm:$0xff] }
0x19a7   :  { %5420 = vmatprep.subr.bf16.mxu0 %v7995_v45  ;;  %v9027_v45 = vld [vmem:[%s12312_s10 + $0x1d4] ss:$8 sps:$4 sm:$0xff]   ;;  %v7871_v21 = vcombine.high %v3611_v43, %v3619_v42 }
0x19a8   :  { %7173 = vmatpush1.bf16.msra.mxu1 %v9001_v44  ;;  %v7854_v44 = vcombine.low %v3595_v62, %v3603_v23 }
0x19a9   :  { %7174 = vmatprep.subr.bf16.mxu1 %v9006_v38  ;;  %v3627_v38 = vld [vmem:[%s12310_s8 + $0x338] sm:$0xff] }
0x19aa   :  { %5421 = vmatpush1.bf16.msra.mxu0 %v7994_v10  ;;  %v3635_v10 = vld [vmem:[%s12310_s8 + $0x378] sm:$0xff] }
0x19ab   :  { %5422 = vmatprep.subr.bf16.mxu0 %v8011_v54  ;;  %v3795_v54 = vrot.slane %v11354_v48, %v9917_v2 }
0x19ac   :  { %7175 = vmatpush1.bf16.msra.mxu1 %v9004_v1  ;;  %v3835_v1 = vrot.slane %v11359_v17, %v10001_v8 }
0x19ad   :  { %7176 = vmatprep.subr.bf16.mxu1 %v9009_v6  ;;  %v3839_v6 = vrot.slane %v11359_v17, %v10205_v19 }
0x19ae   :  { %5423 = vmatpush1.bf16.msra.mxu0 %v8010_v35  ;;  %v7870_v35 = vcombine.low %v3611_v43, %v3619_v42 }
0x19af   :  { %8042 = vmatprep.subr.msk.bf16.mxu0 %vm689_vm0, %v8027_v9  ;;  %v7887_v9 = vcombine.high %v3627_v38, %v3635_v10 }
0x19b0   :  { %7177 = vmatpush1.bf16.msra.mxu1 %v9007_v16 }
0x19b1   :  { %7178 = vmatprep.subr.bf16.mxu1 %v9012_v28  ;;  %v3651_v28 = vld [vmem:[%s12310_s8 + $0x3f8] sm:$0xff] }
0x19b2   :  { %5425 = vmatpush1.bf16.msra.mxu0 %v5162_v31 }
0x19b3   :  { %5480 = vmatprep.subr.bf16.mxu0 %v7791_v27 }
0x19b4   :  { %7179 = vmatpush1.bf16.msra.mxu1 %v9010_v25 }
0x19b5   :  { %5427 = vmatmul.mubr.bf16.vlgmr.msra.gmra.mrb[112].mxu0 %v10822_v32  ;;  %7180 = vmatprep.subr.bf16.mxu1 %v9015_v40 }
0x19b6   :  { %5481 = vmatpush1.bf16.msra.mxu0 %v7790_v58  ;;  %8047 = vmatprep.mubr.msk.bf16.mxu0 %vm685_vm1, %v10826_v22  ;;  %v9021_v22 = vld [vmem:[%s12312_s10 + $0x1b4] ss:$8 sps:$4 sm:$0xff]  }
0x19b7   :  { %5482 = vmatprep.subr.bf16.mxu0 %v7807_v3 }
0x19b8   :  { %7181 = vmatpush1.bf16.msra.mxu1 %v9013_v5  ;;  %v7886_v5 = vcombine.low %v3627_v38, %v3635_v10  ;;  %v9034_v10 = vld [vmem:[%s12312_s10 + $0x200] ss:$8 sps:$4 sm:$0xff]  }
0x19b9   :  { %7182 = vmatprep.subr.bf16.mxu1 %v9018_v50 }
0x19ba   :  { %5483 = vmatpush1.bf16.msra.mxu0 %v7806_v41 }
0x19bb   :  { %5484 = vmatprep.subr.bf16.mxu0 %v7823_v51  ;;  %v7903_v51 = vcombine.high %v3643_v34, %v3651_v28 }
0x19bc   :  { %7183 = vmatpush1.bf16.msra.mxu1 %v9016_v53 }
0x19bd   :  { %7184 = vmatprep.subr.bf16.mxu1 %v9021_v22  ;;  %v7902_v22 = vcombine.low %v3643_v34, %v3651_v28  ;;  %v9040_v28 = vld [vmem:[%s12312_s10 + $0x220] ss:$8 sps:$4 sm:$0xff]  }
0x19be   :  { %5485 = vmatpush1.bf16.msra.mxu0 %v7822_v46  ;;  %v3659_v46 = vld [vmem:[%s12310_s8 + $0x438] sm:$0xff] }
0x19bf   :  { %5486 = vmatprep.subr.bf16.mxu0 %v7839_v63  ;;  %v3667_v63 = vld [vmem:[%s12310_s8 + $0x478] sm:$0xff] }
0x19c0   :  { %7185 = vmatpush1.bf16.msra.mxu1 %v9019_v13 }
0x19c1   :  { %7186 = vmatprep.subr.bf16.mxu1 %v9024_v0 }
0x19c2   :  { %5487 = vmatpush1.bf16.msra.mxu0 %v7838_v61  ;;  %v9036_v61 = vld [vmem:[%s12312_s10 + $0x204] ss:$8 sps:$4 sm:$0xff]  }
0x19c3   :  { %5488 = vmatprep.subr.bf16.mxu0 %v7855_v20 }
0x19c4   :  { %7187 = vmatpush1.bf16.msra.mxu1 %v9022_v7 }
0x19c5   :  { %7188 = vmatprep.subr.bf16.mxu1 %v9027_v45 }
0x19c6   :  { %5489 = vmatpush1.bf16.msra.mxu0 %v7854_v44 }
0x19c7   :  { %5490 = vmatprep.subr.bf16.mxu0 %v7871_v21  ;;  %v7919_v21 = vcombine.high %v3659_v46, %v3667_v63 }
0x19c8   :  { %v5256_v29 = vpop.f32.mrb[100].mxu0  ;;  %v5471_v16 = vpop.f32.mrb[84].mxu1  ;;  %7189 = vmatpush1.bf16.msra.mxu1 %v9025_v14 }
0x19c9   :  { %v5257_v31 = vadd.f32 %v5256_v29, %v3795_v54  ;;  %v5472_v17 = vadd.f32 %v5471_v16, %v3835_v1  ;;  %v5258_v27 = vpop.f32.mrb[101].mxu0  ;;  %v5473_v25 = vpop.f32.mrb[85].mxu1  ;;  %7190 = vmatprep.subr.bf16.mxu1 %v9030_v59  ;;  %v9039_v59 = vld [vmem:[%s12312_s10 + $0x214] ss:$8 sps:$4 sm:$0xff]   ;;  %v9042_v16 = vld [vmem:[%s12312_s10 + $0x224] ss:$8 sps:$4 sm:$0xff]  }
0x19ca   :  { %v5259_v30 = vadd.f32 %v5258_v27, %v3799_v49  ;;  %v5474_v40 = vadd.f32 %v5473_v25, %v3839_v6  ;;  %v5260_v58 = vpop.f32.mrb[102].mxu0  ;;  %v5475_v3 = vpop.f32.mrb[86].mxu1  ;;  %5491 = vmatpush1.bf16.msra.mxu0 %v7870_v35  ;;  %v9037_v35 = vld [vmem:[%s12312_s10 + $0x210] ss:$8 sps:$4 sm:$0xff]   ;;  %v9045_v27 = vld [vmem:[%s12312_s10 + $0x234] ss:$8 sps:$4 sm:$0xff]  }
0x19cb   :  { %v5261_v52 = vadd.f32 %v5260_v58, %v3795_v54  ;;  %v5476_v24 = vadd.f32 %v5475_v3, %v3835_v1  ;;  %v5262_v50 = vpop.f32.mrb[103].mxu0  ;;  %v5477_v41 = vpop.f32.mrb[87].mxu1  ;;  %5492 = vmatprep.subr.bf16.mxu0 %v7887_v9  ;;  %v5525_v13 = vmax.f32 %v5257_v31, 0.0  ;;  %v5535_v62 = vmax.f32 %v5472_v17, 0.0  ;;  %v3675_v54 = vld [vmem:[%s12310_s8 + $0x4b8] sm:$0xff] }
0x19cc   :  { %v5263_v53 = vadd.f32 %v5262_v50, %v3799_v49  ;;  %v5478_v15 = vadd.f32 %v5477_v41, %v3839_v6  ;;  %7191 = vmatpush1.bf16.msra.mxu1 %v9028_v47  ;;  %v5526_v20 = vmax.f32 %v5259_v30, 0.0  ;;  %v5536_v7 = vmax.f32 %v5474_v40, 0.0  ;;  %v3683_v1 = vld [vmem:[%s12310_s8 + $0x4f8] sm:$0xff]  ;;  %v9048_v3 = vld [vmem:[%s12312_s10 + $0x244] ss:$8 sps:$4 sm:$0xff]  }
0x19cd   :  { %v5541_v23 = vmax.f32 %v5261_v52, 0.0  ;;  %v5551_v0 = vmax.f32 %v5476_v24, 0.0  ;;  %7192 = vmatprep.subr.bf16.mxu1 %v9033_v36  ;;  %v7918_v49 = vcombine.low %v3659_v46, %v3667_v63  ;;  %v7935_v6 = vcombine.high %v3675_v54, %v3683_v1  ;;  %v3691_v9 = vld [vmem:[%s12310_s8 + $0x538] sm:$0xff]  ;;  %v9046_v24 = vld [vmem:[%s12312_s10 + $0x240] ss:$8 sps:$4 sm:$0xff]  }
0x19ce   :  { %v5542_v43 = vmax.f32 %v5263_v53, 0.0  ;;  %v5552_v42 = vmax.f32 %v5478_v15, 0.0  ;;  %5493 = vmatpush1.bf16.msra.mxu0 %v7886_v5  ;;  %v3699_v29 = vld [vmem:[%s12310_s8 + $0x578] sm:$0xff]  ;;  %v7934_v47 = vcombine.low %v3675_v54, %v3683_v1  ;;  %v9054_v63 = vld [vmem:[%s12312_s10 + $0x264] ss:$8 sps:$4 sm:$0xff]  }
0x19cf   :  { %v5557_v45 = vpack.c.bf16 %v5541_v23, %v5525_v13  ;;  %v11596_v44 = vpack.c.bf16 %v5551_v0, %v5535_v62  ;;  %5494 = vmatprep.subr.bf16.mxu0 %v7903_v51  ;;  %v7951_v34 = vcombine.high %v3691_v9, %v3699_v29  ;;  %v3707_v31 = vld [vmem:[%s12310_s8 + $0x5b8] sm:$0xff]  ;;  %v7950_v25 = vcombine.low %v3691_v9, %v3699_v29  ;;  %v9052_v23 = vld [vmem:[%s12312_s10 + $0x260] ss:$8 sps:$4 sm:$0xff]  }
0x19d0   :  { %v5558_v14 = vpack.c.bf16 %v5542_v43, %v5526_v20  ;;  %v11598_v38 = vpack.c.bf16 %v5552_v42, %v5536_v7  ;;  %7193 = vmatpush1.bf16.msra.mxu1 %v9031_v12  ;;  %v3715_v17 = vld [vmem:[%s12310_s8 + $0x5f8] sm:$0xff]  ;;  %v9070_v9 = vld [vmem:[%s12312_s10 + $0x2c0] ss:$8 sps:$4 sm:$0xff]  }
0x19d1   :  { %7205 = vmatprep.subr.bf16.mxu1 %v9036_v61  ;;  %v7967_v36 = vcombine.high %v3707_v31, %v3715_v17  ;;  %v9043_v30 = vld [vmem:[%s12312_s10 + $0x230] ss:$8 sps:$4 sm:$0xff]   ;;  %v7966_v5 = vcombine.low %v3707_v31, %v3715_v17  ;;  %v9051_v51 = vld [vmem:[%s12312_s10 + $0x254] ss:$8 sps:$4 sm:$0xff]   ;;  %v9076_v17 = vld [vmem:[%s12312_s10 + $0x2e0] ss:$8 sps:$4 sm:$0xff]  }
0x19d2   :  { %5495 = vmatpush1.bf16.msra.mxu0 %v7902_v22  ;;  %7194 = vmatprep.mubr.bf16.mxu1 %v5558_v14  ;;  %v3723_v40 = vld [vmem:[%s12310_s8 + $0x638] sm:$0xff] }
0x19d3   :  { %7195 = vmatmul.mubr.bf16.vlgmr.msra.gmra.mrb[88].mxu1 %v5557_v45  ;;  %5496 = vmatprep.subr.bf16.mxu0 %v7919_v21  ;;  %v3731_v58 = vld [vmem:[%s12310_s8 + $0x678] sm:$0xff]  ;;  %v9060_v21 = vld [vmem:[%s12312_s10 + $0x284] ss:$8 sps:$4 sm:$0xff]  }
0x19d4   :  { %7206 = vmatpush1.bf16.msra.mxu1 %v9034_v10  ;;  %v7983_v52 = vcombine.high %v3723_v40, %v3731_v58  ;;  %v3739_v50 = vld [vmem:[%s12310_s8 + $0x6b8] sm:$0xff]  ;;  %v7982_v53 = vcombine.low %v3723_v40, %v3731_v58  ;;  %v9058_v10 = vld [vmem:[%s12312_s10 + $0x280] ss:$8 sps:$4 sm:$0xff]  }
0x19d5   :  { %7207 = vmatprep.subr.bf16.mxu1 %v9039_v59  ;;  %v3747_v41 = vld [vmem:[%s12310_s8 + $0x6f8] sm:$0xff]  ;;  %v9066_v59 = vld [vmem:[%s12312_s10 + $0x2a4] ss:$8 sps:$4 sm:$0xff]  }
0x19d6   :  { %5497 = vmatpush1.bf16.msra.mxu0 %v7918_v49  ;;  %v7999_v15 = vcombine.high %v3739_v50, %v3747_v41  ;;  %v9049_v12 = vld [vmem:[%s12312_s10 + $0x250] ss:$8 sps:$4 sm:$0xff]   ;;  %v7998_v13 = vcombine.low %v3739_v50, %v3747_v41  ;;  %v9057_v20 = vld [vmem:[%s12312_s10 + $0x274] ss:$8 sps:$4 sm:$0xff]   ;;  %v9064_v49 = vld [vmem:[%s12312_s10 + $0x2a0] ss:$8 sps:$4 sm:$0xff]  }
0x19d7   :  { %5498 = vmatprep.subr.bf16.mxu0 %v7935_v6  ;;  %v3755_v22 = vld [vmem:[%s12310_s8 + $0x738] sm:$0xff] }
0x19d8   :  { %7208 = vmatpush1.bf16.msra.mxu1 %v9037_v35  ;;  %v3763_v46 = vld [vmem:[%s12310_s8 + $0x778] sm:$0xff]  ;;  %v9072_v35 = vld [vmem:[%s12312_s10 + $0x2c4] ss:$8 sps:$4 sm:$0xff]  }
0x19d9   :  { %7209 = vmatprep.subr.bf16.mxu1 %v9042_v16  ;;  %v8015_v62 = vcombine.high %v3755_v22, %v3763_v46  ;;  %v3771_v0 = vld [vmem:[%s12310_s8 + $0x7b8] sm:$0xff]  ;;  %v8014_v7 = vcombine.low %v3755_v22, %v3763_v46  ;;  %v9090_v46 = vld [vmem:[%s12312_s10 + $0x324] ss:$8 sps:$4 sm:$0xff]  }
0x19da   :  { %5499 = vmatpush1.bf16.msra.mxu0 %v7934_v47  ;;  %v3779_v61 = vld [vmem:[%s12310_s8 + $0x7f8] sm:$0x11]  ;;  %v3803_v47 = vrot.slane %v11354_v48, %v10001_v8 }
0x19db   :  { %5500 = vmatprep.subr.bf16.mxu0 %v7951_v34  ;;  %v8031_v43 = vcombine.high %v3771_v0, %v3779_v61  ;;  %v8030_v42 = vcombine.low %v3771_v0, %v3779_v61  ;;  %v9055_v45 = vld [vmem:[%s12312_s10 + $0x270] ss:$8 sps:$4 sm:$0xff]   ;;  %v9063_v54 = vld [vmem:[%s12312_s10 + $0x294] ss:$8 sps:$4 sm:$0xff]   ;;  %v9078_v34 = vld [vmem:[%s12312_s10 + $0x2e4] ss:$8 sps:$4 sm:$0xff]  }
0x19dc   :  { %7210 = vmatpush1.bf16.msra.mxu1 %v9040_v28  ;;  %v9061_v1 = vld [vmem:[%s12312_s10 + $0x290] ss:$8 sps:$4 sm:$0xff]   ;;  %v9069_v6 = vld [vmem:[%s12312_s10 + $0x2b4] ss:$8 sps:$4 sm:$0xff]   ;;  %v3807_v28 = vrot.slane %v11354_v48, %v10205_v19  ;;  %v9094_v0 = vld [vmem:[%s12312_s10 + $0x340] ss:$8 sps:$4 sm:$0xff]  }
0x19dd   :  { %7211 = vmatprep.subr.bf16.mxu1 %v9045_v27  ;;  %v5174_v14 = vsel %vm689_vm0, %v8030_v42, 0  ;;  %v9075_v29 = vld [vmem:[%s12312_s10 + $0x2d4] ss:$8 sps:$4 sm:$0xff]   ;;  %v9073_v16 = vld [vmem:[%s12312_s10 + $0x2d0] ss:$8 sps:$4 sm:$0xff]  }
0x19de   :  { %5501 = vmatpush1.bf16.msra.mxu0 %v7950_v25  ;;  %v9081_v8 = vld [vmem:[%s12312_s10 + $0x2f4] ss:$8 sps:$4 sm:$0xff]   ;;  %v9079_v19 = vld [vmem:[%s12312_s10 + $0x2f0] ss:$8 sps:$4 sm:$0xff]  }
0x19df   :  { %5502 = vmatprep.subr.bf16.mxu0 %v7967_v36  ;;  %v9085_v22 = vld [vmem:[%s12312_s10 + $0x310] ss:$8 sps:$4 sm:$0xff]   ;;  %v9099_v61 = vld [vmem:[%s12312_s10 + $0x354] ss:$8 sps:$4 sm:$0xff]  }
0x19e0   :  { %7212 = vmatpush1.bf16.msra.mxu1 %v9043_v30  ;;  %v9105_v42 = vld [vmem:[%s12312_s10 + $0x374] ss:$8 sps:$4 sm:$0xff]  }
0x19e1   :  { %7213 = vmatprep.subr.bf16.mxu1 %v9048_v3 }
0x19e2   :  { %5503 = vmatpush1.bf16.msra.mxu0 %v7966_v5 }
0x19e3   :  { %5504 = vmatprep.subr.bf16.mxu0 %v7983_v52 }
0x19e4   :  { %7214 = vmatpush1.bf16.msra.mxu1 %v9046_v24  ;;  %v9084_v24 = vld [vmem:[%s12312_s10 + $0x304] ss:$8 sps:$4 sm:$0xff]  }
0x19e5   :  { %7215 = vmatprep.subr.bf16.mxu1 %v9051_v51 }
0x19e6   :  { %5505 = vmatpush1.bf16.msra.mxu0 %v7982_v53 }
0x19e7   :  { %5506 = vmatprep.subr.bf16.mxu0 %v7999_v15  ;;  %v9082_v15 = vld [vmem:[%s12312_s10 + $0x300] ss:$8 sps:$4 sm:$0xff]  }
0x19e8   :  { %7216 = vmatpush1.bf16.msra.mxu1 %v9049_v12  ;;  %v9087_v12 = vld [vmem:[%s12312_s10 + $0x314] ss:$8 sps:$4 sm:$0xff]  }
0x19e9   :  { %7217 = vmatprep.subr.bf16.mxu1 %v9054_v63  ;;  %v9088_v63 = vld [vmem:[%s12312_s10 + $0x320] ss:$8 sps:$4 sm:$0xff]  }
0x19ea   :  { %5507 = vmatpush1.bf16.msra.mxu0 %v7998_v13  ;;  %v9093_v13 = vld [vmem:[%s12312_s10 + $0x334] ss:$8 sps:$4 sm:$0xff]  }
0x19eb   :  { %5508 = vmatprep.subr.bf16.mxu0 %v8015_v62  ;;  %v9091_v62 = vld [vmem:[%s12312_s10 + $0x330] ss:$8 sps:$4 sm:$0xff]  }
0x19ec   :  { %7218 = vmatpush1.bf16.msra.mxu1 %v9052_v23  ;;  %v9096_v23 = vld [vmem:[%s12312_s10 + $0x344] ss:$8 sps:$4 sm:$0xff]  }
0x19ed   :  { %7219 = vmatprep.subr.bf16.mxu1 %v9057_v20  ;;  %v9097_v20 = vld [vmem:[%s12312_s10 + $0x350] ss:$8 sps:$4 sm:$0xff]  }
0x19ee   :  { %5509 = vmatpush1.bf16.msra.mxu0 %v8014_v7  ;;  %v9102_v7 = vld [vmem:[%s12312_s10 + $0x364] ss:$8 sps:$4 sm:$0xff]  }
0x19ef   :  { %8046 = vmatprep.subr.msk.bf16.mxu0 %vm689_vm0, %v8031_v43  ;;  %v9100_v43 = vld [vmem:[%s12312_s10 + $0x360] ss:$8 sps:$4 sm:$0xff]   ;;  %vm7581_vm0 = vcmask 1041409  }
0x19f0   :  { %7220 = vmatpush1.bf16.msra.mxu1 %v9055_v45  ;;  %v9103_v45 = vld [vmem:[%s12312_s10 + $0x370] ss:$8 sps:$4 sm:$0xff]  }
0x19f1   :  { %7221 = vmatprep.subr.bf16.mxu1 %v9060_v21  ;;  %v9108_v21 = vld [vmem:[%s12312_s10 + $0x384] ss:$8 sps:$4 sm:$0xff]  }
0x19f2   :  { %5511 = vmatpush1.bf16.msra.mxu0 %v5174_v14  ;;  %v9106_v14 = vld [vmem:[%s12312_s10 + $0x380] ss:$8 sps:$4 sm:$0xff]  }
0x19f4   :  { %7222 = vmatpush1.bf16.msra.mxu1 %v9058_v10  ;;  %v9111_v10 = vld [vmem:[%s12312_s10 + $0x394] ss:$8 sps:$4 sm:$0xff]  }
0x19f5   :  { %5513 = vmatmul.mubr.bf16.vlgmr.msra.gmra.mrb[116].mxu0 %v10822_v32  ;;  %7223 = vmatprep.subr.bf16.mxu1 %v9063_v54  ;;  %v9067_v32 = vld [vmem:[%s12312_s10 + $0x2b0] ss:$8 sps:$4 sm:$0xff]  }
0x19f6   :  { %v9109_v54 = vld [vmem:[%s12312_s10 + $0x390] ss:$8 sps:$4 sm:$0xff]  }
0x19f8   :  { %7224 = vmatpush1.bf16.msra.mxu1 %v9061_v1  ;;  %v9114_v1 = vld [vmem:[%s12312_s10 + $0x3a4] ss:$8 sps:$4 sm:$0xff]  }
0x19f9   :  { %7225 = vmatprep.subr.bf16.mxu1 %v9066_v59  ;;  %v9112_v59 = vld [vmem:[%s12312_s10 + $0x3a0] ss:$8 sps:$4 sm:$0xff]  }
0x19fc   :  { %7226 = vmatpush1.bf16.msra.mxu1 %v9064_v49  ;;  %v9117_v49 = vld [vmem:[%s12312_s10 + $0x3b4] ss:$8 sps:$4 sm:$0xff]  }
0x19fd   :  { %7227 = vmatprep.subr.bf16.mxu1 %v9069_v6  ;;  %v9115_v6 = vld [vmem:[%s12312_s10 + $0x3b0] ss:$8 sps:$4 sm:$0xff]  }
0x1a00   :  { %7228 = vmatpush1.bf16.msra.mxu1 %v9067_v32  ;;  %v9120_v32 = vld [vmem:[%s12312_s10 + $0x3c4] ss:$8 sps:$4 sm:$0xff]  }
0x1a01   :  { %7229 = vmatprep.subr.bf16.mxu1 %v9072_v35  ;;  %v9118_v35 = vld [vmem:[%s12312_s10 + $0x3c0] ss:$8 sps:$4 sm:$0xff]  }
0x1a04   :  { %7230 = vmatpush1.bf16.msra.mxu1 %v9070_v9  ;;  %v9123_v9 = vld [vmem:[%s12312_s10 + $0x3d4] ss:$8 sps:$4 sm:$0xff]  }
0x1a05   :  { %7231 = vmatprep.subr.bf16.mxu1 %v9075_v29  ;;  %v3810_v29 = vsub.s32 6, %v9899_v55 }
0x1a08   :  { %v5299_v31 = vpop.f32.mrb[104].mxu0  ;;  %7232 = vmatpush1.bf16.msra.mxu1 %v9073_v16  ;;  %v3814_v16 = vsub.s32 7, %v9899_v55 }
0x1a09   :  { %v5300_v27 = vadd.f32 %v5299_v31, %v3803_v47  ;;  %v5301_v25 = vpop.f32.mrb[105].mxu0  ;;  %7233 = vmatprep.subr.bf16.mxu1 %v9078_v34  ;;  %v3811_v34 = vrot.slane %v11354_v48, %v3810_v29 }
0x1a0a   :  { %v5302_v36 = vadd.f32 %v5301_v25, %v3807_v28  ;;  %v5303_v30 = vpop.f32.mrb[106].mxu0  ;;  %v3815_v31 = vrot.slane %v11354_v48, %v3814_v16  ;;  %v9127_v48 = vld [vmem:[%s12312_s10 + $0x3f0] ss:$8 sps:$4 sm:$0xff]  }
0x1a0b   :  { %v5304_v40 = vadd.f32 %v5303_v30, %v3803_v47  ;;  %v5305_v58 = vpop.f32.mrb[107].mxu0  ;;  %v5527_v5 = vmax.f32 %v5300_v27, 0.0  ;;  %v9121_v47 = vld [vmem:[%s12312_s10 + $0x3d0] ss:$8 sps:$4 sm:$0xff]   ;;  %v9124_v27 = vld [vmem:[%s12312_s10 + $0x3e0] ss:$8 sps:$4 sm:$0xff]  }
0x1a0c   :  { %v5306_v3 = vadd.f32 %v5305_v58, %v3807_v28  ;;  %7234 = vmatpush1.bf16.msra.mxu1 %v9076_v17  ;;  %v5528_v50 = vmax.f32 %v5302_v36, 0.0  ;;  %v9126_v28 = vld [vmem:[%s12312_s10 + $0x3e4] ss:$8 sps:$4 sm:$0xff]   ;;  %v9129_v36 = vld [vmem:[%s12312_s10 + $0x3f4] ss:$8 sps:$4 sm:$0xff]  }
0x1a0d   :  { %v5543_v52 = vmax.f32 %v5304_v40, 0.0  ;;  %7235 = vmatprep.subr.bf16.mxu1 %v9081_v8 }
0x1a0e   :  { %v5544_v41 = vmax.f32 %v5306_v3, 0.0 }
0x1a0f   :  { %v5559_v51 = vpack.c.bf16 %v5543_v52, %v5527_v5 }
0x1a10   :  { %v5560_v53 = vpack.c.bf16 %v5544_v41, %v5528_v50  ;;  %7236 = vmatpush1.bf16.msra.mxu1 %v9079_v19 }
0x1a11   :  { %7248 = vmatprep.subr.bf16.mxu1 %v9084_v24  ;;  %v9132_v24 = vld [vmem:[%s12312_s10 + $0x404] ss:$8 sps:$4 sm:$0xff]  }
0x1a12   :  { %7237 = vmatprep.mubr.bf16.mxu1 %v5560_v53 }
0x1a13   :  { %7238 = vmatmul.mubr.bf16.vlgmr.msra.gmra.mrb[88].mxu1 %v5559_v51 }
0x1a14   :  { %7249 = vmatpush1.bf16.msra.mxu1 %v9082_v15  ;;  %v9130_v15 = vld [vmem:[%s12312_s10 + $0x400] ss:$8 sps:$4 sm:$0xff]  }
0x1a15   :  { %7250 = vmatprep.subr.bf16.mxu1 %v9087_v12  ;;  %v9135_v12 = vld [vmem:[%s12312_s10 + $0x414] ss:$8 sps:$4 sm:$0xff]  }
0x1a18   :  { %7251 = vmatpush1.bf16.msra.mxu1 %v9085_v22  ;;  %v9133_v22 = vld [vmem:[%s12312_s10 + $0x410] ss:$8 sps:$4 sm:$0xff]  }
0x1a19   :  { %7252 = vmatprep.subr.bf16.mxu1 %v9090_v46  ;;  %v9138_v46 = vld [vmem:[%s12312_s10 + $0x424] ss:$8 sps:$4 sm:$0xff]  }
0x1a1c   :  { %7253 = vmatpush1.bf16.msra.mxu1 %v9088_v63  ;;  %v9136_v63 = vld [vmem:[%s12312_s10 + $0x420] ss:$8 sps:$4 sm:$0xff]  }
0x1a1d   :  { %7254 = vmatprep.subr.bf16.mxu1 %v9093_v13  ;;  %v9141_v13 = vld [vmem:[%s12312_s10 + $0x434] ss:$8 sps:$4 sm:$0xff]  }
0x1a20   :  { %7255 = vmatpush1.bf16.msra.mxu1 %v9091_v62  ;;  %v9144_v62 = vld [vmem:[%s12312_s10 + $0x444] ss:$8 sps:$4 sm:$0xff]  }
0x1a21   :  { %7256 = vmatprep.subr.bf16.mxu1 %v9096_v23  ;;  %v9142_v23 = vld [vmem:[%s12312_s10 + $0x440] ss:$8 sps:$4 sm:$0xff]  }
0x1a24   :  { %7257 = vmatpush1.bf16.msra.mxu1 %v9094_v0  ;;  %v9147_v0 = vld [vmem:[%s12312_s10 + $0x454] ss:$8 sps:$4 sm:$0xff]  }
0x1a25   :  { %7258 = vmatprep.subr.bf16.mxu1 %v9099_v61  ;;  %v9145_v61 = vld [vmem:[%s12312_s10 + $0x450] ss:$8 sps:$4 sm:$0xff]  }
0x1a28   :  { %7259 = vmatpush1.bf16.msra.mxu1 %v9097_v20  ;;  %v9150_v20 = vld [vmem:[%s12312_s10 + $0x464] ss:$8 sps:$4 sm:$0xff]  }
0x1a29   :  { %7260 = vmatprep.subr.bf16.mxu1 %v9102_v7  ;;  %v9148_v7 = vld [vmem:[%s12312_s10 + $0x460] ss:$8 sps:$4 sm:$0xff]  }
0x1a2c   :  { %7261 = vmatpush1.bf16.msra.mxu1 %v9100_v43  ;;  %v9153_v43 = vld [vmem:[%s12312_s10 + $0x474] ss:$8 sps:$4 sm:$0xff]  }
0x1a2d   :  { %7262 = vmatprep.subr.bf16.mxu1 %v9105_v42  ;;  %v9151_v42 = vld [vmem:[%s12312_s10 + $0x470] ss:$8 sps:$4 sm:$0xff]  }
0x1a30   :  { %7263 = vmatpush1.bf16.msra.mxu1 %v9103_v45  ;;  %v9156_v45 = vld [vmem:[%s12312_s10 + $0x484] ss:$8 sps:$4 sm:$0xff]  }
0x1a31   :  { %7264 = vmatprep.subr.bf16.mxu1 %v9108_v21  ;;  %v9154_v21 = vld [vmem:[%s12312_s10 + $0x480] ss:$8 sps:$4 sm:$0xff]  }
0x1a34   :  { %7265 = vmatpush1.bf16.msra.mxu1 %v9106_v14  ;;  %v9159_v14 = vld [vmem:[%s12312_s10 + $0x494] ss:$8 sps:$4 sm:$0xff]  }
0x1a35   :  { %7266 = vmatprep.subr.bf16.mxu1 %v9111_v10  ;;  %v9157_v10 = vld [vmem:[%s12312_s10 + $0x490] ss:$8 sps:$4 sm:$0xff]  }
0x1a38   :  { %7267 = vmatpush1.bf16.msra.mxu1 %v9109_v54  ;;  %v9162_v54 = vld [vmem:[%s12312_s10 + $0x4a4] ss:$8 sps:$4 sm:$0xff]  }
0x1a39   :  { %7268 = vmatprep.subr.bf16.mxu1 %v9114_v1  ;;  %v9160_v1 = vld [vmem:[%s12312_s10 + $0x4a0] ss:$8 sps:$4 sm:$0xff]  }
0x1a3c   :  { %7269 = vmatpush1.bf16.msra.mxu1 %v9112_v59  ;;  %v9165_v59 = vld [vmem:[%s12312_s10 + $0x4b4] ss:$8 sps:$4 sm:$0xff]  }
0x1a3d   :  { %7270 = vmatprep.subr.bf16.mxu1 %v9117_v49  ;;  %v9163_v49 = vld [vmem:[%s12312_s10 + $0x4b0] ss:$8 sps:$4 sm:$0xff]  }
0x1a40   :  { %7271 = vmatpush1.bf16.msra.mxu1 %v9115_v6  ;;  %v9168_v6 = vld [vmem:[%s12312_s10 + $0x4c4] ss:$8 sps:$4 sm:$0xff]  }
0x1a41   :  { %7272 = vmatprep.subr.bf16.mxu1 %v9120_v32  ;;  %v9166_v32 = vld [vmem:[%s12312_s10 + $0x4c0] ss:$8 sps:$4 sm:$0xff]  }
0x1a44   :  { %7273 = vmatpush1.bf16.msra.mxu1 %v9118_v35  ;;  %v9171_v35 = vld [vmem:[%s12312_s10 + $0x4d4] ss:$8 sps:$4 sm:$0xff]  }
0x1a45   :  { %7274 = vmatprep.subr.bf16.mxu1 %v9123_v9  ;;  %v9169_v9 = vld [vmem:[%s12312_s10 + $0x4d0] ss:$8 sps:$4 sm:$0xff]  }
0x1a48   :  { %v5342_v17 = vpop.f32.mrb[108].mxu0  ;;  %7275 = vmatpush1.bf16.msra.mxu1 %v9121_v47  ;;  %v11934_v47 = vld [vmem:[%s12311_s9 + $0x8] sm:$0xff] }
0x1a49   :  { %v5343_v25 = vadd.f32 %v5342_v17, %v3811_v34  ;;  %v5344_v8 = vpop.f32.mrb[109].mxu0  ;;  %7276 = vmatprep.subr.bf16.mxu1 %v9126_v28  ;;  %v9174_v28 = vld [vmem:[%s12312_s10 + $0x4e4] ss:$8 sps:$4 sm:$0xff]  }
0x1a4a   :  { %v5345_v30 = vadd.f32 %v5344_v8, %v3815_v31  ;;  %v5346_v40 = vpop.f32.mrb[110].mxu0 }
0x1a4b   :  { %v5347_v58 = vadd.f32 %v5346_v40, %v3811_v34  ;;  %v5348_v3 = vpop.f32.mrb[111].mxu0  ;;  %v5529_v5 = vmax.f32 %v5343_v25, 0.0  ;;  %v3827_v34 = vrot.slane %v11934_v47, %v9917_v2  ;;  %v9177_v2 = vld [vmem:[%s12312_s10 + $0x4f4] ss:$8 sps:$4 sm:$0xff]  }
0x1a4c   :  { %v5349_v19 = vadd.f32 %v5348_v3, %v3815_v31  ;;  %7277 = vmatpush1.bf16.msra.mxu1 %v9124_v27  ;;  %v5530_v50 = vmax.f32 %v5345_v30, 0.0  ;;  %v3831_v31 = vrot.slane %v11934_v47, %v9993_v60  ;;  %v9172_v27 = vld [vmem:[%s12312_s10 + $0x4e0] ss:$8 sps:$4 sm:$0xff]   ;;  %v9175_v60 = vld [vmem:[%s12312_s10 + $0x4f0] ss:$8 sps:$4 sm:$0xff]  }
0x1a4d   :  { %v5545_v52 = vmax.f32 %v5347_v58, 0.0  ;;  %7278 = vmatprep.subr.bf16.mxu1 %v9129_v36 }
0x1a4e   :  { %v5546_v41 = vmax.f32 %v5349_v19, 0.0 }
0x1a4f   :  { %v5561_v51 = vpack.c.bf16 %v5545_v52, %v5529_v5  ;;  %v9180_v5 = vld [vmem:[%s12312_s10 + $0x504] ss:$8 sps:$4 sm:$0xff]  }
0x1a50   :  { %v5562_v53 = vpack.c.bf16 %v5546_v41, %v5530_v50  ;;  %7279 = vmatpush1.bf16.msra.mxu1 %v9127_v48 }
0x1a51   :  { %7291 = vmatprep.subr.bf16.mxu1 %v9132_v24 }
0x1a52   :  { %7280 = vmatprep.mubr.bf16.mxu1 %v5562_v53  ;;  %v9183_v53 = vld [vmem:[%s12312_s10 + $0x514] ss:$8 sps:$4 sm:$0xff]  }
0x1a53   :  { %7281 = vmatmul.mubr.bf16.vlgmr.msra.gmra.mrb[88].mxu1 %v5561_v51  ;;  %v9178_v51 = vld [vmem:[%s12312_s10 + $0x500] ss:$8 sps:$4 sm:$0xff]  }
0x1a54   :  { %7292 = vmatpush1.bf16.msra.mxu1 %v9130_v15  ;;  %7323 = vmatprep.mubr.bf16.mxu1 %v11389_v26  ;;  %v9139_v26 = vld [vmem:[%s12312_s10 + $0x430] ss:$8 sps:$4 sm:$0xff]  }
0x1a55   :  { %7293 = vmatprep.subr.bf16.mxu1 %v9135_v12  ;;  %v9181_v15 = vld [vmem:[%s12312_s10 + $0x510] ss:$8 sps:$4 sm:$0xff]   ;;  %v9186_v12 = vld [vmem:[%s12312_s10 + $0x524] ss:$8 sps:$4 sm:$0xff]  }
0x1a58   :  { %7294 = vmatpush1.bf16.msra.mxu1 %v9133_v22  ;;  %v9184_v22 = vld [vmem:[%s12312_s10 + $0x520] ss:$8 sps:$4 sm:$0xff]  }
0x1a59   :  { %7295 = vmatprep.subr.bf16.mxu1 %v9138_v46  ;;  %v9187_v46 = vld [vmem:[%s12312_s10 + $0x530] ss:$8 sps:$4 sm:$0xff]  }
0x1a5c   :  { %7296 = vmatpush1.bf16.msra.mxu1 %v9136_v63  ;;  %v9192_v63 = vld [vmem:[%s12312_s10 + $0x544] ss:$8 sps:$4 sm:$0xff]  }
0x1a5d   :  { %7297 = vmatprep.subr.bf16.mxu1 %v9141_v13  ;;  %v9190_v13 = vld [vmem:[%s12312_s10 + $0x540] ss:$8 sps:$4 sm:$0xff]  }
0x1a60   :  { %7298 = vmatpush1.bf16.msra.mxu1 %v9139_v26  ;;  %v9195_v26 = vld [vmem:[%s12312_s10 + $0x554] ss:$8 sps:$4 sm:$0xff]  }
0x1a61   :  { %7299 = vmatprep.subr.bf16.mxu1 %v9144_v62  ;;  %v9193_v62 = vld [vmem:[%s12312_s10 + $0x550] ss:$8 sps:$4 sm:$0xff]  }
0x1a64   :  { %7300 = vmatpush1.bf16.msra.mxu1 %v9142_v23  ;;  %v9198_v23 = vld [vmem:[%s12312_s10 + $0x564] ss:$8 sps:$4 sm:$0xff]  }
0x1a65   :  { %7301 = vmatprep.subr.bf16.mxu1 %v9147_v0  ;;  %v9196_v0 = vld [vmem:[%s12312_s10 + $0x560] ss:$8 sps:$4 sm:$0xff]  }
0x1a68   :  { %7302 = vmatpush1.bf16.msra.mxu1 %v9145_v61  ;;  %v9201_v61 = vld [vmem:[%s12312_s10 + $0x574] ss:$8 sps:$4 sm:$0xff]  }
0x1a69   :  { %7303 = vmatprep.subr.bf16.mxu1 %v9150_v20  ;;  %v9199_v20 = vld [vmem:[%s12312_s10 + $0x570] ss:$8 sps:$4 sm:$0xff]  }
0x1a6c   :  { %7304 = vmatpush1.bf16.msra.mxu1 %v9148_v7  ;;  %v9204_v7 = vld [vmem:[%s12312_s10 + $0x584] ss:$8 sps:$4 sm:$0xff]  }
0x1a6d   :  { %7305 = vmatprep.subr.bf16.mxu1 %v9153_v43  ;;  %v9202_v43 = vld [vmem:[%s12312_s10 + $0x580] ss:$8 sps:$4 sm:$0xff]  }
0x1a70   :  { %7306 = vmatpush1.bf16.msra.mxu1 %v9151_v42  ;;  %v9207_v42 = vld [vmem:[%s12312_s10 + $0x594] ss:$8 sps:$4 sm:$0xff]  }
0x1a71   :  { %7307 = vmatprep.subr.bf16.mxu1 %v9156_v45  ;;  %v9205_v45 = vld [vmem:[%s12312_s10 + $0x590] ss:$8 sps:$4 sm:$0xff]  }
0x1a74   :  { %7308 = vmatpush1.bf16.msra.mxu1 %v9154_v21  ;;  %v9210_v21 = vld [vmem:[%s12312_s10 + $0x5a4] ss:$8 sps:$4 sm:$0xff]  }
0x1a75   :  { %7309 = vmatprep.subr.bf16.mxu1 %v9159_v14  ;;  %v9208_v14 = vld [vmem:[%s12312_s10 + $0x5a0] ss:$8 sps:$4 sm:$0xff]  }
0x1a78   :  { %7310 = vmatpush1.bf16.msra.mxu1 %v9157_v10  ;;  %v9213_v10 = vld [vmem:[%s12312_s10 + $0x5b4] ss:$8 sps:$4 sm:$0xff]  }
0x1a79   :  { %7311 = vmatprep.subr.bf16.mxu1 %v9162_v54  ;;  %v9211_v54 = vld [vmem:[%s12312_s10 + $0x5b0] ss:$8 sps:$4 sm:$0xff]  }
0x1a7c   :  { %7312 = vmatpush1.bf16.msra.mxu1 %v9160_v1  ;;  %v9216_v1 = vld [vmem:[%s12312_s10 + $0x5c4] ss:$8 sps:$4 sm:$0xff]  }
0x1a7d   :  { %7313 = vmatprep.subr.bf16.mxu1 %v9165_v59  ;;  %v9214_v59 = vld [vmem:[%s12312_s10 + $0x5c0] ss:$8 sps:$4 sm:$0xff]  }
0x1a80   :  { %7314 = vmatpush1.bf16.msra.mxu1 %v9163_v49  ;;  %v9219_v49 = vld [vmem:[%s12312_s10 + $0x5d4] ss:$8 sps:$4 sm:$0xff]  }
0x1a81   :  { %7315 = vmatprep.subr.bf16.mxu1 %v9168_v6  ;;  %v9217_v6 = vld [vmem:[%s12312_s10 + $0x5d0] ss:$8 sps:$4 sm:$0xff]  }
0x1a84   :  { %7316 = vmatpush1.bf16.msra.mxu1 %v9166_v32  ;;  %v3843_v32 = vrot.slane %v11934_v47, %v3810_v29  ;;  %v9225_v29 = vld [vmem:[%s12312_s10 + $0x5f4] ss:$8 sps:$4 sm:$0xff]  }
0x1a85   :  { %7317 = vmatprep.subr.bf16.mxu1 %v9171_v35  ;;  %v9222_v35 = vld [vmem:[%s12312_s10 + $0x5e4] ss:$8 sps:$4 sm:$0xff]  }
0x1a88   :  { %v5428_v17 = vpop.f32.mrb[112].mxu0  ;;  %7318 = vmatpush1.bf16.msra.mxu1 %v9169_v9  ;;  %v3847_v9 = vrot.slane %v11934_v47, %v3814_v16  ;;  %v9223_v16 = vld [vmem:[%s12312_s10 + $0x5f0] ss:$8 sps:$4 sm:$0xff]  }
0x1a89   :  { %v5429_v25 = vadd.f32 %v5428_v17, %v3827_v34  ;;  %v5430_v8 = vpop.f32.mrb[113].mxu0  ;;  %7319 = vmatprep.subr.bf16.mxu1 %v9174_v28  ;;  %v9220_v28 = vld [vmem:[%s12312_s10 + $0x5e0] ss:$8 sps:$4 sm:$0xff]  }
0x1a8a   :  { %v5431_v36 = vadd.f32 %v5430_v8, %v3831_v31  ;;  %v5432_v30 = vpop.f32.mrb[114].mxu0 }
0x1a8b   :  { %v5433_v40 = vadd.f32 %v5432_v30, %v3827_v34  ;;  %v5434_v58 = vpop.f32.mrb[115].mxu0  ;;  %v5533_v19 = vmax.f32 %v5429_v25, 0.0 }
0x1a8c   :  { %v5435_v3 = vadd.f32 %v5434_v58, %v3831_v31  ;;  %7320 = vmatpush1.bf16.msra.mxu1 %v9172_v27  ;;  %v5534_v52 = vmax.f32 %v5431_v36, 0.0 }
0x1a8d   :  { %v5549_v48 = vmax.f32 %v5433_v40, 0.0  ;;  %7321 = vmatprep.subr.bf16.mxu1 %v9177_v2  ;;  %v9228_v40 = vld [vmem:[%s12312_s10 + $0x604] ss:$8 sps:$4 sm:$0xff]  }
0x1a8e   :  { %v5550_v24 = vmax.f32 %v5435_v3, 0.0 }
0x1a8f   :  { %v11955_v50 = vpack.c.bf16 %v5549_v48, %v5533_v19  ;;  %v9226_v48 = vld [vmem:[%s12312_s10 + $0x600] ss:$8 sps:$4 sm:$0xff]  }
0x1a90   :  { %v5566_v41 = vpack.c.bf16 %v5550_v24, %v5534_v52  ;;  %7322 = vmatpush1.bf16.msra.mxu1 %v9175_v60  ;;  %v9229_v52 = vld [vmem:[%s12312_s10 + $0x610] ss:$8 sps:$4 sm:$0xff]   ;;  %v9234_v24 = vld [vmem:[%s12312_s10 + $0x624] ss:$8 sps:$4 sm:$0xff]  }
0x1a91   :  { %7334 = vmatprep.subr.bf16.mxu1 %v9180_v5  ;;  %v9231_v5 = vld [vmem:[%s12312_s10 + $0x614] ss:$8 sps:$4 sm:$0xff]  }
0x1a93   :  { %7324 = vmatmul.mubr.bf16.vlgmr.msra.gmra.mrb[88].mxu1 %v11387_v39  ;;  %v9189_v39 = vld [vmem:[%s12312_s10 + $0x534] ss:$8 sps:$4 sm:$0xff]  }
0x1a94   :  { %7335 = vmatpush1.bf16.msra.mxu1 %v9178_v51  ;;  %7366 = vmatprep.mubr.bf16.mxu1 %v5566_v41  ;;  %v9232_v41 = vld [vmem:[%s12312_s10 + $0x620] ss:$8 sps:$4 sm:$0xff]   ;;  %v9240_v51 = vld [vmem:[%s12312_s10 + $0x644] ss:$8 sps:$4 sm:$0xff]  }
0x1a95   :  { %7336 = vmatprep.subr.bf16.mxu1 %v9183_v53  ;;  %v9238_v53 = vld [vmem:[%s12312_s10 + $0x640] ss:$8 sps:$4 sm:$0xff]  }
0x1a98   :  { %7337 = vmatpush1.bf16.msra.mxu1 %v9181_v15  ;;  %v9243_v15 = vld [vmem:[%s12312_s10 + $0x654] ss:$8 sps:$4 sm:$0xff]  }
0x1a99   :  { %7338 = vmatprep.subr.bf16.mxu1 %v9186_v12  ;;  %v9241_v12 = vld [vmem:[%s12312_s10 + $0x650] ss:$8 sps:$4 sm:$0xff]  }
0x1a9c   :  { %7339 = vmatpush1.bf16.msra.mxu1 %v9184_v22  ;;  %v9246_v22 = vld [vmem:[%s12312_s10 + $0x664] ss:$8 sps:$4 sm:$0xff]  }
0x1a9d   :  { %7340 = vmatprep.subr.bf16.mxu1 %v9189_v39  ;;  %v9244_v39 = vld [vmem:[%s12312_s10 + $0x660] ss:$8 sps:$4 sm:$0xff]  }
0x1aa0   :  { %7341 = vmatpush1.bf16.msra.mxu1 %v9187_v46  ;;  %v9249_v46 = vld [vmem:[%s12312_s10 + $0x674] ss:$8 sps:$4 sm:$0xff]  }
0x1aa1   :  { %7342 = vmatprep.subr.bf16.mxu1 %v9192_v63  ;;  %v9247_v63 = vld [vmem:[%s12312_s10 + $0x670] ss:$8 sps:$4 sm:$0xff]  }
0x1aa4   :  { %7343 = vmatpush1.bf16.msra.mxu1 %v9190_v13  ;;  %v9252_v13 = vld [vmem:[%s12312_s10 + $0x684] ss:$8 sps:$4 sm:$0xff]  }
0x1aa5   :  { %7344 = vmatprep.subr.bf16.mxu1 %v9195_v26  ;;  %v9250_v26 = vld [vmem:[%s12312_s10 + $0x680] ss:$8 sps:$4 sm:$0xff]  }
0x1aa8   :  { %7345 = vmatpush1.bf16.msra.mxu1 %v9193_v62  ;;  %v9255_v62 = vld [vmem:[%s12312_s10 + $0x694] ss:$8 sps:$4 sm:$0xff]  }
0x1aa9   :  { %7346 = vmatprep.subr.bf16.mxu1 %v9198_v23  ;;  %v9253_v23 = vld [vmem:[%s12312_s10 + $0x690] ss:$8 sps:$4 sm:$0xff]  }
0x1aac   :  { %7347 = vmatpush1.bf16.msra.mxu1 %v9196_v0  ;;  %v9258_v0 = vld [vmem:[%s12312_s10 + $0x6a4] ss:$8 sps:$4 sm:$0xff]  }
0x1aad   :  { %7348 = vmatprep.subr.bf16.mxu1 %v9201_v61  ;;  %v9256_v61 = vld [vmem:[%s12312_s10 + $0x6a0] ss:$8 sps:$4 sm:$0xff]  }
0x1ab0   :  { %7349 = vmatpush1.bf16.msra.mxu1 %v9199_v20  ;;  %v9261_v20 = vld [vmem:[%s12312_s10 + $0x6b4] ss:$8 sps:$4 sm:$0xff]  }
0x1ab1   :  { %7350 = vmatprep.subr.bf16.mxu1 %v9204_v7  ;;  %v9259_v7 = vld [vmem:[%s12312_s10 + $0x6b0] ss:$8 sps:$4 sm:$0xff]  }
0x1ab4   :  { %7351 = vmatpush1.bf16.msra.mxu1 %v9202_v43  ;;  %v9264_v43 = vld [vmem:[%s12312_s10 + $0x6c4] ss:$8 sps:$4 sm:$0xff]  }
0x1ab5   :  { %7352 = vmatprep.subr.bf16.mxu1 %v9207_v42  ;;  %v9262_v42 = vld [vmem:[%s12312_s10 + $0x6c0] ss:$8 sps:$4 sm:$0xff]  }
0x1ab8   :  { %7353 = vmatpush1.bf16.msra.mxu1 %v9205_v45  ;;  %v9267_v45 = vld [vmem:[%s12312_s10 + $0x6d4] ss:$8 sps:$4 sm:$0xff]  }
0x1ab9   :  { %7354 = vmatprep.subr.bf16.mxu1 %v9210_v21  ;;  %v9265_v21 = vld [vmem:[%s12312_s10 + $0x6d0] ss:$8 sps:$4 sm:$0xff]  }
0x1abc   :  { %7355 = vmatpush1.bf16.msra.mxu1 %v9208_v14  ;;  %v9270_v14 = vld [vmem:[%s12312_s10 + $0x6e4] ss:$8 sps:$4 sm:$0xff]  }
0x1abd   :  { %7356 = vmatprep.subr.bf16.mxu1 %v9213_v10  ;;  %v9268_v10 = vld [vmem:[%s12312_s10 + $0x6e0] ss:$8 sps:$4 sm:$0xff]  }
0x1ac0   :  { %7357 = vmatpush1.bf16.msra.mxu1 %v9211_v54  ;;  %v9273_v54 = vld [vmem:[%s12312_s10 + $0x6f4] ss:$8 sps:$4 sm:$0xff]  }
0x1ac1   :  { %7358 = vmatprep.subr.bf16.mxu1 %v9216_v1  ;;  %v9271_v1 = vld [vmem:[%s12312_s10 + $0x6f0] ss:$8 sps:$4 sm:$0xff]  }
0x1ac4   :  { %7359 = vmatpush1.bf16.msra.mxu1 %v9214_v59  ;;  %v9276_v59 = vld [vmem:[%s12312_s10 + $0x704] ss:$8 sps:$4 sm:$0xff]  }
0x1ac5   :  { %7360 = vmatprep.subr.bf16.mxu1 %v9219_v49  ;;  %v9274_v49 = vld [vmem:[%s12312_s10 + $0x700] ss:$8 sps:$4 sm:$0xff]  }
0x1ac8   :  { %v5514_v34 = vpop.f32.mrb[116].mxu0  ;;  %7361 = vmatpush1.bf16.msra.mxu1 %v9217_v6  ;;  %v9279_v6 = vld [vmem:[%s12312_s10 + $0x714] ss:$8 sps:$4 sm:$0xff]  }
0x1ac9   :  { %v5515_v31 = vadd.f32 %v5514_v34, %v3843_v32  ;;  %v5516_v17 = vpop.f32.mrb[117].mxu0  ;;  %7362 = vmatprep.subr.bf16.mxu1 %v9222_v35  ;;  %v9282_v35 = vld [vmem:[%s12312_s10 + $0x724] ss:$8 sps:$4 sm:$0xff]   ;;  %v9283_v34 = vld [vmem:[%s12312_s10 + $0x730] ss:$8 sps:$4 sm:$0xff]  }
0x1aca   :  { %v5517_v27 = vadd.f32 %v5516_v17, %v3847_v9  ;;  %v5518_v25 = vpop.f32.mrb[118].mxu0  ;;  %v9291_v17 = vld [vmem:[%s12312_s10 + $0x754] ss:$8 sps:$4 sm:$0xff]  }
0x1acb   :  { %v5519_v8 = vadd.f32 %v5518_v25, %v3843_v32  ;;  %v5520_v2 = vpop.f32.mrb[119].mxu0  ;;  %v5537_v47 = vmax.f32 %v5515_v31, 0.0  ;;  %v9277_v32 = vld [vmem:[%s12312_s10 + $0x710] ss:$8 sps:$4 sm:$0xff]   ;;  %v9286_v31 = vld [vmem:[%s12312_s10 + $0x740] ss:$8 sps:$4 sm:$0xff]  }
0x1acc   :  { %v5521_v36 = vadd.f32 %v5520_v2, %v3847_v9  ;;  %7363 = vmatpush1.bf16.msra.mxu1 %v9220_v28  ;;  %v5538_v58 = vmax.f32 %v5517_v27, 0.0  ;;  %v9280_v9 = vld [vmem:[%s12312_s10 + $0x720] ss:$8 sps:$4 sm:$0xff]   ;;  %v9288_v28 = vld [vmem:[%s12312_s10 + $0x744] ss:$8 sps:$4 sm:$0xff]  }
0x1acd   :  { %v5553_v30 = vmax.f32 %v5519_v8, 0.0  ;;  %7364 = vmatprep.subr.bf16.mxu1 %v9225_v29  ;;  %v9289_v29 = vld [vmem:[%s12312_s10 + $0x750] ss:$8 sps:$4 sm:$0xff]   ;;  %v9294_v27 = vld [vmem:[%s12312_s10 + $0x764] ss:$8 sps:$4 sm:$0xff]  }
0x1ace   :  { %v5554_v3 = vmax.f32 %v5521_v36, 0.0  ;;  %v9292_v25 = vld [vmem:[%s12312_s10 + $0x760] ss:$8 sps:$4 sm:$0xff]   ;;  %v9297_v8 = vld [vmem:[%s12312_s10 + $0x774] ss:$8 sps:$4 sm:$0xff]  }
0x1acf   :  { %v12060_v60 = vpack.c.bf16 %v5553_v30, %v5537_v47  ;;  %v9295_v2 = vld [vmem:[%s12312_s10 + $0x770] ss:$8 sps:$4 sm:$0xff]   ;;  %v9300_v36 = vld [vmem:[%s12312_s10 + $0x784] ss:$8 sps:$4 sm:$0xff]   ;;  %v9303_v47 = vld [vmem:[%s12312_s10 + $0x794] ss:$8 sps:$4 sm:$0xff]  }
0x1ad0   :  { %v12062_v19 = vpack.c.bf16 %v5554_v3, %v5538_v58  ;;  %7365 = vmatpush1.bf16.msra.mxu1 %v9223_v16  ;;  %v9298_v16 = vld [vmem:[%s12312_s10 + $0x780] ss:$8 sps:$4 sm:$0xff]   ;;  %v9301_v30 = vld [vmem:[%s12312_s10 + $0x790] ss:$8 sps:$4 sm:$0xff]   ;;  %v9309_v3 = vld [vmem:[%s12312_s10 + $0x7b4] ss:$8 sps:$4 sm:$0xff]  }
0x1ad1   :  { %7377 = vmatprep.subr.bf16.mxu1 %v9228_v40  ;;  %v9306_v40 = vld [vmem:[%s12312_s10 + $0x7a4] ss:$8 sps:$4 sm:$0xff]   ;;  %v9304_v58 = vld [vmem:[%s12312_s10 + $0x7a0] ss:$8 sps:$4 sm:$0xff]  }
0x1ad3   :  { %7367 = vmatmul.mubr.bf16.vlgmr.msra.gmra.mrb[88].mxu1 %v11955_v50  ;;  %v9237_v50 = vld [vmem:[%s12312_s10 + $0x634] ss:$8 sps:$4 sm:$0xff]  }
0x1ad4   :  { %7378 = vmatpush1.bf16.msra.mxu1 %v9226_v48  ;;  %7409 = vmatprep.mubr.bf16.mxu1 %v11598_v38  ;;  %v9235_v38 = vld [vmem:[%s12312_s10 + $0x630] ss:$8 sps:$4 sm:$0xff]   ;;  %v9312_v48 = vld [vmem:[%s12312_s10 + $0x7c4] ss:$8 sps:$4 sm:$0xff]  }
0x1ad5   :  { %7379 = vmatprep.subr.bf16.mxu1 %v9231_v5  ;;  %v9310_v5 = vld [vmem:[%s12312_s10 + $0x7c0] ss:$8 sps:$4 sm:$0xff]  }
0x1ad8   :  { %7380 = vmatpush1.bf16.msra.mxu1 %v9229_v52  ;;  %v9315_v52 = vld [vmem:[%s12312_s10 + $0x7d4] ss:$8 sps:$4 sm:$0xff]  }
0x1ad9   :  { %7381 = vmatprep.subr.bf16.mxu1 %v9234_v24  ;;  %v9313_v24 = vld [vmem:[%s12312_s10 + $0x7d0] ss:$8 sps:$4 sm:$0xff]  }
0x1adc   :  { %7382 = vmatpush1.bf16.msra.mxu1 %v9232_v41  ;;  %v9318_v41 = vld [vmem:[%s12312_s10 + $0x7e4] ss:$8 sps:$4 sm:$0xff]  }
0x1add   :  { %7383 = vmatprep.subr.bf16.mxu1 %v9237_v50  ;;  %v9316_v50 = vld [vmem:[%s12312_s10 + $0x7e0] ss:$8 sps:$4 sm:$0xff]  }
0x1ae0   :  { %7384 = vmatpush1.bf16.msra.mxu1 %v9235_v38  ;;  %v9321_v38 = vld [vmem:[%s12312_s10 + $0x7f4] ss:$8 sps:$4 sm:$0xff]  }
0x1ae1   :  { %7385 = vmatprep.subr.bf16.mxu1 %v9240_v51  ;;  %v9319_v51 = vld [vmem:[%s12312_s10 + $0x7f0] ss:$8 sps:$4 sm:$0xff]  }
0x1ae4   :  { %7386 = vmatpush1.bf16.msra.mxu1 %v9238_v53  ;;  %v5827_v53 = vld [vmem:[%s12313_s11] sm:$0x3] }
0x1ae5   :  { %7387 = vmatprep.subr.bf16.mxu1 %v9243_v15  ;;  %v5832_v15 = vrot.slane %v5827_v53, %v9926_v4 }
0x1ae8   :  { %7388 = vmatpush1.bf16.msra.mxu1 %v9241_v12  ;;  %v5836_v12 = vrot.slane %v5827_v53, %v9902_v56 }
0x1ae9   :  { %7389 = vmatprep.subr.bf16.mxu1 %v9246_v22 }
0x1aec   :  { %7390 = vmatpush1.bf16.msra.mxu1 %v9244_v39 }
0x1aed   :  { %7391 = vmatprep.subr.bf16.mxu1 %v9249_v46 }
0x1af0   :  { %7392 = vmatpush1.bf16.msra.mxu1 %v9247_v63 }
0x1af1   :  { %7393 = vmatprep.subr.bf16.mxu1 %v9252_v13 }
0x1af4   :  { %7394 = vmatpush1.bf16.msra.mxu1 %v9250_v26 }
0x1af5   :  { %7395 = vmatprep.subr.bf16.mxu1 %v9255_v62 }
0x1af8   :  { %7396 = vmatpush1.bf16.msra.mxu1 %v9253_v23 }
0x1af9   :  { %7397 = vmatprep.subr.bf16.mxu1 %v9258_v0 }
0x1afc   :  { %7398 = vmatpush1.bf16.msra.mxu1 %v9256_v61 }
0x1afd   :  { %7399 = vmatprep.subr.bf16.mxu1 %v9261_v20 }
0x1b00   :  { %7400 = vmatpush1.bf16.msra.mxu1 %v9259_v7 }
0x1b01   :  { %7401 = vmatprep.subr.bf16.mxu1 %v9264_v43 }
0x1b04   :  { %7402 = vmatpush1.bf16.msra.mxu1 %v9262_v42 }
0x1b05   :  { %7403 = vmatprep.subr.bf16.mxu1 %v9267_v45 }
0x1b08   :  { %7404 = vmatpush1.bf16.msra.mxu1 %v9265_v21 }
0x1b09   :  { %7405 = vmatprep.subr.bf16.mxu1 %v9270_v14 }
0x1b0c   :  { %7406 = vmatpush1.bf16.msra.mxu1 %v9268_v10 }
0x1b0d   :  { %7407 = vmatprep.subr.bf16.mxu1 %v9273_v54 }
0x1b10   :  { %7408 = vmatpush1.bf16.msra.mxu1 %v9271_v1 }
0x1b11   :  { %7420 = vmatprep.subr.bf16.mxu1 %v9276_v59 }
0x1b13   :  { %7410 = vmatmul.mubr.bf16.vlgmr.msra.gmra.mrb[88].mxu1 %v11596_v44  ;;  %v9285_v44 = vld [vmem:[%s12312_s10 + $0x734] ss:$8 sps:$4 sm:$0xff]  }
0x1b14   :  { %7421 = vmatpush1.bf16.msra.mxu1 %v9274_v49  ;;  %7452 = vmatprep.mubr.bf16.mxu1 %v12062_v19  ;;  %v9307_v19 = vld [vmem:[%s12312_s10 + $0x7b0] ss:$8 sps:$4 sm:$0xff]  }
0x1b15   :  { %7422 = vmatprep.subr.bf16.mxu1 %v9279_v6 }
0x1b18   :  { %7423 = vmatpush1.bf16.msra.mxu1 %v9277_v32 }
0x1b19   :  { %7424 = vmatprep.subr.bf16.mxu1 %v9282_v35 }
0x1b1c   :  { %7425 = vmatpush1.bf16.msra.mxu1 %v9280_v9 }
0x1b1d   :  { %7426 = vmatprep.subr.bf16.mxu1 %v9285_v44 }
0x1b20   :  { %7427 = vmatpush1.bf16.msra.mxu1 %v9283_v34 }
0x1b21   :  { %7428 = vmatprep.subr.bf16.mxu1 %v9288_v28 }
0x1b24   :  { %7429 = vmatpush1.bf16.msra.mxu1 %v9286_v31 }
0x1b25   :  { %7430 = vmatprep.subr.bf16.mxu1 %v9291_v17 }
0x1b28   :  { %7431 = vmatpush1.bf16.msra.mxu1 %v9289_v29 }
0x1b29   :  { %7432 = vmatprep.subr.bf16.mxu1 %v9294_v27 }
0x1b2c   :  { %7433 = vmatpush1.bf16.msra.mxu1 %v9292_v25  ;;  %v7467_v25 = vld [vmem:[%s12314_s12] sm:$0x3]  ;;  %s9478_s12 = smov [#allocation3]  }
0x1b2d   :  { %7434 = vmatprep.subr.bf16.mxu1 %v9297_v8  ;;  %v7468_v8 = vld [vmem:[%s12315_s13] sm:$0x3]  ;;  %s7592_s13 = sshll.u32 %s9478_s12, 4  ;;  %s7593_s13 = int_to_ptr.vmem [resolvable:$true] %s7592_s13 }
0x1b2e   :  { %p9417_p1 = scmp.lt.s32.totalorder %s7593_s13, %s7593_s13 }
0x1b30   :  { %7435 = vmatpush1.bf16.msra.mxu1 %v9295_v2  ;;  %v7509_v2 = vrot.slane %v7467_v25, %v9926_v4 }
0x1b31   :  { %7436 = vmatprep.subr.bf16.mxu1 %v9300_v36  ;;  %v7513_v36 = vrot.slane %v7467_v25, %v9902_v56 }
0x1b34   :  { %7437 = vmatpush1.bf16.msra.mxu1 %v9298_v16  ;;  %v7535_v16 = vld [vmem:[%s12316_s14] sm:$0x3]  ;;  %s9412_s14 = scalar_lea.vmem %s7593_s13, 32 }
0x1b35   :  { %7438 = vmatprep.subr.bf16.mxu1 %v9303_v47  ;;  %p9413_p0 = scmp.ne.s32.totalorder %s7593_s13, %s9412_s14  ;;  %p9418_p2 = scmp.lt.s32.totalorder %s9412_s14, %s9412_s14 }
0x1b37   :  { %p9419_p3 = por %p9418_p2, %p9417_p1 }
0x1b38   :  { %7439 = vmatpush1.bf16.msra.mxu1 %v9301_v30 }
0x1b39   :  { %7440 = vmatprep.subr.bf16.mxu1 %v9306_v40  ;;  %p9420_p4 = pnand %p9419_p3, %p9413_p0 }
0x1b3c   :  { %7441 = vmatpush1.bf16.msra.mxu1 %v9304_v58  ;;  %v7524_v58 = vrot.slane %v7468_v8, %v9926_v4 }
0x1b3d   :  { %7442 = vmatprep.subr.bf16.mxu1 %v9309_v3  ;;  %v7528_v3 = vrot.slane %v7468_v8, %v9902_v56 }
0x1b40   :  { %7443 = vmatpush1.bf16.msra.mxu1 %v9307_v19 }
0x1b41   :  { %7444 = vmatprep.subr.bf16.mxu1 %v9312_v48  ;;  %v7540_v48 = vrot.slane %v7535_v16, %v9926_v4 }
0x1b44   :  { %7445 = vmatpush1.bf16.msra.mxu1 %v9310_v5  ;;  %v7544_v5 = vrot.slane %v7535_v16, %v9902_v56 }
0x1b45   :  { %7446 = vmatprep.subr.bf16.mxu1 %v9315_v52 }
0x1b48   :  { %7447 = vmatpush1.bf16.msra.mxu1 %v9313_v24 }
0x1b49   :  { %7448 = vmatprep.subr.bf16.mxu1 %v9318_v41 }
0x1b4c   :  { %7449 = vmatpush1.bf16.msra.mxu1 %v9316_v50 }
0x1b4d   :  { %7450 = vmatprep.subr.bf16.mxu1 %v9321_v38 }
0x1b50   :  { %7451 = vmatpush1.bf16.msra.mxu1 %v9319_v51 }
0x1b53   :  { %7453 = vmatmul.mubr.bf16.vlgmr.msra.gmra.mrb[88].mxu1 %v12060_v60 }
0x1c26   :  { %v7454_v22 = vpop.f32.mrb[88].mxu1 }
0x1c27   :  { %v8625_v39 = vadd.f32 %v7454_v22, %v5832_v15  ;;  %v7456_v46 = vpop.f32.mrb[89].mxu1 }
0x1c28   :  { %v8626_v63 = vadd.f32 %v7456_v46, %v5836_v12  ;;  %v7458_v13 = vpop.f32.mrb[90].mxu1 }
0x1c29   :  { %v8627_v26 = vadd.f32 %v7458_v13, %v5832_v15  ;;  %v7460_v62 = vpop.f32.mrb[91].mxu1  ;;  %v7463_v60 = vadd.f32 %v8625_v39, %v10800_v18 }
0x1c2a   :  { %v7464_v23 = vadd.f32 %v8626_v63, %v10802_v11  ;;  %v8628_v0 = vadd.f32 %v7460_v62, %v5836_v12 }
0x1c2b   :  { %v7465_v7 = vadd.f32 %v8627_v26, %v10804_v57 }
0x1c2c   :  { %v7469_v61 = vsel %vm685_vm1, %v7464_v23, 0.0  ;;  %v7466_v20 = vadd.f32 %v8628_v0, %v10806_v33 }
0x1c2d   :  { %v7470_v43 = vadd.f32 %v7469_v61, %v7463_v60 }
0x1c2e   :  { %v7473_v42 = vsel %vm685_vm1, %v7466_v20, 0.0 }
0x1c2f   :  { %7471 = vadd.xlane.f32.xlu0 %v7470_v43  ;;  %v7474_v45 = vadd.f32 %v7473_v42, %v7465_v7 }
0x1c31   :  { %7475 = vadd.xlane.f32.xlu1 %v7474_v45 }
0x1cbc   :  { %v7472_v21 = vpop.xlane.xlu0 %7471 }
0x1cbd   :  { %v7477_v14 = vmul.f32 0.004, %v7472_v21 }
0x1cbe   :  { %v7476_v10 = vpop.xlane.xlu1 %7475 }
0x1cbf   :  { %v7479_v54 = vsub.f32 %v7463_v60, %v7477_v14  ;;  %v7480_v11 = vsub.f32 %v7464_v23, %v7477_v14  ;;  %v7478_v1 = vmul.f32 0.004, %v7476_v10  ;;  %v8304_v23 = vld [vmem:[#allocation2] ss:$0 sm:$0xff]  ;;  %v7575_v60 = vsub.s32 %v9982_v37, %v9899_v55 }
0x1cc1   :  { %v7483_v59 = vmul.f32 %v7479_v54, %v7479_v54  ;;  %v7484_v18 = vmul.f32 %v7480_v11, %v7480_v11  ;;  %v7481_v49 = vsub.f32 %v7465_v7, %v7478_v1  ;;  %v7482_v6 = vsub.f32 %v7466_v20, %v7478_v1 }
0x1cc3   :  { %v7485_v32 = vmul.f32 %v7481_v49, %v7481_v49  ;;  %v7486_v33 = vmul.f32 %v7482_v6, %v7482_v6  ;;  %v7487_v57 = vsel %vm685_vm1, %v7484_v18, 0.0 }
0x1cc4   :  { %v7488_v35 = vadd.f32 %v7487_v57, %v7483_v59 }
0x1cc5   :  { %v7491_v9 = vsel %vm685_vm1, %v7486_v33, 0.0 }
0x1cc6   :  { %7489 = vadd.xlane.f32.xlu0 %v7488_v35  ;;  %v7492_v44 = vadd.f32 %v7491_v9, %v7485_v32 }
0x1cc8   :  { %7493 = vadd.xlane.f32.xlu1 %v7492_v44 }
0x1d53   :  { %v7490_v34 = vpop.xlane.xlu0 %7489 }
0x1d54   :  { %v7495_v28 = vmul.f32 0.004, %v7490_v34 }
0x1d55   :  { %v7494_v31 = vpop.xlane.xlu1 %7493 }
0x1d56   :  { %v7497_v17 = vadd.f32 1e-05, %v7495_v28  ;;  %v7496_v29 = vmul.f32 0.004, %v7494_v31 }
0x1d58   :  { %9406 = vrsqrt.f32 %v7497_v17  ;;  %v7498_v27 = vadd.f32 1e-05, %v7496_v29 }
0x1d5a   :  { %9408 = vrsqrt.f32 %v7498_v27 }
0x1d62   :  { %v9407_v47 = vpop.eup %9406 }
0x1d63   :  { %v7502_v30 = vmul.f32 %v9407_v47, %v7480_v11  ;;  %v7501_v40 = vmul.f32 %v9407_v47, %v7479_v54 }
0x1d64   :  { %v9409_v19 = vpop.eup %9408 }
0x1d65   :  { %v7504_v52 = vmul.f32 %v9409_v19, %v7482_v6  ;;  %v7516_v24 = vmul.f32 %v7509_v2, %v7501_v40  ;;  %v7517_v41 = vmul.f32 %v7513_v36, %v7502_v30  ;;  %v7503_v50 = vmul.f32 %v9409_v19, %v7481_v49 }
0x1d67   :  { %v7531_v38 = vadd.f32 %v7524_v58, %v7516_v24  ;;  %v7532_v51 = vadd.f32 %v7528_v3, %v7517_v41  ;;  %v7518_v53 = vmul.f32 %v7509_v2, %v7503_v50  ;;  %v7519_v15 = vmul.f32 %v7513_v36, %v7504_v52 }
0x1d69   :  { %v7547_v12 = vmul.f32 %v7540_v48, %v7531_v38  ;;  %v7548_v22 = vmul.f32 %v7544_v5, %v7532_v51  ;;  %v7533_v39 = vadd.f32 %v7524_v58, %v7518_v53  ;;  %v7534_v46 = vadd.f32 %v7528_v3, %v7519_v15 }
0x1d6b   :  { %v7551_v63 = vsel %vm685_vm1, %v7548_v22, 0.0  ;;  %v7549_v13 = vmul.f32 %v7540_v48, %v7533_v39  ;;  %v7550_v26 = vmul.f32 %v7544_v5, %v7534_v46 }
0x1d6c   :  { %v7552_v62 = vadd.f32 %v7551_v63, %v7547_v12 }
0x1d6d   :  { %v7555_v4 = vsel %vm685_vm1, %v7550_v26, 0.0 }
0x1d6e   :  { %7553 = vadd.xlane.f32.xlu0 %v7552_v62  ;;  %v7556_v56 = vadd.f32 %v7555_v4, %v7549_v13 }
0x1d70   :  { %7557 = vadd.xlane.f32.xlu1 %v7556_v56 }
0x1d84   :  { %7566 = vperm.xlu0 %8700, %v8304_v23  }
0x1dfb   :  { %v7554_v0 = vpop.xlane.xlu0 %7553 }
0x1dfd   :  { %v7558_v61 = vpop.xlane.xlu1 %7557 }
0x1e03   :  { %v7567_v20 = vpop.permute.xlu0 %7566 }
0x1e04   :  { %v7569_v7 = vadd.f32 %v7567_v20, %v7554_v0  ;;  %v7570_v43 = vadd.f32 %v7567_v20, %v7558_v61 }
0x1e06   :  { %v7576_v42 = vrot.slane %v7569_v7, %v7575_v60  ;;  %v7580_v45 = vrot.slane %v7570_v43, %v7575_v60 }
0x1e08   :  { %v7582_v21 = vsel %vm7581_vm0, %v7580_v45, %v7576_v42 }
0x1e09   :  { %7585 = vst.msk [vmem:[#allocation3] sm:$0x3] %vm7584_vm6, %v7582_v21 }
0x1e0a   :  { %9423 = shalt.err (!%p9420_p4)
}
0x1e0b   :  { %s9424_s0 = scalar_lea.hbm %s12318_s16, 32 }
0x1e0c   :  { %p9425_p5 = scmp.ne.s32.totalorder %s12318_s16, %s9424_s0  ;;  %p9428_p6 = scmp.lt.u32.totalorder %s9424_s0, %s12318_s16 }
0x1e0e   :  { %p9430_p7 = pnand %p9428_p6, %p9425_p5 }
0x1e10   :  { %9433 = shalt.err (!%p9430_p7)
}
0x1e11   :  { %7595 = dma.vmem_to_hbm [thread:$0]  %s7593_s13, 32, %s12318_s16, [#allocation4]  }
0x1e12   :  { %9434 = dma.done.wait [#allocation4], 32  }
0x1e13   :  { %9435 = vsyncadd [#allocation4], 4294967264 }
0x1e14   :  { %7599 = vsyncpa [#allocation4], 1 }

</bundles_post_ra>
